<compile_context>
chip_gen: v5e
topology: v5e:2x2
jax: 0.10.0
libtpu: 0.0.40
codegen_flags: <defaults>
</compile_context>

<pallas_src>
import jax
import jax.numpy as jnp
from jax import lax
from jax.experimental import pallas as pl
from jax.experimental.pallas import tpu as pltpu

# ------------------------------ config (small, synthetic) --------------------
VOCAB = 64        # vocab_size
C = 32            # embedding_size
H = 4 * C         # channel-mix hidden size (128)
T = 8             # context_length / sequence length
B = 2             # batch
BP = 8            # batch padded to one sublane tile (all row ops 8-aligned)
TBP = T * BP      # time-major flattened rows inside the kernel
N_LAYERS = 2      # num_hidden_layers
USE_FFN_PRE = True
EPS = 1e-5        # nn.LayerNorm default eps
_F32 = jnp.float32
_BF16 = jnp.bfloat16

# Fused kernel assumes the use_ffn_pre=True topology (layer 0 is the FFN-pre
# block, remaining layers are RWKV blocks).
assert USE_FFN_PRE and N_LAYERS >= 2
LA = N_LAYERS - 1                 # number of time-mix (RWKV) layers
SROWS = N_LAYERS * 5 * BP         # packed state rows: [shift_att, shift_ffn, aa, bb, pp]


# ----------------------------- in-kernel helpers ------------------------------
def _layernorm(x, w, b):
    # x: (TBP, C); w, b: (1, C) -- f32 statistics.
    mu = jnp.mean(x, axis=-1, keepdims=True)
    var = jnp.mean(jnp.square(x - mu), axis=-1, keepdims=True)
    return (x - mu) * lax.rsqrt(var + EPS) * w + b


def _token_shift(xln, prev):
    # xx[t] = xln[t-1]; xx[0] = carried last-token state.  Rows are (t, b) and
    # BP == 8, so this is an aligned in-vreg sublane concat (no VMEM traffic).
    return jnp.concatenate([prev, xln[:TBP - BP, :]], axis=0)


def _channel_mix(xln, prev, tmk, tmk_c, tmr, tmr_c, w_k, w_v, w_r):
    # xln: (TBP, C) f32; prev: (BP, C); tm*: (1, C); w_k: (C,H) w_v: (H,C) w_r: (C,C) bf16
    xx = _token_shift(xln, prev)
    xk = (xln * tmk + xx * tmk_c).astype(_BF16)
    xr = (xln * tmr + xx * tmr_c).astype(_BF16)
    k = jnp.dot(xk, w_k, preferred_element_type=jnp.float32)
    k = jnp.square(jnp.maximum(k, 0.0))                      # relu(k)^2
    r = jax.nn.sigmoid(jnp.dot(xr, w_r, preferred_element_type=jnp.float32))
    kv = jnp.dot(k.astype(_BF16), w_v, preferred_element_type=jnp.float32)
    return r * kv, xln[TBP - BP:, :]                         # value, last-token rows


def _time_mix(xln, prev, aa, bb, pp,
              tmk, tmk_c, tmv, tmv_c, tmr, tmr_c, w_decay, u_first,
              w_k, w_v, w_r, w_o):
    # RWKV-v4 WKV attention with carried state (aa, bb, pp), all (BP, C) f32.
    xx = _token_shift(xln, prev)
    xk = (xln * tmk + xx * tmk_c).astype(_BF16)
    xv = (xln * tmv + xx * tmv_c).astype(_BF16)
    xr = (xln * tmr + xx * tmr_c).astype(_BF16)
    # Three independent MXU dots (they pipeline back-to-back; see header note).
    k = jnp.dot(xk, w_k, preferred_element_type=jnp.float32)   # (TBP, C) f32
    v = jnp.dot(xv, w_v, preferred_element_type=jnp.float32)
    r = jax.nn.sigmoid(jnp.dot(xr, w_r, preferred_element_type=jnp.float32))

    a, b_, p = aa, bb, pp
    wkv_rows = []
    for t in range(T):                      # fully unrolled (T static)
        kk = k[t * BP:(t + 1) * BP, :]      # aligned 1-vreg value slices
        vv = v[t * BP:(t + 1) * BP, :]
        ww = u_first + kk
        q = jnp.maximum(p, ww)
        e1 = jnp.exp(p - q)
        e2 = jnp.exp(ww - q)
        # divide -> approx reciprocal (EUP slot, off the serial carry chain)
        wkv_rows.append((e1 * a + e2 * vv) * pl.reciprocal(e1 * b_ + e2, approx=True))
        ww2 = p + w_decay
        q2 = jnp.maximum(ww2, kk)
        e1 = jnp.exp(ww2 - q2)
        e2 = jnp.exp(kk - q2)
        a = e1 * a + e2 * vv
        b_ = e1 * b_ + e2
        p = q2
    wkv = jnp.concatenate(wkv_rows, axis=0)                   # (TBP, C), aligned concat
    out = jnp.dot((r * wkv).astype(_BF16), w_o, preferred_element_type=jnp.float32)
    return out, xln[TBP - BP:, :], a, b_, p


# ----------------------------- fused network kernel ---------------------------
def rwkv_net_kernel(
        # inputs
        x_ref,          # (TBP, C)  f32   embedded tokens, time-major, batch padded
        state_ref,      # (SROWS, C) f32  per-layer [shift_att, shift_ffn, aa, bb, pp]
        p0_ln_ref,      # (6, 1, C) f32   L0: ln0_w/b, ln1_w/b, ln2_w/b
        p0_mix_ref,     # (8, 1, C) f32   L0: pre tmk,1-tmk,tmr,1-tmr, ffn tmk,1-tmk,tmr,1-tmr
        p0_wk_ref,      # (2, C, H) bf16  L0: Wk (pre-FFN, FFN)
        p0_wv_ref,      # (2, H, C) bf16  L0: Wv
        p0_wr_ref,      # (2, C, C) bf16  L0: Wr
        a_ln_ref,       # (LA, 4, 1, C) f32   att layer: ln1_w/b, ln2_w/b
        a_vec_ref,      # (LA, 12, 1, C) f32  att layer vectors (see pack_params)
        a_attw_ref,     # (LA, 4, C, C) bf16  att layer: Wk, Wv, Wr, Wo
        a_fwk_ref,      # (LA, C, H) bf16     att layer FFN Wk
        a_fwv_ref,      # (LA, H, C) bf16     att layer FFN Wv
        a_fwr_ref,      # (LA, C, C) bf16     att layer FFN Wr
        lnout_ref,      # (2, 1, C) f32       final LayerNorm w, b
        # outputs
        y_ref,          # (TBP, C)  f32
        state_out_ref,  # (SROWS, C) f32
):
    x = x_ref[...]                                          # hidden state lives in vregs

    def st_rows(layer, slot):
        r0 = (layer * 5 + slot) * BP
        return state_ref[r0:r0 + BP, :]                     # aligned (BP, C) load

    out_rows = []

    # ------------------------- layer 0: FFN-pre block -------------------------
    x = _layernorm(x, p0_ln_ref[0], p0_ln_ref[1])           # ln0 (block-0 pre-LN)
    xln = _layernorm(x, p0_ln_ref[2], p0_ln_ref[3])         # ln1
    pre, sh1 = _channel_mix(xln, st_rows(0, 0),
                            p0_mix_ref[0], p0_mix_ref[1], p0_mix_ref[2], p0_mix_ref[3],
                            p0_wk_ref[0], p0_wv_ref[0], p0_wr_ref[0])
    x = x + pre
    xln2 = _layernorm(x, p0_ln_ref[4], p0_ln_ref[5])        # ln2
    ffn, sh2 = _channel_mix(xln2, st_rows(0, 1),
                            p0_mix_ref[4], p0_mix_ref[5], p0_mix_ref[6], p0_mix_ref[7],
                            p0_wk_ref[1], p0_wv_ref[1], p0_wr_ref[1])
    x = x + ffn
    # FFN-pre block has no WKV state: pass aa/bb/pp through unchanged.
    out_rows += [sh1, sh2, st_rows(0, 2), st_rows(0, 3), st_rows(0, 4)]

    # --------------------------- RWKV (time-mix) layers -----------------------
    for la in range(LA):                                    # static Python unroll
        li = la + 1
        xln = _layernorm(x, a_ln_ref[la, 0], a_ln_ref[la, 1])          # ln1
        att, sh1, aa, bb, pp = _time_mix(
            xln, st_rows(li, 0), st_rows(li, 2), st_rows(li, 3), st_rows(li, 4),
            a_vec_ref[la, 0], a_vec_ref[la, 1], a_vec_ref[la, 2], a_vec_ref[la, 3],
            a_vec_ref[la, 4], a_vec_ref[la, 5],
            a_vec_ref[la, 6], a_vec_ref[la, 7],             # -exp(decay), time_first
            a_attw_ref[la, 0], a_attw_ref[la, 1], a_attw_ref[la, 2], a_attw_ref[la, 3])
        x = x + att
        xln2 = _layernorm(x, a_ln_ref[la, 2], a_ln_ref[la, 3])         # ln2
        ffn, sh2 = _channel_mix(xln2, st_rows(li, 1),
                                a_vec_ref[la, 8], a_vec_ref[la, 9],
                                a_vec_ref[la, 10], a_vec_ref[la, 11],
                                a_fwk_ref[la], a_fwv_ref[la], a_fwr_ref[la])
        x = x + ffn
        out_rows += [sh1, sh2, aa, bb, pp]

    # ------------------- final LayerNorm + single packed stores ---------------
    y_ref[...] = _layernorm(x, lnout_ref[0], lnout_ref[1])
    state_out_ref[...] = jnp.concatenate(out_rows, axis=0)   # one aligned full-block store


# ----------------------------- pallas_call wrapper ----------------------------
@jax.jit
def rwkv_pallas_forward(idx, emb_w, packed, state):
    (p0_ln, p0_mix, p0_wk, p0_wv, p0_wr,
     a_ln, a_vec, a_attw, a_fwk, a_fwv, a_fwr, lnout) = packed

    # Glue (XLA): gather, batch pad to a full sublane tile, time-major layout.
    x = jnp.take(emb_w, idx, axis=0)                              # (B, T, C)
    x = jnp.pad(x, ((0, BP - B), (0, 0), (0, 0)))                 # (BP, T, C)
    x = jnp.transpose(x, (1, 0, 2)).reshape(TBP, C)               # rows = (t, b)

    st = jnp.pad(state, ((0, 0), (0, 0), (0, BP - B), (0, 0)))    # (L, 5, BP, C)
    st = st.reshape(SROWS, C)

    vmem = pl.BlockSpec(memory_space=pltpu.MemorySpace.VMEM)
    y, ns = pl.pallas_call(
        rwkv_net_kernel,
        out_shape=(jax.ShapeDtypeStruct((TBP, C), _F32),
                   jax.ShapeDtypeStruct((SROWS, C), _F32)),
        in_specs=[vmem] * 14,
        out_specs=(vmem, vmem),
    )(x, st, p0_ln, p0_mix, p0_wk, p0_wv, p0_wr,
      a_ln, a_vec, a_attw, a_fwk, a_fwv, a_fwr, lnout)

    y = jnp.transpose(y.reshape(T, BP, C), (1, 0, 2))[:B]         # (B, T, C), drop pad
    ns = ns.reshape(N_LAYERS, 5, BP, C)[:, :, :B]                 # drop pad rows
    return y, ns


# ----------------------------- parameter / state init -------------------------
def _mat(key, shape):
    return jax.random.normal(key, shape, _F32) * 0.02


def _mixvec(key):
    return jax.random.uniform(key, (1, C), _F32)


def init_raw_params(key):
    keys = jax.random.split(key, N_LAYERS + 1)
    emb_w = _mat(keys[0], (VOCAB, C))
    layers = []
    for i in range(N_LAYERS):
        ks = jax.random.split(keys[1 + i], 16)
        p = dict(ln1_w=jnp.ones((1, C), _F32), ln1_b=jnp.zeros((1, C), _F32),
                 ln2_w=jnp.ones((1, C), _F32), ln2_b=jnp.zeros((1, C), _F32))
        if i == 0 and USE_FFN_PRE:
            p.update(
                ln0_w=jnp.ones((1, C), _F32), ln0_b=jnp.zeros((1, C), _F32),
                p_tmk=_mixvec(ks[0]), p_tmr=_mixvec(ks[1]),
                p_wk=_mat(ks[2], (C, H)), p_wv=_mat(ks[3], (H, C)), p_wr=_mat(ks[4], (C, C)),
                f_tmk=_mixvec(ks[5]), f_tmr=_mixvec(ks[6]),
                f_wk=_mat(ks[7], (C, H)), f_wv=_mat(ks[8], (H, C)), f_wr=_mat(ks[9], (C, C)))
        else:
            p.update(
                a_tmk=_mixvec(ks[0]), a_tmv=_mixvec(ks[1]), a_tmr=_mixvec(ks[2]),
                a_td=jax.random.normal(ks[3], (1, C), _F32) * 0.5,    # time_decay
                a_tf=jax.random.normal(ks[4], (1, C), _F32) * 0.5,    # time_first
                a_wk=_mat(ks[5], (C, C)), a_wv=_mat(ks[6], (C, C)),
                a_wr=_mat(ks[7], (C, C)), a_wo=_mat(ks[8], (C, C)),
                f_tmk=_mixvec(ks[9]), f_tmr=_mixvec(ks[10]),
                f_wk=_mat(ks[11], (C, H)), f_wv=_mat(ks[12], (H, C)), f_wr=_mat(ks[13], (C, C)))
        layers.append(p)
    ln_out_w, ln_out_b = jnp.ones((1, C), _F32), jnp.zeros((1, C), _F32)
    return emb_w, layers, ln_out_w, ln_out_b


def pack_params(layers, ln_out_w, ln_out_b):
    """Pack per-layer weights into the stacked arrays consumed by the fused kernel.
    Matmul weights are pre-cast to bf16 (MXU side); small vectors stay f32."""
    p0 = layers[0]
    p0_ln = jnp.stack([p0['ln0_w'], p0['ln0_b'], p0['ln1_w'], p0['ln1_b'],
                       p0['ln2_w'], p0['ln2_b']])                           # (6, 1, C)
    p0_mix = jnp.stack([p0['p_tmk'], 1.0 - p0['p_tmk'], p0['p_tmr'], 1.0 - p0['p_tmr'],
                        p0['f_tmk'], 1.0 - p0['f_tmk'], p0['f_tmr'], 1.0 - p0['f_tmr']])
    p0_wk = jnp.stack([p0['p_wk'], p0['f_wk']]).astype(_BF16)               # (2, C, H)
    p0_wv = jnp.stack([p0['p_wv'], p0['f_wv']]).astype(_BF16)               # (2, H, C)
    p0_wr = jnp.stack([p0['p_wr'], p0['f_wr']]).astype(_BF16)               # (2, C, C)

    a_ln, a_vec, a_attw, a_fwk, a_fwv, a_fwr = [], [], [], [], [], []
    for p in layers[1:]:
        a_ln.append(jnp.stack([p['ln1_w'], p['ln1_b'], p['ln2_w'], p['ln2_b']]))
        a_vec.append(jnp.stack([
            p['a_tmk'], 1.0 - p['a_tmk'], p['a_tmv'], 1.0 - p['a_tmv'],
            p['a_tmr'], 1.0 - p['a_tmr'],
            -jnp.exp(p['a_td']), p['a_tf'],                 # precomputed decay / first
            p['f_tmk'], 1.0 - p['f_tmk'], p['f_tmr'], 1.0 - p['f_tmr']]))
        a_attw.append(jnp.stack([p['a_wk'], p['a_wv'], p['a_wr'], p['a_wo']]))
        a_fwk.append(p['f_wk']); a_fwv.append(p['f_wv']); a_fwr.append(p['f_wr'])
    lnout = jnp.stack([ln_out_w, ln_out_b])                                 # (2, 1, C)
    return (p0_ln, p0_mix, p0_wk, p0_wv, p0_wr,
            jnp.stack(a_ln), jnp.stack(a_vec),
            jnp.stack(a_attw).astype(_BF16),
            jnp.stack(a_fwk).astype(_BF16), jnp.stack(a_fwv).astype(_BF16),
            jnp.stack(a_fwr).astype(_BF16), lnout)


def init_state():
    # Packed BlockStateList: [shift_att/pre, shift_ffn, aa, bb, pp] per layer.
    s = jnp.zeros((N_LAYERS, 5, B, C), _F32)
    return s.at[:, 4].set(-1e38)


# ----------------------------- pure-JAX reference -----------------------------
def ref_forward(idx, emb_w, layers, ln_out_w, ln_out_b, state):
    def ln(x, w, b):
        mu = jnp.mean(x, axis=-1, keepdims=True)
        var = jnp.mean(jnp.square(x - mu), axis=-1, keepdims=True)
        return (x - mu) * lax.rsqrt(var + EPS) * w + b

    def channel_mix(xln, prev, tmk, tmr, wk, wv, wr):
        xx = jnp.concatenate([prev[None], xln[:-1]], axis=0)
        xk = xln * tmk + xx * (1.0 - tmk)
        xr = xln * tmr + xx * (1.0 - tmr)
        k = jnp.square(jnp.maximum(xk @ wk, 0.0))
        return jax.nn.sigmoid(xr @ wr) * (k @ wv), xln[-1]

    def time_mix(xln, prev, aa, bb, pp, tmk, tmv, tmr, td, tf, wk, wv, wr, wo):
        xx = jnp.concatenate([prev[None], xln[:-1]], axis=0)
        xk = xln * tmk + xx * (1.0 - tmk)
        xv = xln * tmv + xx * (1.0 - tmv)
        xr = xln * tmr + xx * (1.0 - tmr)
        k, v = xk @ wk, xv @ wv
        r = jax.nn.sigmoid(xr @ wr)
        w, u = -jnp.exp(td), tf
        a, b_, p = aa, bb, pp
        outs = []
        for t in range(T):
            kk, vv = k[t], v[t]
            ww = u + kk
            q = jnp.maximum(p, ww)
            e1, e2 = jnp.exp(p - q), jnp.exp(ww - q)
            outs.append((e1 * a + e2 * vv) / (e1 * b_ + e2))
            ww2 = p + w
            q2 = jnp.maximum(ww2, kk)
            e1, e2 = jnp.exp(ww2 - q2), jnp.exp(kk - q2)
            a, b_, p = e1 * a + e2 * vv, e1 * b_ + e2, q2
        wkv = jnp.stack(outs, axis=0)
        return (r * wkv) @ wo, xln[-1], a, b_, p

    x = jnp.take(emb_w, idx, axis=0)
    x = jnp.transpose(x, (1, 0, 2))           # (T, B, C)
    new_state = state
    for i, p in enumerate(layers):
        st = state[i]
        if i == 0 and USE_FFN_PRE:
            x = ln(x, p['ln0_w'], p['ln0_b'])
            pre, s1 = channel_mix(ln(x, p['ln1_w'], p['ln1_b']), st[0],
                                  p['p_tmk'], p['p_tmr'], p['p_wk'], p['p_wv'], p['p_wr'])
            x = x + pre
            ffn, s2 = channel_mix(ln(x, p['ln2_w'], p['ln2_b']), st[1],
                                  p['f_tmk'], p['f_tmr'], p['f_wk'], p['f_wv'], p['f_wr'])
            x = x + ffn
            new_state = new_state.at[i, 0].set(s1).at[i, 1].set(s2)
        else:
            att, s1, aa, bb, pp = time_mix(ln(x, p['ln1_w'], p['ln1_b']), st[0],
                                           st[2], st[3], st[4],
                                           p['a_tmk'], p['a_tmv'], p['a_tmr'],
                                           p['a_td'], p['a_tf'],
                                           p['a_wk'], p['a_wv'], p['a_wr'], p['a_wo'])
            x = x + att
            ffn, s2 = channel_mix(ln(x, p['ln2_w'], p['ln2_b']), st[1],
                                  p['f_tmk'], p['f_tmr'], p['f_wk'], p['f_wv'], p['f_wr'])
            x = x + ffn
            new_state = (new_state.at[i, 0].set(s1).at[i, 1].set(s2)
                         .at[i, 2].set(aa).at[i, 3].set(bb).at[i, 4].set(pp))
    x = ln(x, ln_out_w, ln_out_b)
    return jnp.transpose(x, (1, 0, 2)), new_state


# ----------------------------- main -------------------------------------------
if __name__ == "__main__":
    key = jax.random.PRNGKey(0)
    k_idx, k_par = jax.random.split(key)
    emb_w, layers, ln_out_w, ln_out_b = init_raw_params(k_par)
    packed = pack_params(layers, ln_out_w, ln_out_b)
    state0 = init_state()
    idx = jax.random.randint(k_idx, (B, T), 0, VOCAB, dtype=jnp.int32)

    y, new_state = rwkv_pallas_forward(idx, emb_w, packed, state0)
    jax.block_until_ready((y, new_state))

    # Pure-JAX f32 reference (semantics check; tolerance covers the bf16 MXU
    # operands and the approx reciprocal in the fused kernel).
    y_ref, state_ref = ref_forward(idx, emb_w, layers, ln_out_w, ln_out_b, state0)

    assert y.shape == (B, T, C), y.shape
    assert new_state.shape == (N_LAYERS, 5, B, C), new_state.shape
    assert bool(jnp.all(jnp.isfinite(y)))
    assert bool(jnp.allclose(y, y_ref, rtol=2e-2, atol=2e-2)), \
        float(jnp.max(jnp.abs(y - y_ref)))
    assert bool(jnp.allclose(new_state, state_ref, rtol=2e-2, atol=2e-2)), \
        float(jnp.max(jnp.abs(new_state - state_ref)))
    print("KERNEL_OK")
</pallas_src>

<mosaic_0001>
module attributes {stable_mosaic.version = 11 : i64} {
  func.func @rwkv_net_kernel(%arg0: memref<64x32xf32, #tpu.memory_space<vmem>>, %arg1: memref<80x32xf32, #tpu.memory_space<vmem>>, %arg2: memref<6x1x32xf32, #tpu.memory_space<vmem>>, %arg3: memref<8x1x32xf32, #tpu.memory_space<vmem>>, %arg4: memref<2x32x128xbf16, #tpu.memory_space<vmem>>, %arg5: memref<2x128x32xbf16, #tpu.memory_space<vmem>>, %arg6: memref<2x32x32xbf16, #tpu.memory_space<vmem>>, %arg7: memref<1x4x1x32xf32, #tpu.memory_space<vmem>>, %arg8: memref<1x12x1x32xf32, #tpu.memory_space<vmem>>, %arg9: memref<1x4x32x32xbf16, #tpu.memory_space<vmem>>, %arg10: memref<1x32x128xbf16, #tpu.memory_space<vmem>>, %arg11: memref<1x128x32xbf16, #tpu.memory_space<vmem>>, %arg12: memref<1x32x32xbf16, #tpu.memory_space<vmem>>, %arg13: memref<2x1x32xf32, #tpu.memory_space<vmem>>, %arg14: memref<64x32xf32, #tpu.memory_space<vmem>>, %arg15: memref<80x32xf32, #tpu.memory_space<vmem>>) attributes {dimension_semantics = [], scalar_prefetch = 0 : i64, scratch_operands = 0 : i64, tpu.core_type = #tpu.core_type<tc>} {
    %c0 = arith.constant 0 : index
    %c0_0 = arith.constant 0 : index
    %0 = vector.load %arg0[%c0, %c0_0] : memref<64x32xf32, #tpu.memory_space<vmem>>, vector<64x32xf32>
    %c0_1 = arith.constant 0 : index
    %c0_2 = arith.constant 0 : index
    %c0_3 = arith.constant 0 : index
    %1 = vector.load %arg2[%c0_1, %c0_2, %c0_3] : memref<6x1x32xf32, #tpu.memory_space<vmem>>, vector<1x1x32xf32>
    %2 = vector.shape_cast %1 : vector<1x1x32xf32> to vector<1x32xf32>
    %c1 = arith.constant 1 : index
    %c0_4 = arith.constant 0 : index
    %c0_5 = arith.constant 0 : index
    %3 = vector.load %arg2[%c1, %c0_4, %c0_5] : memref<6x1x32xf32, #tpu.memory_space<vmem>>, vector<1x1x32xf32>
    %4 = vector.shape_cast %3 : vector<1x1x32xf32> to vector<1x32xf32>
    %cst = arith.constant dense<0.000000e+00> : vector<64xf32>
    %5 = vector.multi_reduction <add>, %0, %cst [1] : vector<64x32xf32> to vector<64xf32>
    %6 = vector.shape_cast %5 : vector<64xf32> to vector<64x1xf32>
    %cst_6 = arith.constant 3.200000e+01 : f32
    %7 = vector.broadcast %cst_6 : f32 to vector<64x1xf32>
    %8 = arith.divf %6, %7 : vector<64x1xf32>
    %9 = vector.broadcast %8 : vector<64x1xf32> to vector<64x32xf32>
    %10 = arith.subf %0, %9 : vector<64x32xf32>
    %11 = arith.mulf %10, %10 : vector<64x32xf32>
    %cst_7 = arith.constant dense<0.000000e+00> : vector<64xf32>
    %12 = vector.multi_reduction <add>, %11, %cst_7 [1] : vector<64x32xf32> to vector<64xf32>
    %13 = vector.shape_cast %12 : vector<64xf32> to vector<64x1xf32>
    %cst_8 = arith.constant 3.200000e+01 : f32
    %14 = vector.broadcast %cst_8 : f32 to vector<64x1xf32>
    %15 = arith.divf %13, %14 : vector<64x1xf32>
    %16 = vector.broadcast %8 : vector<64x1xf32> to vector<64x32xf32>
    %17 = arith.subf %0, %16 : vector<64x32xf32>
    %cst_9 = arith.constant 9.99999974E-6 : f32
    %18 = vector.broadcast %cst_9 : f32 to vector<64x1xf32>
    %19 = arith.addf %15, %18 : vector<64x1xf32>
    %20 = math.rsqrt %19 : vector<64x1xf32>
    %21 = vector.broadcast %20 : vector<64x1xf32> to vector<64x32xf32>
    %22 = arith.mulf %17, %21 : vector<64x32xf32>
    %23 = vector.broadcast %2 : vector<1x32xf32> to vector<64x32xf32>
    %24 = arith.mulf %22, %23 : vector<64x32xf32>
    %25 = vector.broadcast %4 : vector<1x32xf32> to vector<64x32xf32>
    %26 = arith.addf %24, %25 : vector<64x32xf32>
    %c2 = arith.constant 2 : index
    %c0_10 = arith.constant 0 : index
    %c0_11 = arith.constant 0 : index
    %27 = vector.load %arg2[%c2, %c0_10, %c0_11] : memref<6x1x32xf32, #tpu.memory_space<vmem>>, vector<1x1x32xf32>
    %28 = vector.shape_cast %27 : vector<1x1x32xf32> to vector<1x32xf32>
    %c3 = arith.constant 3 : index
    %c0_12 = arith.constant 0 : index
    %c0_13 = arith.constant 0 : index
    %29 = vector.load %arg2[%c3, %c0_12, %c0_13] : memref<6x1x32xf32, #tpu.memory_space<vmem>>, vector<1x1x32xf32>
    %30 = vector.shape_cast %29 : vector<1x1x32xf32> to vector<1x32xf32>
    %cst_14 = arith.constant dense<0.000000e+00> : vector<64xf32>
    %31 = vector.multi_reduction <add>, %26, %cst_14 [1] : vector<64x32xf32> to vector<64xf32>
    %32 = vector.shape_cast %31 : vector<64xf32> to vector<64x1xf32>
    %cst_15 = arith.constant 3.200000e+01 : f32
    %33 = vector.broadcast %cst_15 : f32 to vector<64x1xf32>
    %34 = arith.divf %32, %33 : vector<64x1xf32>
    %35 = vector.broadcast %34 : vector<64x1xf32> to vector<64x32xf32>
    %36 = arith.subf %26, %35 : vector<64x32xf32>
    %37 = arith.mulf %36, %36 : vector<64x32xf32>
    %cst_16 = arith.constant dense<0.000000e+00> : vector<64xf32>
    %38 = vector.multi_reduction <add>, %37, %cst_16 [1] : vector<64x32xf32> to vector<64xf32>
    %39 = vector.shape_cast %38 : vector<64xf32> to vector<64x1xf32>
    %cst_17 = arith.constant 3.200000e+01 : f32
    %40 = vector.broadcast %cst_17 : f32 to vector<64x1xf32>
    %41 = arith.divf %39, %40 : vector<64x1xf32>
    %42 = vector.broadcast %34 : vector<64x1xf32> to vector<64x32xf32>
    %43 = arith.subf %26, %42 : vector<64x32xf32>
    %cst_18 = arith.constant 9.99999974E-6 : f32
    %44 = vector.broadcast %cst_18 : f32 to vector<64x1xf32>
    %45 = arith.addf %41, %44 : vector<64x1xf32>
    %46 = math.rsqrt %45 : vector<64x1xf32>
    %47 = vector.broadcast %46 : vector<64x1xf32> to vector<64x32xf32>
    %48 = arith.mulf %43, %47 : vector<64x32xf32>
    %49 = vector.broadcast %28 : vector<1x32xf32> to vector<64x32xf32>
    %50 = arith.mulf %48, %49 : vector<64x32xf32>
    %51 = vector.broadcast %30 : vector<1x32xf32> to vector<64x32xf32>
    %52 = arith.addf %50, %51 : vector<64x32xf32>
    %c0_19 = arith.constant 0 : index
    %c0_20 = arith.constant 0 : index
    %53 = vector.load %arg1[%c0_19, %c0_20] : memref<80x32xf32, #tpu.memory_space<vmem>>, vector<8x32xf32>
    %c0_21 = arith.constant 0 : index
    %c0_22 = arith.constant 0 : index
    %c0_23 = arith.constant 0 : index
    %54 = vector.load %arg3[%c0_21, %c0_22, %c0_23] : memref<8x1x32xf32, #tpu.memory_space<vmem>>, vector<1x1x32xf32>
    %55 = vector.shape_cast %54 : vector<1x1x32xf32> to vector<1x32xf32>
    %c1_24 = arith.constant 1 : index
    %c0_25 = arith.constant 0 : index
    %c0_26 = arith.constant 0 : index
    %56 = vector.load %arg3[%c1_24, %c0_25, %c0_26] : memref<8x1x32xf32, #tpu.memory_space<vmem>>, vector<1x1x32xf32>
    %57 = vector.shape_cast %56 : vector<1x1x32xf32> to vector<1x32xf32>
    %c2_27 = arith.constant 2 : index
    %c0_28 = arith.constant 0 : index
    %c0_29 = arith.constant 0 : index
    %58 = vector.load %arg3[%c2_27, %c0_28, %c0_29] : memref<8x1x32xf32, #tpu.memory_space<vmem>>, vector<1x1x32xf32>
    %59 = vector.shape_cast %58 : vector<1x1x32xf32> to vector<1x32xf32>
    %c3_30 = arith.constant 3 : index
    %c0_31 = arith.constant 0 : index
    %c0_32 = arith.constant 0 : index
    %60 = vector.load %arg3[%c3_30, %c0_31, %c0_32] : memref<8x1x32xf32, #tpu.memory_space<vmem>>, vector<1x1x32xf32>
    %61 = vector.shape_cast %60 : vector<1x1x32xf32> to vector<1x32xf32>
    %c0_33 = arith.constant 0 : index
    %c0_34 = arith.constant 0 : index
    %c0_35 = arith.constant 0 : index
    %62 = vector.load %arg4[%c0_33, %c0_34, %c0_35] : memref<2x32x128xbf16, #tpu.memory_space<vmem>>, vector<1x32x128xbf16>
    %63 = vector.shape_cast %62 : vector<1x32x128xbf16> to vector<32x128xbf16>
    %c0_36 = arith.constant 0 : index
    %c0_37 = arith.constant 0 : index
    %c0_38 = arith.constant 0 : index
    %64 = vector.load %arg5[%c0_36, %c0_37, %c0_38] : memref<2x128x32xbf16, #tpu.memory_space<vmem>>, vector<1x128x32xbf16>
    %65 = vector.shape_cast %64 : vector<1x128x32xbf16> to vector<128x32xbf16>
    %c0_39 = arith.constant 0 : index
    %c0_40 = arith.constant 0 : index
    %c0_41 = arith.constant 0 : index
    %66 = vector.load %arg6[%c0_39, %c0_40, %c0_41] : memref<2x32x32xbf16, #tpu.memory_space<vmem>>, vector<1x32x32xbf16>
    %67 = vector.shape_cast %66 : vector<1x32x32xbf16> to vector<32x32xbf16>
    %68 = vector.extract_strided_slice %52 {offsets = [0, 0], sizes = [56, 32], strides = [1, 1]} : vector<64x32xf32> to vector<56x32xf32>
    %69 = tpu.concatenate %53, %68 in 0 : vector<8x32xf32>, vector<56x32xf32> -> vector<64x32xf32>
    %70 = vector.broadcast %55 : vector<1x32xf32> to vector<64x32xf32>
    %71 = arith.mulf %52, %70 : vector<64x32xf32>
    %72 = vector.broadcast %57 : vector<1x32xf32> to vector<64x32xf32>
    %73 = arith.mulf %69, %72 : vector<64x32xf32>
    %74 = arith.addf %71, %73 : vector<64x32xf32>
    %75 = arith.truncf %74 : vector<64x32xf32> to vector<64x32xbf16>
    %76 = vector.broadcast %59 : vector<1x32xf32> to vector<64x32xf32>
    %77 = arith.mulf %52, %76 : vector<64x32xf32>
    %78 = vector.broadcast %61 : vector<1x32xf32> to vector<64x32xf32>
    %79 = arith.mulf %69, %78 : vector<64x32xf32>
    %80 = arith.addf %77, %79 : vector<64x32xf32>
    %81 = arith.truncf %80 : vector<64x32xf32> to vector<64x32xbf16>
    %cst_42 = arith.constant dense<0.000000e+00> : vector<64x128xf32>
    %82 = tpu.matmul %75, %63, %cst_42 {dimension_numbers = #tpu.dot_dimension_numbers<[1], [0], [0], [1], [0, 0, 1, 1], [], []>} : vector<64x32xbf16>, vector<32x128xbf16>, vector<64x128xf32> -> vector<64x128xf32>
    %cst_43 = arith.constant 0.000000e+00 : f32
    %83 = vector.broadcast %cst_43 : f32 to vector<64x128xf32>
    %84 = arith.maximumf %82, %83 : vector<64x128xf32>
    %85 = arith.mulf %84, %84 : vector<64x128xf32>
    %cst_44 = arith.constant dense<0.000000e+00> : vector<64x32xf32>
    %86 = tpu.matmul %81, %67, %cst_44 {dimension_numbers = #tpu.dot_dimension_numbers<[1], [0], [0], [1], [0, 0, 1, 1], [], []>} : vector<64x32xbf16>, vector<32x32xbf16>, vector<64x32xf32> -> vector<64x32xf32>
    %87 = arith.negf %86 : vector<64x32xf32>
    %88 = math.exp %87 : vector<64x32xf32>
    %cst_45 = arith.constant 1.000000e+00 : f32
    %89 = vector.broadcast %cst_45 : f32 to vector<64x32xf32>
    %90 = arith.addf %89, %88 : vector<64x32xf32>
    %91 = arith.divf %89, %90 : vector<64x32xf32>
    %92 = arith.truncf %85 : vector<64x128xf32> to vector<64x128xbf16>
    %cst_46 = arith.constant dense<0.000000e+00> : vector<64x32xf32>
    %93 = tpu.matmul %92, %65, %cst_46 {dimension_numbers = #tpu.dot_dimension_numbers<[1], [0], [0], [1], [0, 0, 1, 1], [], []>} : vector<64x128xbf16>, vector<128x32xbf16>, vector<64x32xf32> -> vector<64x32xf32>
    %94 = arith.mulf %91, %93 : vector<64x32xf32>
    %95 = vector.extract_strided_slice %52 {offsets = [56, 0], sizes = [8, 32], strides = [1, 1]} : vector<64x32xf32> to vector<8x32xf32>
    %96 = arith.addf %26, %94 : vector<64x32xf32>
    %c4 = arith.constant 4 : index
    %c0_47 = arith.constant 0 : index
    %c0_48 = arith.constant 0 : index
    %97 = vector.load %arg2[%c4, %c0_47, %c0_48] : memref<6x1x32xf32, #tpu.memory_space<vmem>>, vector<1x1x32xf32>
    %98 = vector.shape_cast %97 : vector<1x1x32xf32> to vector<1x32xf32>
    %c5 = arith.constant 5 : index
    %c0_49 = arith.constant 0 : index
    %c0_50 = arith.constant 0 : index
    %99 = vector.load %arg2[%c5, %c0_49, %c0_50] : memref<6x1x32xf32, #tpu.memory_space<vmem>>, vector<1x1x32xf32>
    %100 = vector.shape_cast %99 : vector<1x1x32xf32> to vector<1x32xf32>
    %cst_51 = arith.constant dense<0.000000e+00> : vector<64xf32>
    %101 = vector.multi_reduction <add>, %96, %cst_51 [1] : vector<64x32xf32> to vector<64xf32>
    %102 = vector.shape_cast %101 : vector<64xf32> to vector<64x1xf32>
    %cst_52 = arith.constant 3.200000e+01 : f32
    %103 = vector.broadcast %cst_52 : f32 to vector<64x1xf32>
    %104 = arith.divf %102, %103 : vector<64x1xf32>
    %105 = vector.broadcast %104 : vector<64x1xf32> to vector<64x32xf32>
    %106 = arith.subf %96, %105 : vector<64x32xf32>
    %107 = arith.mulf %106, %106 : vector<64x32xf32>
    %cst_53 = arith.constant dense<0.000000e+00> : vector<64xf32>
    %108 = vector.multi_reduction <add>, %107, %cst_53 [1] : vector<64x32xf32> to vector<64xf32>
    %109 = vector.shape_cast %108 : vector<64xf32> to vector<64x1xf32>
    %cst_54 = arith.constant 3.200000e+01 : f32
    %110 = vector.broadcast %cst_54 : f32 to vector<64x1xf32>
    %111 = arith.divf %109, %110 : vector<64x1xf32>
    %112 = vector.broadcast %104 : vector<64x1xf32> to vector<64x32xf32>
    %113 = arith.subf %96, %112 : vector<64x32xf32>
    %cst_55 = arith.constant 9.99999974E-6 : f32
    %114 = vector.broadcast %cst_55 : f32 to vector<64x1xf32>
    %115 = arith.addf %111, %114 : vector<64x1xf32>
    %116 = math.rsqrt %115 : vector<64x1xf32>
    %117 = vector.broadcast %116 : vector<64x1xf32> to vector<64x32xf32>
    %118 = arith.mulf %113, %117 : vector<64x32xf32>
    %119 = vector.broadcast %98 : vector<1x32xf32> to vector<64x32xf32>
    %120 = arith.mulf %118, %119 : vector<64x32xf32>
    %121 = vector.broadcast %100 : vector<1x32xf32> to vector<64x32xf32>
    %122 = arith.addf %120, %121 : vector<64x32xf32>
    %c8 = arith.constant 8 : index
    %c0_56 = arith.constant 0 : index
    %123 = vector.load %arg1[%c8, %c0_56] : memref<80x32xf32, #tpu.memory_space<vmem>>, vector<8x32xf32>
    %c4_57 = arith.constant 4 : index
    %c0_58 = arith.constant 0 : index
    %c0_59 = arith.constant 0 : index
    %124 = vector.load %arg3[%c4_57, %c0_58, %c0_59] : memref<8x1x32xf32, #tpu.memory_space<vmem>>, vector<1x1x32xf32>
    %125 = vector.shape_cast %124 : vector<1x1x32xf32> to vector<1x32xf32>
    %c5_60 = arith.constant 5 : index
    %c0_61 = arith.constant 0 : index
    %c0_62 = arith.constant 0 : index
    %126 = vector.load %arg3[%c5_60, %c0_61, %c0_62] : memref<8x1x32xf32, #tpu.memory_space<vmem>>, vector<1x1x32xf32>
    %127 = vector.shape_cast %126 : vector<1x1x32xf32> to vector<1x32xf32>
    %c6 = arith.constant 6 : index
    %c0_63 = arith.constant 0 : index
    %c0_64 = arith.constant 0 : index
    %128 = vector.load %arg3[%c6, %c0_63, %c0_64] : memref<8x1x32xf32, #tpu.memory_space<vmem>>, vector<1x1x32xf32>
    %129 = vector.shape_cast %128 : vector<1x1x32xf32> to vector<1x32xf32>
    %c7 = arith.constant 7 : index
    %c0_65 = arith.constant 0 : index
    %c0_66 = arith.constant 0 : index
    %130 = vector.load %arg3[%c7, %c0_65, %c0_66] : memref<8x1x32xf32, #tpu.memory_space<vmem>>, vector<1x1x32xf32>
    %131 = vector.shape_cast %130 : vector<1x1x32xf32> to vector<1x32xf32>
    %c1_67 = arith.constant 1 : index
    %c0_68 = arith.constant 0 : index
    %c0_69 = arith.constant 0 : index
    %132 = vector.load %arg4[%c1_67, %c0_68, %c0_69] : memref<2x32x128xbf16, #tpu.memory_space<vmem>>, vector<1x32x128xbf16>
    %133 = vector.shape_cast %132 : vector<1x32x128xbf16> to vector<32x128xbf16>
    %c1_70 = arith.constant 1 : index
    %c0_71 = arith.constant 0 : index
    %c0_72 = arith.constant 0 : index
    %134 = vector.load %arg5[%c1_70, %c0_71, %c0_72] : memref<2x128x32xbf16, #tpu.memory_space<vmem>>, vector<1x128x32xbf16>
    %135 = vector.shape_cast %134 : vector<1x128x32xbf16> to vector<128x32xbf16>
    %c1_73 = arith.constant 1 : index
    %c0_74 = arith.constant 0 : index
    %c0_75 = arith.constant 0 : index
    %136 = vector.load %arg6[%c1_73, %c0_74, %c0_75] : memref<2x32x32xbf16, #tpu.memory_space<vmem>>, vector<1x32x32xbf16>
    %137 = vector.shape_cast %136 : vector<1x32x32xbf16> to vector<32x32xbf16>
    %138 = vector.extract_strided_slice %122 {offsets = [0, 0], sizes = [56, 32], strides = [1, 1]} : vector<64x32xf32> to vector<56x32xf32>
    %139 = tpu.concatenate %123, %138 in 0 : vector<8x32xf32>, vector<56x32xf32> -> vector<64x32xf32>
    %140 = vector.broadcast %125 : vector<1x32xf32> to vector<64x32xf32>
    %141 = arith.mulf %122, %140 : vector<64x32xf32>
    %142 = vector.broadcast %127 : vector<1x32xf32> to vector<64x32xf32>
    %143 = arith.mulf %139, %142 : vector<64x32xf32>
    %144 = arith.addf %141, %143 : vector<64x32xf32>
    %145 = arith.truncf %144 : vector<64x32xf32> to vector<64x32xbf16>
    %146 = vector.broadcast %129 : vector<1x32xf32> to vector<64x32xf32>
    %147 = arith.mulf %122, %146 : vector<64x32xf32>
    %148 = vector.broadcast %131 : vector<1x32xf32> to vector<64x32xf32>
    %149 = arith.mulf %139, %148 : vector<64x32xf32>
    %150 = arith.addf %147, %149 : vector<64x32xf32>
    %151 = arith.truncf %150 : vector<64x32xf32> to vector<64x32xbf16>
    %cst_76 = arith.constant dense<0.000000e+00> : vector<64x128xf32>
    %152 = tpu.matmul %145, %133, %cst_76 {dimension_numbers = #tpu.dot_dimension_numbers<[1], [0], [0], [1], [0, 0, 1, 1], [], []>} : vector<64x32xbf16>, vector<32x128xbf16>, vector<64x128xf32> -> vector<64x128xf32>
    %cst_77 = arith.constant 0.000000e+00 : f32
    %153 = vector.broadcast %cst_77 : f32 to vector<64x128xf32>
    %154 = arith.maximumf %152, %153 : vector<64x128xf32>
    %155 = arith.mulf %154, %154 : vector<64x128xf32>
    %cst_78 = arith.constant dense<0.000000e+00> : vector<64x32xf32>
    %156 = tpu.matmul %151, %137, %cst_78 {dimension_numbers = #tpu.dot_dimension_numbers<[1], [0], [0], [1], [0, 0, 1, 1], [], []>} : vector<64x32xbf16>, vector<32x32xbf16>, vector<64x32xf32> -> vector<64x32xf32>
    %157 = arith.negf %156 : vector<64x32xf32>
    %158 = math.exp %157 : vector<64x32xf32>
    %cst_79 = arith.constant 1.000000e+00 : f32
    %159 = vector.broadcast %cst_79 : f32 to vector<64x32xf32>
    %160 = arith.addf %159, %158 : vector<64x32xf32>
    %161 = arith.divf %159, %160 : vector<64x32xf32>
    %162 = arith.truncf %155 : vector<64x128xf32> to vector<64x128xbf16>
    %cst_80 = arith.constant dense<0.000000e+00> : vector<64x32xf32>
    %163 = tpu.matmul %162, %135, %cst_80 {dimension_numbers = #tpu.dot_dimension_numbers<[1], [0], [0], [1], [0, 0, 1, 1], [], []>} : vector<64x128xbf16>, vector<128x32xbf16>, vector<64x32xf32> -> vector<64x32xf32>
    %164 = arith.mulf %161, %163 : vector<64x32xf32>
    %165 = vector.extract_strided_slice %122 {offsets = [56, 0], sizes = [8, 32], strides = [1, 1]} : vector<64x32xf32> to vector<8x32xf32>
    %166 = arith.addf %96, %164 : vector<64x32xf32>
    %c16 = arith.constant 16 : index
    %c0_81 = arith.constant 0 : index
    %167 = vector.load %arg1[%c16, %c0_81] : memref<80x32xf32, #tpu.memory_space<vmem>>, vector<8x32xf32>
    %c24 = arith.constant 24 : index
    %c0_82 = arith.constant 0 : index
    %168 = vector.load %arg1[%c24, %c0_82] : memref<80x32xf32, #tpu.memory_space<vmem>>, vector<8x32xf32>
    %c32 = arith.constant 32 : index
    %c0_83 = arith.constant 0 : index
    %169 = vector.load %arg1[%c32, %c0_83] : memref<80x32xf32, #tpu.memory_space<vmem>>, vector<8x32xf32>
    %c0_84 = arith.constant 0 : index
    %c0_85 = arith.constant 0 : index
    %c0_86 = arith.constant 0 : index
    %c0_87 = arith.constant 0 : index
    %170 = vector.load %arg7[%c0_84, %c0_85, %c0_86, %c0_87] : memref<1x4x1x32xf32, #tpu.memory_space<vmem>>, vector<1x1x1x32xf32>
    %171 = vector.shape_cast %170 : vector<1x1x1x32xf32> to vector<1x32xf32>
    %c0_88 = arith.constant 0 : index
    %c1_89 = arith.constant 1 : index
    %c0_90 = arith.constant 0 : index
    %c0_91 = arith.constant 0 : index
    %172 = vector.load %arg7[%c0_88, %c1_89, %c0_90, %c0_91] : memref<1x4x1x32xf32, #tpu.memory_space<vmem>>, vector<1x1x1x32xf32>
    %173 = vector.shape_cast %172 : vector<1x1x1x32xf32> to vector<1x32xf32>
    %cst_92 = arith.constant dense<0.000000e+00> : vector<64xf32>
    %174 = vector.multi_reduction <add>, %166, %cst_92 [1] : vector<64x32xf32> to vector<64xf32>
    %175 = vector.shape_cast %174 : vector<64xf32> to vector<64x1xf32>
    %cst_93 = arith.constant 3.200000e+01 : f32
    %176 = vector.broadcast %cst_93 : f32 to vector<64x1xf32>
    %177 = arith.divf %175, %176 : vector<64x1xf32>
    %178 = vector.broadcast %177 : vector<64x1xf32> to vector<64x32xf32>
    %179 = arith.subf %166, %178 : vector<64x32xf32>
    %180 = arith.mulf %179, %179 : vector<64x32xf32>
    %cst_94 = arith.constant dense<0.000000e+00> : vector<64xf32>
    %181 = vector.multi_reduction <add>, %180, %cst_94 [1] : vector<64x32xf32> to vector<64xf32>
    %182 = vector.shape_cast %181 : vector<64xf32> to vector<64x1xf32>
    %cst_95 = arith.constant 3.200000e+01 : f32
    %183 = vector.broadcast %cst_95 : f32 to vector<64x1xf32>
    %184 = arith.divf %182, %183 : vector<64x1xf32>
    %185 = vector.broadcast %177 : vector<64x1xf32> to vector<64x32xf32>
    %186 = arith.subf %166, %185 : vector<64x32xf32>
    %cst_96 = arith.constant 9.99999974E-6 : f32
    %187 = vector.broadcast %cst_96 : f32 to vector<64x1xf32>
    %188 = arith.addf %184, %187 : vector<64x1xf32>
    %189 = math.rsqrt %188 : vector<64x1xf32>
    %190 = vector.broadcast %189 : vector<64x1xf32> to vector<64x32xf32>
    %191 = arith.mulf %186, %190 : vector<64x32xf32>
    %192 = vector.broadcast %171 : vector<1x32xf32> to vector<64x32xf32>
    %193 = arith.mulf %191, %192 : vector<64x32xf32>
    %194 = vector.broadcast %173 : vector<1x32xf32> to vector<64x32xf32>
    %195 = arith.addf %193, %194 : vector<64x32xf32>
    %c40 = arith.constant 40 : index
    %c0_97 = arith.constant 0 : index
    %196 = vector.load %arg1[%c40, %c0_97] : memref<80x32xf32, #tpu.memory_space<vmem>>, vector<8x32xf32>
    %c56 = arith.constant 56 : index
    %c0_98 = arith.constant 0 : index
    %197 = vector.load %arg1[%c56, %c0_98] : memref<80x32xf32, #tpu.memory_space<vmem>>, vector<8x32xf32>
    %c64 = arith.constant 64 : index
    %c0_99 = arith.constant 0 : index
    %198 = vector.load %arg1[%c64, %c0_99] : memref<80x32xf32, #tpu.memory_space<vmem>>, vector<8x32xf32>
    %c72 = arith.constant 72 : index
    %c0_100 = arith.constant 0 : index
    %199 = vector.load %arg1[%c72, %c0_100] : memref<80x32xf32, #tpu.memory_space<vmem>>, vector<8x32xf32>
    %c0_101 = arith.constant 0 : index
    %c0_102 = arith.constant 0 : index
    %c0_103 = arith.constant 0 : index
    %c0_104 = arith.constant 0 : index
    %200 = vector.load %arg8[%c0_101, %c0_102, %c0_103, %c0_104] : memref<1x12x1x32xf32, #tpu.memory_space<vmem>>, vector<1x1x1x32xf32>
    %201 = vector.shape_cast %200 : vector<1x1x1x32xf32> to vector<1x32xf32>
    %c0_105 = arith.constant 0 : index
    %c1_106 = arith.constant 1 : index
    %c0_107 = arith.constant 0 : index
    %c0_108 = arith.constant 0 : index
    %202 = vector.load %arg8[%c0_105, %c1_106, %c0_107, %c0_108] : memref<1x12x1x32xf32, #tpu.memory_space<vmem>>, vector<1x1x1x32xf32>
    %203 = vector.shape_cast %202 : vector<1x1x1x32xf32> to vector<1x32xf32>
    %c0_109 = arith.constant 0 : index
    %c2_110 = arith.constant 2 : index
    %c0_111 = arith.constant 0 : index
    %c0_112 = arith.constant 0 : index
    %204 = vector.load %arg8[%c0_109, %c2_110, %c0_111, %c0_112] : memref<1x12x1x32xf32, #tpu.memory_space<vmem>>, vector<1x1x1x32xf32>
    %205 = vector.shape_cast %204 : vector<1x1x1x32xf32> to vector<1x32xf32>
    %c0_113 = arith.constant 0 : index
    %c3_114 = arith.constant 3 : index
    %c0_115 = arith.constant 0 : index
    %c0_116 = arith.constant 0 : index
    %206 = vector.load %arg8[%c0_113, %c3_114, %c0_115, %c0_116] : memref<1x12x1x32xf32, #tpu.memory_space<vmem>>, vector<1x1x1x32xf32>
    %207 = vector.shape_cast %206 : vector<1x1x1x32xf32> to vector<1x32xf32>
    %c0_117 = arith.constant 0 : index
    %c4_118 = arith.constant 4 : index
    %c0_119 = arith.constant 0 : index
    %c0_120 = arith.constant 0 : index
    %208 = vector.load %arg8[%c0_117, %c4_118, %c0_119, %c0_120] : memref<1x12x1x32xf32, #tpu.memory_space<vmem>>, vector<1x1x1x32xf32>
    %209 = vector.shape_cast %208 : vector<1x1x1x32xf32> to vector<1x32xf32>
    %c0_121 = arith.constant 0 : index
    %c5_122 = arith.constant 5 : index
    %c0_123 = arith.constant 0 : index
    %c0_124 = arith.constant 0 : index
    %210 = vector.load %arg8[%c0_121, %c5_122, %c0_123, %c0_124] : memref<1x12x1x32xf32, #tpu.memory_space<vmem>>, vector<1x1x1x32xf32>
    %211 = vector.shape_cast %210 : vector<1x1x1x32xf32> to vector<1x32xf32>
    %c0_125 = arith.constant 0 : index
    %c6_126 = arith.constant 6 : index
    %c0_127 = arith.constant 0 : index
    %c0_128 = arith.constant 0 : index
    %212 = vector.load %arg8[%c0_125, %c6_126, %c0_127, %c0_128] : memref<1x12x1x32xf32, #tpu.memory_space<vmem>>, vector<1x1x1x32xf32>
    %213 = vector.shape_cast %212 : vector<1x1x1x32xf32> to vector<1x32xf32>
    %c0_129 = arith.constant 0 : index
    %c7_130 = arith.constant 7 : index
    %c0_131 = arith.constant 0 : index
    %c0_132 = arith.constant 0 : index
    %214 = vector.load %arg8[%c0_129, %c7_130, %c0_131, %c0_132] : memref<1x12x1x32xf32, #tpu.memory_space<vmem>>, vector<1x1x1x32xf32>
    %215 = vector.shape_cast %214 : vector<1x1x1x32xf32> to vector<1x32xf32>
    %c0_133 = arith.constant 0 : index
    %c0_134 = arith.constant 0 : index
    %c0_135 = arith.constant 0 : index
    %c0_136 = arith.constant 0 : index
    %216 = vector.load %arg9[%c0_133, %c0_134, %c0_135, %c0_136] : memref<1x4x32x32xbf16, #tpu.memory_space<vmem>>, vector<1x1x32x32xbf16>
    %217 = vector.shape_cast %216 : vector<1x1x32x32xbf16> to vector<32x32xbf16>
    %c0_137 = arith.constant 0 : index
    %c1_138 = arith.constant 1 : index
    %c0_139 = arith.constant 0 : index
    %c0_140 = arith.constant 0 : index
    %218 = vector.load %arg9[%c0_137, %c1_138, %c0_139, %c0_140] : memref<1x4x32x32xbf16, #tpu.memory_space<vmem>>, vector<1x1x32x32xbf16>
    %219 = vector.shape_cast %218 : vector<1x1x32x32xbf16> to vector<32x32xbf16>
    %c0_141 = arith.constant 0 : index
    %c2_142 = arith.constant 2 : index
    %c0_143 = arith.constant 0 : index
    %c0_144 = arith.constant 0 : index
    %220 = vector.load %arg9[%c0_141, %c2_142, %c0_143, %c0_144] : memref<1x4x32x32xbf16, #tpu.memory_space<vmem>>, vector<1x1x32x32xbf16>
    %221 = vector.shape_cast %220 : vector<1x1x32x32xbf16> to vector<32x32xbf16>
    %c0_145 = arith.constant 0 : index
    %c3_146 = arith.constant 3 : index
    %c0_147 = arith.constant 0 : index
    %c0_148 = arith.constant 0 : index
    %222 = vector.load %arg9[%c0_145, %c3_146, %c0_147, %c0_148] : memref<1x4x32x32xbf16, #tpu.memory_space<vmem>>, vector<1x1x32x32xbf16>
    %223 = vector.shape_cast %222 : vector<1x1x32x32xbf16> to vector<32x32xbf16>
    %224 = vector.extract_strided_slice %195 {offsets = [0, 0], sizes = [56, 32], strides = [1, 1]} : vector<64x32xf32> to vector<56x32xf32>
    %225 = tpu.concatenate %196, %224 in 0 : vector<8x32xf32>, vector<56x32xf32> -> vector<64x32xf32>
    %226 = vector.broadcast %201 : vector<1x32xf32> to vector<64x32xf32>
    %227 = arith.mulf %195, %226 : vector<64x32xf32>
    %228 = vector.broadcast %203 : vector<1x32xf32> to vector<64x32xf32>
    %229 = arith.mulf %225, %228 : vector<64x32xf32>
    %230 = arith.addf %227, %229 : vector<64x32xf32>
    %231 = arith.truncf %230 : vector<64x32xf32> to vector<64x32xbf16>
    %232 = vector.broadcast %205 : vector<1x32xf32> to vector<64x32xf32>
    %233 = arith.mulf %195, %232 : vector<64x32xf32>
    %234 = vector.broadcast %207 : vector<1x32xf32> to vector<64x32xf32>
    %235 = arith.mulf %225, %234 : vector<64x32xf32>
    %236 = arith.addf %233, %235 : vector<64x32xf32>
    %237 = arith.truncf %236 : vector<64x32xf32> to vector<64x32xbf16>
    %238 = vector.broadcast %209 : vector<1x32xf32> to vector<64x32xf32>
    %239 = arith.mulf %195, %238 : vector<64x32xf32>
    %240 = vector.broadcast %211 : vector<1x32xf32> to vector<64x32xf32>
    %241 = arith.mulf %225, %240 : vector<64x32xf32>
    %242 = arith.addf %239, %241 : vector<64x32xf32>
    %243 = arith.truncf %242 : vector<64x32xf32> to vector<64x32xbf16>
    %cst_149 = arith.constant dense<0.000000e+00> : vector<64x32xf32>
    %244 = tpu.matmul %231, %217, %cst_149 {dimension_numbers = #tpu.dot_dimension_numbers<[1], [0], [0], [1], [0, 0, 1, 1], [], []>} : vector<64x32xbf16>, vector<32x32xbf16>, vector<64x32xf32> -> vector<64x32xf32>
    %cst_150 = arith.constant dense<0.000000e+00> : vector<64x32xf32>
    %245 = tpu.matmul %237, %219, %cst_150 {dimension_numbers = #tpu.dot_dimension_numbers<[1], [0], [0], [1], [0, 0, 1, 1], [], []>} : vector<64x32xbf16>, vector<32x32xbf16>, vector<64x32xf32> -> vector<64x32xf32>
    %cst_151 = arith.constant dense<0.000000e+00> : vector<64x32xf32>
    %246 = tpu.matmul %243, %221, %cst_151 {dimension_numbers = #tpu.dot_dimension_numbers<[1], [0], [0], [1], [0, 0, 1, 1], [], []>} : vector<64x32xbf16>, vector<32x32xbf16>, vector<64x32xf32> -> vector<64x32xf32>
    %247 = arith.negf %246 : vector<64x32xf32>
    %248 = math.exp %247 : vector<64x32xf32>
    %cst_152 = arith.constant 1.000000e+00 : f32
    %249 = vector.broadcast %cst_152 : f32 to vector<64x32xf32>
    %250 = arith.addf %249, %248 : vector<64x32xf32>
    %251 = arith.divf %249, %250 : vector<64x32xf32>
    %252 = vector.extract_strided_slice %244 {offsets = [0, 0], sizes = [8, 32], strides = [1, 1]} : vector<64x32xf32> to vector<8x32xf32>
    %253 = vector.extract_strided_slice %245 {offsets = [0, 0], sizes = [8, 32], strides = [1, 1]} : vector<64x32xf32> to vector<8x32xf32>
    %254 = vector.broadcast %215 : vector<1x32xf32> to vector<8x32xf32>
    %255 = arith.addf %254, %252 : vector<8x32xf32>
    %256 = arith.maximumf %199, %255 : vector<8x32xf32>
    %257 = arith.subf %199, %256 : vector<8x32xf32>
    %258 = math.exp %257 : vector<8x32xf32>
    %259 = arith.subf %255, %256 : vector<8x32xf32>
    %260 = math.exp %259 : vector<8x32xf32>
    %261 = arith.mulf %258, %197 : vector<8x32xf32>
    %262 = arith.mulf %260, %253 : vector<8x32xf32>
    %263 = arith.addf %261, %262 : vector<8x32xf32>
    %264 = arith.mulf %258, %198 : vector<8x32xf32>
    %265 = arith.addf %264, %260 : vector<8x32xf32>
    %266 = tpu.reciprocal %265 {approx = true} : vector<8x32xf32> -> vector<8x32xf32>
    %267 = arith.mulf %263, %266 : vector<8x32xf32>
    %268 = vector.broadcast %213 : vector<1x32xf32> to vector<8x32xf32>
    %269 = arith.addf %199, %268 : vector<8x32xf32>
    %270 = arith.maximumf %269, %252 : vector<8x32xf32>
    %271 = arith.subf %269, %270 : vector<8x32xf32>
    %272 = math.exp %271 : vector<8x32xf32>
    %273 = arith.subf %252, %270 : vector<8x32xf32>
    %274 = math.exp %273 : vector<8x32xf32>
    %275 = arith.mulf %272, %197 : vector<8x32xf32>
    %276 = arith.mulf %274, %253 : vector<8x32xf32>
    %277 = arith.addf %275, %276 : vector<8x32xf32>
    %278 = arith.mulf %272, %198 : vector<8x32xf32>
    %279 = arith.addf %278, %274 : vector<8x32xf32>
    %280 = vector.extract_strided_slice %244 {offsets = [8, 0], sizes = [8, 32], strides = [1, 1]} : vector<64x32xf32> to vector<8x32xf32>
    %281 = vector.extract_strided_slice %245 {offsets = [8, 0], sizes = [8, 32], strides = [1, 1]} : vector<64x32xf32> to vector<8x32xf32>
    %282 = vector.broadcast %215 : vector<1x32xf32> to vector<8x32xf32>
    %283 = arith.addf %282, %280 : vector<8x32xf32>
    %284 = arith.maximumf %270, %283 : vector<8x32xf32>
    %285 = arith.subf %270, %284 : vector<8x32xf32>
    %286 = math.exp %285 : vector<8x32xf32>
    %287 = arith.subf %283, %284 : vector<8x32xf32>
    %288 = math.exp %287 : vector<8x32xf32>
    %289 = arith.mulf %286, %277 : vector<8x32xf32>
    %290 = arith.mulf %288, %281 : vector<8x32xf32>
    %291 = arith.addf %289, %290 : vector<8x32xf32>
    %292 = arith.mulf %286, %279 : vector<8x32xf32>
    %293 = arith.addf %292, %288 : vector<8x32xf32>
    %294 = tpu.reciprocal %293 {approx = true} : vector<8x32xf32> -> vector<8x32xf32>
    %295 = arith.mulf %291, %294 : vector<8x32xf32>
    %296 = vector.broadcast %213 : vector<1x32xf32> to vector<8x32xf32>
    %297 = arith.addf %270, %296 : vector<8x32xf32>
    %298 = arith.maximumf %297, %280 : vector<8x32xf32>
    %299 = arith.subf %297, %298 : vector<8x32xf32>
    %300 = math.exp %299 : vector<8x32xf32>
    %301 = arith.subf %280, %298 : vector<8x32xf32>
    %302 = math.exp %301 : vector<8x32xf32>
    %303 = arith.mulf %300, %277 : vector<8x32xf32>
    %304 = arith.mulf %302, %281 : vector<8x32xf32>
    %305 = arith.addf %303, %304 : vector<8x32xf32>
    %306 = arith.mulf %300, %279 : vector<8x32xf32>
    %307 = arith.addf %306, %302 : vector<8x32xf32>
    %308 = vector.extract_strided_slice %244 {offsets = [16, 0], sizes = [8, 32], strides = [1, 1]} : vector<64x32xf32> to vector<8x32xf32>
    %309 = vector.extract_strided_slice %245 {offsets = [16, 0], sizes = [8, 32], strides = [1, 1]} : vector<64x32xf32> to vector<8x32xf32>
    %310 = vector.broadcast %215 : vector<1x32xf32> to vector<8x32xf32>
    %311 = arith.addf %310, %308 : vector<8x32xf32>
    %312 = arith.maximumf %298, %311 : vector<8x32xf32>
    %313 = arith.subf %298, %312 : vector<8x32xf32>
    %314 = math.exp %313 : vector<8x32xf32>
    %315 = arith.subf %311, %312 : vector<8x32xf32>
    %316 = math.exp %315 : vector<8x32xf32>
    %317 = arith.mulf %314, %305 : vector<8x32xf32>
    %318 = arith.mulf %316, %309 : vector<8x32xf32>
    %319 = arith.addf %317, %318 : vector<8x32xf32>
    %320 = arith.mulf %314, %307 : vector<8x32xf32>
    %321 = arith.addf %320, %316 : vector<8x32xf32>
    %322 = tpu.reciprocal %321 {approx = true} : vector<8x32xf32> -> vector<8x32xf32>
    %323 = arith.mulf %319, %322 : vector<8x32xf32>
    %324 = vector.broadcast %213 : vector<1x32xf32> to vector<8x32xf32>
    %325 = arith.addf %298, %324 : vector<8x32xf32>
    %326 = arith.maximumf %325, %308 : vector<8x32xf32>
    %327 = arith.subf %325, %326 : vector<8x32xf32>
    %328 = math.exp %327 : vector<8x32xf32>
    %329 = arith.subf %308, %326 : vector<8x32xf32>
    %330 = math.exp %329 : vector<8x32xf32>
    %331 = arith.mulf %328, %305 : vector<8x32xf32>
    %332 = arith.mulf %330, %309 : vector<8x32xf32>
    %333 = arith.addf %331, %332 : vector<8x32xf32>
    %334 = arith.mulf %328, %307 : vector<8x32xf32>
    %335 = arith.addf %334, %330 : vector<8x32xf32>
    %336 = vector.extract_strided_slice %244 {offsets = [24, 0], sizes = [8, 32], strides = [1, 1]} : vector<64x32xf32> to vector<8x32xf32>
    %337 = vector.extract_strided_slice %245 {offsets = [24, 0], sizes = [8, 32], strides = [1, 1]} : vector<64x32xf32> to vector<8x32xf32>
    %338 = vector.broadcast %215 : vector<1x32xf32> to vector<8x32xf32>
    %339 = arith.addf %338, %336 : vector<8x32xf32>
    %340 = arith.maximumf %326, %339 : vector<8x32xf32>
    %341 = arith.subf %326, %340 : vector<8x32xf32>
    %342 = math.exp %341 : vector<8x32xf32>
    %343 = arith.subf %339, %340 : vector<8x32xf32>
    %344 = math.exp %343 : vector<8x32xf32>
    %345 = arith.mulf %342, %333 : vector<8x32xf32>
    %346 = arith.mulf %344, %337 : vector<8x32xf32>
    %347 = arith.addf %345, %346 : vector<8x32xf32>
    %348 = arith.mulf %342, %335 : vector<8x32xf32>
    %349 = arith.addf %348, %344 : vector<8x32xf32>
    %350 = tpu.reciprocal %349 {approx = true} : vector<8x32xf32> -> vector<8x32xf32>
    %351 = arith.mulf %347, %350 : vector<8x32xf32>
    %352 = vector.broadcast %213 : vector<1x32xf32> to vector<8x32xf32>
    %353 = arith.addf %326, %352 : vector<8x32xf32>
    %354 = arith.maximumf %353, %336 : vector<8x32xf32>
    %355 = arith.subf %353, %354 : vector<8x32xf32>
    %356 = math.exp %355 : vector<8x32xf32>
    %357 = arith.subf %336, %354 : vector<8x32xf32>
    %358 = math.exp %357 : vector<8x32xf32>
    %359 = arith.mulf %356, %333 : vector<8x32xf32>
    %360 = arith.mulf %358, %337 : vector<8x32xf32>
    %361 = arith.addf %359, %360 : vector<8x32xf32>
    %362 = arith.mulf %356, %335 : vector<8x32xf32>
    %363 = arith.addf %362, %358 : vector<8x32xf32>
    %364 = vector.extract_strided_slice %244 {offsets = [32, 0], sizes = [8, 32], strides = [1, 1]} : vector<64x32xf32> to vector<8x32xf32>
    %365 = vector.extract_strided_slice %245 {offsets = [32, 0], sizes = [8, 32], strides = [1, 1]} : vector<64x32xf32> to vector<8x32xf32>
    %366 = vector.broadcast %215 : vector<1x32xf32> to vector<8x32xf32>
    %367 = arith.addf %366, %364 : vector<8x32xf32>
    %368 = arith.maximumf %354, %367 : vector<8x32xf32>
    %369 = arith.subf %354, %368 : vector<8x32xf32>
    %370 = math.exp %369 : vector<8x32xf32>
    %371 = arith.subf %367, %368 : vector<8x32xf32>
    %372 = math.exp %371 : vector<8x32xf32>
    %373 = arith.mulf %370, %361 : vector<8x32xf32>
    %374 = arith.mulf %372, %365 : vector<8x32xf32>
    %375 = arith.addf %373, %374 : vector<8x32xf32>
    %376 = arith.mulf %370, %363 : vector<8x32xf32>
    %377 = arith.addf %376, %372 : vector<8x32xf32>
    %378 = tpu.reciprocal %377 {approx = true} : vector<8x32xf32> -> vector<8x32xf32>
    %379 = arith.mulf %375, %378 : vector<8x32xf32>
    %380 = vector.broadcast %213 : vector<1x32xf32> to vector<8x32xf32>
    %381 = arith.addf %354, %380 : vector<8x32xf32>
    %382 = arith.maximumf %381, %364 : vector<8x32xf32>
    %383 = arith.subf %381, %382 : vector<8x32xf32>
    %384 = math.exp %383 : vector<8x32xf32>
    %385 = arith.subf %364, %382 : vector<8x32xf32>
    %386 = math.exp %385 : vector<8x32xf32>
    %387 = arith.mulf %384, %361 : vector<8x32xf32>
    %388 = arith.mulf %386, %365 : vector<8x32xf32>
    %389 = arith.addf %387, %388 : vector<8x32xf32>
    %390 = arith.mulf %384, %363 : vector<8x32xf32>
    %391 = arith.addf %390, %386 : vector<8x32xf32>
    %392 = vector.extract_strided_slice %244 {offsets = [40, 0], sizes = [8, 32], strides = [1, 1]} : vector<64x32xf32> to vector<8x32xf32>
    %393 = vector.extract_strided_slice %245 {offsets = [40, 0], sizes = [8, 32], strides = [1, 1]} : vector<64x32xf32> to vector<8x32xf32>
    %394 = vector.broadcast %215 : vector<1x32xf32> to vector<8x32xf32>
    %395 = arith.addf %394, %392 : vector<8x32xf32>
    %396 = arith.maximumf %382, %395 : vector<8x32xf32>
    %397 = arith.subf %382, %396 : vector<8x32xf32>
    %398 = math.exp %397 : vector<8x32xf32>
    %399 = arith.subf %395, %396 : vector<8x32xf32>
    %400 = math.exp %399 : vector<8x32xf32>
    %401 = arith.mulf %398, %389 : vector<8x32xf32>
    %402 = arith.mulf %400, %393 : vector<8x32xf32>
    %403 = arith.addf %401, %402 : vector<8x32xf32>
    %404 = arith.mulf %398, %391 : vector<8x32xf32>
    %405 = arith.addf %404, %400 : vector<8x32xf32>
    %406 = tpu.reciprocal %405 {approx = true} : vector<8x32xf32> -> vector<8x32xf32>
    %407 = arith.mulf %403, %406 : vector<8x32xf32>
    %408 = vector.broadcast %213 : vector<1x32xf32> to vector<8x32xf32>
    %409 = arith.addf %382, %408 : vector<8x32xf32>
    %410 = arith.maximumf %409, %392 : vector<8x32xf32>
    %411 = arith.subf %409, %410 : vector<8x32xf32>
    %412 = math.exp %411 : vector<8x32xf32>
    %413 = arith.subf %392, %410 : vector<8x32xf32>
    %414 = math.exp %413 : vector<8x32xf32>
    %415 = arith.mulf %412, %389 : vector<8x32xf32>
    %416 = arith.mulf %414, %393 : vector<8x32xf32>
    %417 = arith.addf %415, %416 : vector<8x32xf32>
    %418 = arith.mulf %412, %391 : vector<8x32xf32>
    %419 = arith.addf %418, %414 : vector<8x32xf32>
    %420 = vector.extract_strided_slice %244 {offsets = [48, 0], sizes = [8, 32], strides = [1, 1]} : vector<64x32xf32> to vector<8x32xf32>
    %421 = vector.extract_strided_slice %245 {offsets = [48, 0], sizes = [8, 32], strides = [1, 1]} : vector<64x32xf32> to vector<8x32xf32>
    %422 = vector.broadcast %215 : vector<1x32xf32> to vector<8x32xf32>
    %423 = arith.addf %422, %420 : vector<8x32xf32>
    %424 = arith.maximumf %410, %423 : vector<8x32xf32>
    %425 = arith.subf %410, %424 : vector<8x32xf32>
    %426 = math.exp %425 : vector<8x32xf32>
    %427 = arith.subf %423, %424 : vector<8x32xf32>
    %428 = math.exp %427 : vector<8x32xf32>
    %429 = arith.mulf %426, %417 : vector<8x32xf32>
    %430 = arith.mulf %428, %421 : vector<8x32xf32>
    %431 = arith.addf %429, %430 : vector<8x32xf32>
    %432 = arith.mulf %426, %419 : vector<8x32xf32>
    %433 = arith.addf %432, %428 : vector<8x32xf32>
    %434 = tpu.reciprocal %433 {approx = true} : vector<8x32xf32> -> vector<8x32xf32>
    %435 = arith.mulf %431, %434 : vector<8x32xf32>
    %436 = vector.broadcast %213 : vector<1x32xf32> to vector<8x32xf32>
    %437 = arith.addf %410, %436 : vector<8x32xf32>
    %438 = arith.maximumf %437, %420 : vector<8x32xf32>
    %439 = arith.subf %437, %438 : vector<8x32xf32>
    %440 = math.exp %439 : vector<8x32xf32>
    %441 = arith.subf %420, %438 : vector<8x32xf32>
    %442 = math.exp %441 : vector<8x32xf32>
    %443 = arith.mulf %440, %417 : vector<8x32xf32>
    %444 = arith.mulf %442, %421 : vector<8x32xf32>
    %445 = arith.addf %443, %444 : vector<8x32xf32>
    %446 = arith.mulf %440, %419 : vector<8x32xf32>
    %447 = arith.addf %446, %442 : vector<8x32xf32>
    %448 = vector.extract_strided_slice %244 {offsets = [56, 0], sizes = [8, 32], strides = [1, 1]} : vector<64x32xf32> to vector<8x32xf32>
    %449 = vector.extract_strided_slice %245 {offsets = [56, 0], sizes = [8, 32], strides = [1, 1]} : vector<64x32xf32> to vector<8x32xf32>
    %450 = vector.broadcast %215 : vector<1x32xf32> to vector<8x32xf32>
    %451 = arith.addf %450, %448 : vector<8x32xf32>
    %452 = arith.maximumf %438, %451 : vector<8x32xf32>
    %453 = arith.subf %438, %452 : vector<8x32xf32>
    %454 = math.exp %453 : vector<8x32xf32>
    %455 = arith.subf %451, %452 : vector<8x32xf32>
    %456 = math.exp %455 : vector<8x32xf32>
    %457 = arith.mulf %454, %445 : vector<8x32xf32>
    %458 = arith.mulf %456, %449 : vector<8x32xf32>
    %459 = arith.addf %457, %458 : vector<8x32xf32>
    %460 = arith.mulf %454, %447 : vector<8x32xf32>
    %461 = arith.addf %460, %456 : vector<8x32xf32>
    %462 = tpu.reciprocal %461 {approx = true} : vector<8x32xf32> -> vector<8x32xf32>
    %463 = arith.mulf %459, %462 : vector<8x32xf32>
    %464 = vector.broadcast %213 : vector<1x32xf32> to vector<8x32xf32>
    %465 = arith.addf %438, %464 : vector<8x32xf32>
    %466 = arith.maximumf %465, %448 : vector<8x32xf32>
    %467 = arith.subf %465, %466 : vector<8x32xf32>
    %468 = math.exp %467 : vector<8x32xf32>
    %469 = arith.subf %448, %466 : vector<8x32xf32>
    %470 = math.exp %469 : vector<8x32xf32>
    %471 = arith.mulf %468, %445 : vector<8x32xf32>
    %472 = arith.mulf %470, %449 : vector<8x32xf32>
    %473 = arith.addf %471, %472 : vector<8x32xf32>
    %474 = arith.mulf %468, %447 : vector<8x32xf32>
    %475 = arith.addf %474, %470 : vector<8x32xf32>
    %476 = tpu.concatenate %267, %295, %323, %351, %379, %407, %435, %463 in 0 : vector<8x32xf32>, vector<8x32xf32>, vector<8x32xf32>, vector<8x32xf32>, vector<8x32xf32>, vector<8x32xf32>, vector<8x32xf32>, vector<8x32xf32> -> vector<64x32xf32>
    %477 = arith.mulf %251, %476 : vector<64x32xf32>
    %478 = arith.truncf %477 : vector<64x32xf32> to vector<64x32xbf16>
    %cst_153 = arith.constant dense<0.000000e+00> : vector<64x32xf32>
    %479 = tpu.matmul %478, %223, %cst_153 {dimension_numbers = #tpu.dot_dimension_numbers<[1], [0], [0], [1], [0, 0, 1, 1], [], []>} : vector<64x32xbf16>, vector<32x32xbf16>, vector<64x32xf32> -> vector<64x32xf32>
    %480 = vector.extract_strided_slice %195 {offsets = [56, 0], sizes = [8, 32], strides = [1, 1]} : vector<64x32xf32> to vector<8x32xf32>
    %481 = arith.addf %166, %479 : vector<64x32xf32>
    %c0_154 = arith.constant 0 : index
    %c2_155 = arith.constant 2 : index
    %c0_156 = arith.constant 0 : index
    %c0_157 = arith.constant 0 : index
    %482 = vector.load %arg7[%c0_154, %c2_155, %c0_156, %c0_157] : memref<1x4x1x32xf32, #tpu.memory_space<vmem>>, vector<1x1x1x32xf32>
    %483 = vector.shape_cast %482 : vector<1x1x1x32xf32> to vector<1x32xf32>
    %c0_158 = arith.constant 0 : index
    %c3_159 = arith.constant 3 : index
    %c0_160 = arith.constant 0 : index
    %c0_161 = arith.constant 0 : index
    %484 = vector.load %arg7[%c0_158, %c3_159, %c0_160, %c0_161] : memref<1x4x1x32xf32, #tpu.memory_space<vmem>>, vector<1x1x1x32xf32>
    %485 = vector.shape_cast %484 : vector<1x1x1x32xf32> to vector<1x32xf32>
    %cst_162 = arith.constant dense<0.000000e+00> : vector<64xf32>
    %486 = vector.multi_reduction <add>, %481, %cst_162 [1] : vector<64x32xf32> to vector<64xf32>
    %487 = vector.shape_cast %486 : vector<64xf32> to vector<64x1xf32>
    %cst_163 = arith.constant 3.200000e+01 : f32
    %488 = vector.broadcast %cst_163 : f32 to vector<64x1xf32>
    %489 = arith.divf %487, %488 : vector<64x1xf32>
    %490 = vector.broadcast %489 : vector<64x1xf32> to vector<64x32xf32>
    %491 = arith.subf %481, %490 : vector<64x32xf32>
    %492 = arith.mulf %491, %491 : vector<64x32xf32>
    %cst_164 = arith.constant dense<0.000000e+00> : vector<64xf32>
    %493 = vector.multi_reduction <add>, %492, %cst_164 [1] : vector<64x32xf32> to vector<64xf32>
    %494 = vector.shape_cast %493 : vector<64xf32> to vector<64x1xf32>
    %cst_165 = arith.constant 3.200000e+01 : f32
    %495 = vector.broadcast %cst_165 : f32 to vector<64x1xf32>
    %496 = arith.divf %494, %495 : vector<64x1xf32>
    %497 = vector.broadcast %489 : vector<64x1xf32> to vector<64x32xf32>
    %498 = arith.subf %481, %497 : vector<64x32xf32>
    %cst_166 = arith.constant 9.99999974E-6 : f32
    %499 = vector.broadcast %cst_166 : f32 to vector<64x1xf32>
    %500 = arith.addf %496, %499 : vector<64x1xf32>
    %501 = math.rsqrt %500 : vector<64x1xf32>
    %502 = vector.broadcast %501 : vector<64x1xf32> to vector<64x32xf32>
    %503 = arith.mulf %498, %502 : vector<64x32xf32>
    %504 = vector.broadcast %483 : vector<1x32xf32> to vector<64x32xf32>
    %505 = arith.mulf %503, %504 : vector<64x32xf32>
    %506 = vector.broadcast %485 : vector<1x32xf32> to vector<64x32xf32>
    %507 = arith.addf %505, %506 : vector<64x32xf32>
    %c48 = arith.constant 48 : index
    %c0_167 = arith.constant 0 : index
    %508 = vector.load %arg1[%c48, %c0_167] : memref<80x32xf32, #tpu.memory_space<vmem>>, vector<8x32xf32>
    %c0_168 = arith.constant 0 : index
    %c8_169 = arith.constant 8 : index
    %c0_170 = arith.constant 0 : index
    %c0_171 = arith.constant 0 : index
    %509 = vector.load %arg8[%c0_168, %c8_169, %c0_170, %c0_171] : memref<1x12x1x32xf32, #tpu.memory_space<vmem>>, vector<1x1x1x32xf32>
    %510 = vector.shape_cast %509 : vector<1x1x1x32xf32> to vector<1x32xf32>
    %c0_172 = arith.constant 0 : index
    %c9 = arith.constant 9 : index
    %c0_173 = arith.constant 0 : index
    %c0_174 = arith.constant 0 : index
    %511 = vector.load %arg8[%c0_172, %c9, %c0_173, %c0_174] : memref<1x12x1x32xf32, #tpu.memory_space<vmem>>, vector<1x1x1x32xf32>
    %512 = vector.shape_cast %511 : vector<1x1x1x32xf32> to vector<1x32xf32>
    %c0_175 = arith.constant 0 : index
    %c10 = arith.constant 10 : index
    %c0_176 = arith.constant 0 : index
    %c0_177 = arith.constant 0 : index
    %513 = vector.load %arg8[%c0_175, %c10, %c0_176, %c0_177] : memref<1x12x1x32xf32, #tpu.memory_space<vmem>>, vector<1x1x1x32xf32>
    %514 = vector.shape_cast %513 : vector<1x1x1x32xf32> to vector<1x32xf32>
    %c0_178 = arith.constant 0 : index
    %c11 = arith.constant 11 : index
    %c0_179 = arith.constant 0 : index
    %c0_180 = arith.constant 0 : index
    %515 = vector.load %arg8[%c0_178, %c11, %c0_179, %c0_180] : memref<1x12x1x32xf32, #tpu.memory_space<vmem>>, vector<1x1x1x32xf32>
    %516 = vector.shape_cast %515 : vector<1x1x1x32xf32> to vector<1x32xf32>
    %c0_181 = arith.constant 0 : index
    %c0_182 = arith.constant 0 : index
    %c0_183 = arith.constant 0 : index
    %517 = vector.load %arg10[%c0_181, %c0_182, %c0_183] : memref<1x32x128xbf16, #tpu.memory_space<vmem>>, vector<1x32x128xbf16>
    %518 = vector.shape_cast %517 : vector<1x32x128xbf16> to vector<32x128xbf16>
    %c0_184 = arith.constant 0 : index
    %c0_185 = arith.constant 0 : index
    %c0_186 = arith.constant 0 : index
    %519 = vector.load %arg11[%c0_184, %c0_185, %c0_186] : memref<1x128x32xbf16, #tpu.memory_space<vmem>>, vector<1x128x32xbf16>
    %520 = vector.shape_cast %519 : vector<1x128x32xbf16> to vector<128x32xbf16>
    %c0_187 = arith.constant 0 : index
    %c0_188 = arith.constant 0 : index
    %c0_189 = arith.constant 0 : index
    %521 = vector.load %arg12[%c0_187, %c0_188, %c0_189] : memref<1x32x32xbf16, #tpu.memory_space<vmem>>, vector<1x32x32xbf16>
    %522 = vector.shape_cast %521 : vector<1x32x32xbf16> to vector<32x32xbf16>
    %523 = vector.extract_strided_slice %507 {offsets = [0, 0], sizes = [56, 32], strides = [1, 1]} : vector<64x32xf32> to vector<56x32xf32>
    %524 = tpu.concatenate %508, %523 in 0 : vector<8x32xf32>, vector<56x32xf32> -> vector<64x32xf32>
    %525 = vector.broadcast %510 : vector<1x32xf32> to vector<64x32xf32>
    %526 = arith.mulf %507, %525 : vector<64x32xf32>
    %527 = vector.broadcast %512 : vector<1x32xf32> to vector<64x32xf32>
    %528 = arith.mulf %524, %527 : vector<64x32xf32>
    %529 = arith.addf %526, %528 : vector<64x32xf32>
    %530 = arith.truncf %529 : vector<64x32xf32> to vector<64x32xbf16>
    %531 = vector.broadcast %514 : vector<1x32xf32> to vector<64x32xf32>
    %532 = arith.mulf %507, %531 : vector<64x32xf32>
    %533 = vector.broadcast %516 : vector<1x32xf32> to vector<64x32xf32>
    %534 = arith.mulf %524, %533 : vector<64x32xf32>
    %535 = arith.addf %532, %534 : vector<64x32xf32>
    %536 = arith.truncf %535 : vector<64x32xf32> to vector<64x32xbf16>
    %cst_190 = arith.constant dense<0.000000e+00> : vector<64x128xf32>
    %537 = tpu.matmul %530, %518, %cst_190 {dimension_numbers = #tpu.dot_dimension_numbers<[1], [0], [0], [1], [0, 0, 1, 1], [], []>} : vector<64x32xbf16>, vector<32x128xbf16>, vector<64x128xf32> -> vector<64x128xf32>
    %cst_191 = arith.constant 0.000000e+00 : f32
    %538 = vector.broadcast %cst_191 : f32 to vector<64x128xf32>
    %539 = arith.maximumf %537, %538 : vector<64x128xf32>
    %540 = arith.mulf %539, %539 : vector<64x128xf32>
    %cst_192 = arith.constant dense<0.000000e+00> : vector<64x32xf32>
    %541 = tpu.matmul %536, %522, %cst_192 {dimension_numbers = #tpu.dot_dimension_numbers<[1], [0], [0], [1], [0, 0, 1, 1], [], []>} : vector<64x32xbf16>, vector<32x32xbf16>, vector<64x32xf32> -> vector<64x32xf32>
    %542 = arith.negf %541 : vector<64x32xf32>
    %543 = math.exp %542 : vector<64x32xf32>
    %cst_193 = arith.constant 1.000000e+00 : f32
    %544 = vector.broadcast %cst_193 : f32 to vector<64x32xf32>
    %545 = arith.addf %544, %543 : vector<64x32xf32>
    %546 = arith.divf %544, %545 : vector<64x32xf32>
    %547 = arith.truncf %540 : vector<64x128xf32> to vector<64x128xbf16>
    %cst_194 = arith.constant dense<0.000000e+00> : vector<64x32xf32>
    %548 = tpu.matmul %547, %520, %cst_194 {dimension_numbers = #tpu.dot_dimension_numbers<[1], [0], [0], [1], [0, 0, 1, 1], [], []>} : vector<64x128xbf16>, vector<128x32xbf16>, vector<64x32xf32> -> vector<64x32xf32>
    %549 = arith.mulf %546, %548 : vector<64x32xf32>
    %550 = vector.extract_strided_slice %507 {offsets = [56, 0], sizes = [8, 32], strides = [1, 1]} : vector<64x32xf32> to vector<8x32xf32>
    %551 = arith.addf %481, %549 : vector<64x32xf32>
    %c0_195 = arith.constant 0 : index
    %c0_196 = arith.constant 0 : index
    %c0_197 = arith.constant 0 : index
    %552 = vector.load %arg13[%c0_195, %c0_196, %c0_197] : memref<2x1x32xf32, #tpu.memory_space<vmem>>, vector<1x1x32xf32>
    %553 = vector.shape_cast %552 : vector<1x1x32xf32> to vector<1x32xf32>
    %c1_198 = arith.constant 1 : index
    %c0_199 = arith.constant 0 : index
    %c0_200 = arith.constant 0 : index
    %554 = vector.load %arg13[%c1_198, %c0_199, %c0_200] : memref<2x1x32xf32, #tpu.memory_space<vmem>>, vector<1x1x32xf32>
    %555 = vector.shape_cast %554 : vector<1x1x32xf32> to vector<1x32xf32>
    %cst_201 = arith.constant dense<0.000000e+00> : vector<64xf32>
    %556 = vector.multi_reduction <add>, %551, %cst_201 [1] : vector<64x32xf32> to vector<64xf32>
    %557 = vector.shape_cast %556 : vector<64xf32> to vector<64x1xf32>
    %cst_202 = arith.constant 3.200000e+01 : f32
    %558 = vector.broadcast %cst_202 : f32 to vector<64x1xf32>
    %559 = arith.divf %557, %558 : vector<64x1xf32>
    %560 = vector.broadcast %559 : vector<64x1xf32> to vector<64x32xf32>
    %561 = arith.subf %551, %560 : vector<64x32xf32>
    %562 = arith.mulf %561, %561 : vector<64x32xf32>
    %cst_203 = arith.constant dense<0.000000e+00> : vector<64xf32>
    %563 = vector.multi_reduction <add>, %562, %cst_203 [1] : vector<64x32xf32> to vector<64xf32>
    %564 = vector.shape_cast %563 : vector<64xf32> to vector<64x1xf32>
    %cst_204 = arith.constant 3.200000e+01 : f32
    %565 = vector.broadcast %cst_204 : f32 to vector<64x1xf32>
    %566 = arith.divf %564, %565 : vector<64x1xf32>
    %567 = vector.broadcast %559 : vector<64x1xf32> to vector<64x32xf32>
    %568 = arith.subf %551, %567 : vector<64x32xf32>
    %cst_205 = arith.constant 9.99999974E-6 : f32
    %569 = vector.broadcast %cst_205 : f32 to vector<64x1xf32>
    %570 = arith.addf %566, %569 : vector<64x1xf32>
    %571 = math.rsqrt %570 : vector<64x1xf32>
    %572 = vector.broadcast %571 : vector<64x1xf32> to vector<64x32xf32>
    %573 = arith.mulf %568, %572 : vector<64x32xf32>
    %574 = vector.broadcast %553 : vector<1x32xf32> to vector<64x32xf32>
    %575 = arith.mulf %573, %574 : vector<64x32xf32>
    %576 = vector.broadcast %555 : vector<1x32xf32> to vector<64x32xf32>
    %577 = arith.addf %575, %576 : vector<64x32xf32>
    %c0_206 = arith.constant 0 : index
    %c0_207 = arith.constant 0 : index
    %578 = vector.load %arg14[%c0_206, %c0_207] : memref<64x32xf32, #tpu.memory_space<vmem>>, vector<64x32xf32>
    tpu.vector_store %arg14[%c0_206, %c0_207], %577 {strides = array<i32>} : memref<64x32xf32, #tpu.memory_space<vmem>>, vector<64x32xf32>,
    %579 = tpu.concatenate %95, %165, %167, %168, %169, %480, %550, %473, %475, %466 in 0 : vector<8x32xf32>, vector<8x32xf32>, vector<8x32xf32>, vector<8x32xf32>, vector<8x32xf32>, vector<8x32xf32>, vector<8x32xf32>, vector<8x32xf32>, vector<8x32xf32>, vector<8x32xf32> -> vector<80x32xf32>
    %c0_208 = arith.constant 0 : index
    %c0_209 = arith.constant 0 : index
    %580 = vector.load %arg15[%c0_208, %c0_209] : memref<80x32xf32, #tpu.memory_space<vmem>>, vector<80x32xf32>
    tpu.vector_store %arg15[%c0_208, %c0_209], %579 {strides = array<i32>} : memref<80x32xf32, #tpu.memory_space<vmem>>, vector<80x32xf32>,
    return
  }
}

</mosaic_0001>

<bundles_post_ra>
// kernel: rwkv_pallas_forward.1
= control target key start
LH: loop header
LB: loop body
LE: loop exit
PB: predicated region body
PF: predicated region fallthrough
CT: control target
= control target key end

     0   :  { %vm61_vm0 = vcmask 261120   ;;  %v4174_v16 = vmov 32.0   ;;  %s6137_s0 = inlined_call_operand.vmem [shape: f32[64,32], index: 0, kind: input, shape index: {}]   ;;  %s6138_s2 = inlined_call_operand.vmem [shape: f32[6,1,32], index: 2, kind: input, shape index: {}]   ;;  %s6139_s3 = inlined_call_operand.vmem [shape: f32[8,1,32], index: 3, kind: input, shape index: {}]   ;;  %s6140_s4 = inlined_call_operand.vmem [shape: bf16[2,32,128], index: 4, kind: input, shape index: {}]   ;;  %s6141_s1 = inlined_call_operand.vmem [shape: f32[80,32], index: 1, kind: input, shape index: {}]   ;;  %s6142_s6 = inlined_call_operand.vmem [shape: bf16[2,32,32], index: 6, kind: input, shape index: {}]   ;;  %s6143_s15 = inlined_call_operand.vmem [shape: f32[80,32], index: 15, kind: output, shape index: {1}]   ;;  %s6144_s5 = inlined_call_operand.vmem [shape: bf16[2,128,32], index: 5, kind: input, shape index: {}]   ;;  %s6145_s7 = inlined_call_operand.vmem [shape: f32[1,4,1,32], index: 7, kind: input, shape index: {}]   ;;  %s6146_s9 = inlined_call_operand.vmem [shape: bf16[1,4,32,32], index: 9, kind: input, shape index: {}]   ;;  %s6147_s8 = inlined_call_operand.vmem [shape: f32[1,12,1,32], index: 8, kind: input, shape index: {}]   ;;  %s6148_s10 = inlined_call_operand.vmem [shape: bf16[1,32,128], index: 10, kind: input, shape index: {}]   ;;  %s6149_s12 = inlined_call_operand.vmem [shape: bf16[1,32,32], index: 12, kind: input, shape index: {}]   ;;  %s6150_s11 = inlined_call_operand.vmem [shape: bf16[1,128,32], index: 11, kind: input, shape index: {}]   ;;  %s6151_s13 = inlined_call_operand.vmem [shape: f32[2,1,32], index: 13, kind: input, shape index: {}]   ;;  %s6152_s14 = inlined_call_operand.vmem [shape: f32[64,32], index: 14, kind: output, shape index: {0}]  }
   0x1   :  { %v54_v0 = vld [vmem:[%s6137_s0 + $0x20] sm:$0xff]  ;;  %v52_v1 = vld [vmem:[%s6137_s0 + $0x10] sm:$0xff]  ;;  %v55_v6 = vld [vmem:[%s6137_s0 + $0x28] sm:$0xff]  ;;  %3868 = vrcp.f32 %v4174_v16 }
   0x2   :  { %v50_v2 = vld [vmem:[%s6137_s0] sm:$0xff]  ;;  %v74_v3 = vsel %vm61_vm0, %v54_v0, 0.0  ;;  %v68_v4 = vsel %vm61_vm0, %v52_v1, 0.0  ;;  %v53_v7 = vld [vmem:[%s6137_s0 + $0x18] sm:$0xff]  ;;  %v51_v8 = vld [vmem:[%s6137_s0 + $0x8] sm:$0xff]  ;;  %v77_v9 = vsel %vm61_vm0, %v55_v6, 0.0 }
   0x3   :  { %v62_v5 = vsel %vm61_vm0, %v50_v2, 0.0  ;;  %75 = vadd.xlane.f32.xlu2 %v74_v3  ;;  %69 = vadd.xlane.f32.xlu1 %v68_v4  ;;  %v71_v10 = vsel %vm61_vm0, %v53_v7, 0.0  ;;  %v65_v11 = vsel %vm61_vm0, %v51_v8, 0.0  ;;  %v57_v12 = vld [vmem:[%s6137_s0 + $0x38] sm:$0xff]  ;;  %v56_v13 = vld [vmem:[%s6137_s0 + $0x30] sm:$0xff] }
   0x4   :  { %63 = vadd.xlane.f32.xlu0 %v62_v5  ;;  %v83_v14 = vsel %vm61_vm0, %v57_v12, 0.0  ;;  %v80_v15 = vsel %vm61_vm0, %v56_v13, 0.0 }
   0x7   :  { %v3869_v17 = vpop.eup %3868 }
   0x8   :  { %v87_v18 = vmul.f32 32.0, %v3869_v17  ;;  %vm91_vm1 = vweird.f32 %v3869_v17 }
   0xa   :  { %v88_v19 = vsub.f32 1.0, %v87_v18 }
   0xb   :  { %78 = vadd.xlane.f32.xlu2 %v77_v9  ;;  %72 = vadd.xlane.f32.xlu1 %v71_v10 }
   0xc   :  { %66 = vadd.xlane.f32.xlu0 %v65_v11  ;;  %v89_v20 = vmul.f32 %v3869_v17, %v88_v19 }
   0xe   :  { %v90_v21 = vadd.f32 %v3869_v17, %v89_v20 }
  0x10   :  { %v4287_v22 = vsel %vm91_vm1, %v3869_v17, %v90_v21 }
  0x13   :  { %84 = vadd.xlane.f32.xlu1 %v83_v14 }
  0x14   :  { %81 = vadd.xlane.f32.xlu0 %v80_v15 }
  0x76   :  { %v76_v23 = vpop.xlane.xlu2 %75  ;;  %v70_v24 = vpop.xlane.xlu1 %69 }
  0x77   :  { %v95_v25 = vmul.f32 %v4287_v22, %v70_v24  ;;  %v64_v26 = vpop.xlane.xlu0 %63  ;;  %v97_v33 = vmul.f32 %v4287_v22, %v76_v23 }
  0x78   :  { %v93_v27 = vmul.f32 %v4287_v22, %v64_v26 }
  0x79   :  { %v4291_v28 = vsub.f32 %v52_v1, %v95_v25  ;;  %v4309_v43 = vsub.f32 %v54_v0, %v97_v33 }
  0x7a   :  { %v4293_v29 = vsub.f32 %v50_v2, %v93_v27 }
  0x7b   :  { %v111_v30 = vmul.f32 %v4291_v28, %v4291_v28  ;;  %v113_v52 = vmul.f32 %v4309_v43, %v4309_v43 }
  0x7c   :  { %v109_v31 = vmul.f32 %v4293_v29, %v4293_v29 }
  0x7d   :  { %v123_v32 = vsel %vm61_vm0, %v111_v30, 0.0  ;;  %v129_v57 = vsel %vm61_vm0, %v113_v52, 0.0 }
  0x7e   :  { %v79_v34 = vpop.xlane.xlu2 %78  ;;  %124 = vadd.xlane.f32.xlu1 %v123_v32  ;;  %v73_v35 = vpop.xlane.xlu1 %72  ;;  %v117_v36 = vsel %vm61_vm0, %v109_v31, 0.0 }
  0x7f   :  { %v98_v37 = vmul.f32 %v4287_v22, %v79_v34  ;;  %v96_v38 = vmul.f32 %v4287_v22, %v73_v35  ;;  %118 = vadd.xlane.f32.xlu2 %v117_v36  ;;  %v67_v39 = vpop.xlane.xlu0 %66 }
  0x80   :  { %v94_v40 = vmul.f32 %v4287_v22, %v67_v39 }
  0x81   :  { %v4305_v41 = vsub.f32 %v55_v6, %v98_v37  ;;  %v4307_v42 = vsub.f32 %v53_v7, %v96_v38 }
  0x82   :  { %v4311_v44 = vsub.f32 %v51_v8, %v94_v40 }
  0x83   :  { %v114_v45 = vmul.f32 %v4305_v41, %v4305_v41  ;;  %v112_v46 = vmul.f32 %v4307_v42, %v4307_v42 }
  0x84   :  { %v110_v47 = vmul.f32 %v4311_v44, %v4311_v44 }
  0x85   :  { %v132_v48 = vsel %vm61_vm0, %v114_v45, 0.0  ;;  %v126_v49 = vsel %vm61_vm0, %v112_v46, 0.0 }
  0x86   :  { %133 = vadd.xlane.f32.xlu1 %v132_v48  ;;  %v120_v50 = vsel %vm61_vm0, %v110_v47, 0.0  ;;  %v85_v51 = vpop.xlane.xlu1 %84 }
  0x87   :  { %127 = vadd.xlane.f32.xlu2 %v126_v49  ;;  %121 = vadd.xlane.f32.xlu0 %v120_v50  ;;  %v82_v53 = vpop.xlane.xlu0 %81  ;;  %v100_v55 = vmul.f32 %v4287_v22, %v85_v51  ;;  %v4375_v51 = vld [vmem:[%s6138_s2] ss:$0 sm:$0xff] }
  0x88   :  { %v99_v54 = vmul.f32 %v4287_v22, %v82_v53 }
  0x89   :  { %v4329_v58 = vsub.f32 %v57_v12, %v100_v55 }
  0x8a   :  { %v4326_v56 = vsub.f32 %v56_v13, %v99_v54 }
  0x8b   :  { %v116_v61 = vmul.f32 %v4329_v58, %v4329_v58 }
  0x8c   :  { %v115_v59 = vmul.f32 %v4326_v56, %v4326_v56 }
  0x8d   :  { %v138_v62 = vsel %vm61_vm0, %v116_v61, 0.0 }
  0x8e   :  { %v135_v60 = vsel %vm61_vm0, %v115_v59, 0.0  ;;  %v4384_v59 = vld [vmem:[%s6138_s2 + $0x1] ss:$0 sm:$0xff] }
  0x8f   :  { %130 = vadd.xlane.f32.xlu0 %v129_v57  ;;  %136 = vadd.xlane.f32.xlu2 %v135_v60 }
  0x97   :  { %139 = vadd.xlane.f32.xlu0 %v138_v62 }
  0xf1   :  { %v125_v63 = vpop.xlane.xlu1 %124 }
  0xf2   :  { %v143_v0 = vmul.f32 %v125_v63, %v4287_v22  ;;  %v119_v1 = vpop.xlane.xlu2 %118 }
  0xf3   :  { %v141_v2 = vmul.f32 %v119_v1, %v4287_v22 }
  0xf4   :  { %v151_v3 = vadd.f32 1e-05, %v143_v0 }
  0xf5   :  { %v149_v4 = vadd.f32 1e-05, %v141_v2 }
  0xf6   :  { %3870 = vrsqrt.f32 %v151_v3  ;;  %vm183_vm2 = vweird.f32 %v151_v3 }
  0xf7   :  { %3872 = vrsqrt.f32 %v149_v4  ;;  %vm163_vm6 = vweird.f32 %v149_v4 }
  0xf9   :  { %v134_v5 = vpop.xlane.xlu1 %133 }
  0xfa   :  { %v146_v6 = vmul.f32 %v134_v5, %v4287_v22  ;;  %v128_v7 = vpop.xlane.xlu2 %127  ;;  %v122_v8 = vpop.xlane.xlu0 %121 }
  0xfb   :  { %v144_v9 = vmul.f32 %v128_v7, %v4287_v22  ;;  %v142_v10 = vmul.f32 %v122_v8, %v4287_v22 }
  0xfc   :  { %v3871_v11 = vpop.eup %3870  ;;  %v154_v12 = vadd.f32 1e-05, %v146_v6 }
  0xfd   :  { %v3873_v13 = vpop.eup %3872  ;;  %v178_v14 = vmul.f32 %v3871_v11, %v151_v3  ;;  %v152_v15 = vadd.f32 1e-05, %v144_v9  ;;  %v4342_v16 = vadd.f32 1e-05, %v142_v10  ;;  %vm184_vm3 = vweird.f32 %v3871_v11 }
  0xfe   :  { %v158_v17 = vmul.f32 %v3873_v13, %v149_v4  ;;  %3874 = vrsqrt.f32 %v154_v12  ;;  %vm4349_vm4 = vmor %vm183_vm2, %vm184_vm3  ;;  %vm164_vm5 = vweird.f32 %v3873_v13  ;;  %vm213_vm8 = vweird.f32 %v154_v12 }
  0xff   :  { %v179_v18 = vmul.f32 %v3871_v11, %v178_v14  ;;  %3876 = vrsqrt.f32 %v152_v15  ;;  %vm4362_vm7 = vmor %vm163_vm6, %vm164_vm5  ;;  %vm193_vm9 = vweird.f32 %v152_v15  ;;  %vm173_vm15 = vweird.f32 %v4342_v16 }
 0x100   :  { %v159_v19 = vmul.f32 %v3873_v13, %v158_v17  ;;  %3878 = vrsqrt.f32 %v4342_v16 }
 0x101   :  { %v180_v20 = vmul.f32 0.5, %v179_v18 }
 0x102   :  { %v160_v21 = vmul.f32 0.5, %v159_v19  ;;  %v137_v23 = vpop.xlane.xlu2 %136  ;;  %v131_v24 = vpop.xlane.xlu0 %130 }
 0x103   :  { %v181_v25 = vsub.f32 1.5, %v180_v20  ;;  %v147_v26 = vmul.f32 %v137_v23, %v4287_v22  ;;  %v145_v27 = vmul.f32 %v131_v24, %v4287_v22 }
 0x104   :  { %v4347_v30 = vpop.eup %3874  ;;  %v161_v32 = vsub.f32 1.5, %v160_v21 }
 0x105   :  { %v3877_v33 = vpop.eup %3876  ;;  %v182_v34 = vmul.f32 %v3871_v11, %v181_v25  ;;  %v208_v35 = vmul.f32 %v4347_v30, %v154_v12  ;;  %v4354_v36 = vadd.f32 1e-05, %v147_v26  ;;  %v4358_v40 = vadd.f32 1e-05, %v145_v27 }
 0x106   :  { %v4356_v37 = vpop.eup %3878  ;;  %v162_v38 = vmul.f32 %v3873_v13, %v161_v32  ;;  %v188_v39 = vmul.f32 %v3877_v33, %v152_v15  ;;  %vm214_vm10 = vweird.f32 %v4347_v30  ;;  %vm194_vm11 = vweird.f32 %v3877_v33 }
 0x107   :  { %v186_v45 = vsel %vm4349_vm4, %v3871_v11, %v182_v34  ;;  %v209_v47 = vmul.f32 %v4347_v30, %v208_v35  ;;  %v168_v48 = vmul.f32 %v4356_v37, %v4342_v16  ;;  %3880 = vrsqrt.f32 %v4354_v36  ;;  %vm4389_vm12 = vmor %vm213_vm8, %vm214_vm10 }
 0x108   :  { %v166_v49 = vsel %vm4362_vm7, %v3873_v13, %v162_v38  ;;  %v189_v50 = vmul.f32 %v3877_v33, %v188_v39  ;;  %3882 = vrsqrt.f32 %v4358_v40  ;;  %v239_v60 = vmul.f32 %v186_v45, %v4291_v28  ;;  %vm4397_vm13 = vmor %vm193_vm9, %vm194_vm11 }
 0x109   :  { %v210_v52 = vmul.f32 0.5, %v209_v47  ;;  %v169_v53 = vmul.f32 %v4356_v37, %v168_v48  ;;  %v237_v57 = vmul.f32 %v166_v49, %v4293_v29  ;;  %vm174_vm14 = vweird.f32 %v4356_v37 }
 0x10a   :  { %v190_v54 = vmul.f32 0.5, %v189_v50  ;;  %v140_v55 = vpop.xlane.xlu0 %139  ;;  %v250_v29 = vmul.f32 %v4375_v51, %v239_v60  ;;  %vm4416_vm1 = vmor %vm173_vm15, %vm174_vm14  ;;  %vm223_vm2 = vweird.f32 %v4354_v36  ;;  %vm203_vm4 = vweird.f32 %v4358_v40 }
 0x10b   :  { %v211_v61 = vsub.f32 1.5, %v210_v52  ;;  %v170_v62 = vmul.f32 0.5, %v169_v53  ;;  %v148_v63 = vmul.f32 %v140_v55, %v4287_v22  ;;  %v248_v2 = vmul.f32 %v4375_v51, %v237_v57 }
 0x10c   :  { %v191_v1 = vsub.f32 1.5, %v190_v54  ;;  %v4406_v9 = vadd.f32 %v4384_v59, %v250_v29 }
 0x10d   :  { %v212_v3 = vmul.f32 %v4347_v30, %v211_v61  ;;  %v171_v28 = vsub.f32 1.5, %v170_v62  ;;  %v156_v5 = vadd.f32 1e-05, %v148_v63  ;;  %v3881_v6 = vpop.eup %3880  ;;  %v4403_v8 = vadd.f32 %v4384_v59, %v248_v2 }
 0x10e   :  { %v192_v7 = vmul.f32 %v3877_v33, %v191_v1  ;;  %v3883_v10 = vpop.eup %3882  ;;  %v218_v13 = vmul.f32 %v3881_v6, %v4354_v36  ;;  %v277_v21 = vsel %vm61_vm0, %v4406_v9, 0.0  ;;  %vm224_vm3 = vweird.f32 %v3881_v6 }
 0x10f   :  { %v216_v11 = vsel %vm4389_vm12, %v4347_v30, %v212_v3  ;;  %v172_v12 = vmul.f32 %v4356_v37, %v171_v28  ;;  %v198_v17 = vmul.f32 %v3883_v10, %v4358_v40  ;;  %3884 = vrsqrt.f32 %v156_v5  ;;  %278 = vadd.xlane.f32.xlu0 %v277_v21  ;;  %vm4438_vm6 = vmor %vm223_vm2, %vm224_vm3 }
 0x110   :  { %v196_v14 = vsel %vm4397_vm13, %v3877_v33, %v192_v7  ;;  %v219_v19 = vmul.f32 %v3881_v6, %v218_v13  ;;  %v271_v16 = vsel %vm61_vm0, %v4403_v8, 0.0  ;;  %v242_v24 = vmul.f32 %v216_v11, %v4305_v41 }
 0x111   :  { %v176_v18 = vsel %vm4416_vm1, %v4356_v37, %v172_v12  ;;  %v199_v20 = vmul.f32 %v3883_v10, %v198_v17  ;;  %272 = vadd.xlane.f32.xlu1 %v271_v16  ;;  %v240_v23 = vmul.f32 %v196_v14, %v4307_v42  ;;  %vm204_vm5 = vweird.f32 %v3883_v10 }
 0x112   :  { %v220_v25 = vmul.f32 0.5, %v219_v19  ;;  %v238_v26 = vmul.f32 %v176_v18, %v4311_v44  ;;  %v253_v31 = vmul.f32 %v4375_v51, %v242_v24  ;;  %vm4450_vm7 = vmor %vm203_vm4, %vm204_vm5  ;;  %vm233_vm8 = vweird.f32 %v156_v5 }
 0x113   :  { %v200_v27 = vmul.f32 0.5, %v199_v20  ;;  %v251_v30 = vmul.f32 %v4375_v51, %v240_v23 }
 0x114   :  { %v221_v32 = vsub.f32 1.5, %v220_v25  ;;  %v249_v33 = vmul.f32 %v4375_v51, %v238_v26  ;;  %v4446_v44 = vadd.f32 %v4384_v59, %v253_v31 }
 0x115   :  { %v3885_v34 = vpop.eup %3884  ;;  %v201_v42 = vsub.f32 1.5, %v200_v27  ;;  %v4443_v35 = vadd.f32 %v4384_v59, %v251_v30 }
 0x116   :  { %v222_v37 = vmul.f32 %v3881_v6, %v221_v32  ;;  %v228_v39 = vmul.f32 %v3885_v34, %v156_v5  ;;  %v4455_v36 = vadd.f32 %v4384_v59, %v249_v33  ;;  %v286_v47 = vsel %vm61_vm0, %v4446_v44, 0.0 }
 0x117   :  { %v202_v45 = vmul.f32 %v3883_v10, %v201_v42  ;;  %v280_v46 = vsel %vm61_vm0, %v4443_v35, 0.0  ;;  %vm234_vm9 = vweird.f32 %v3885_v34  ;;  %287 = vadd.xlane.f32.xlu0 %v286_v47 }
 0x118   :  { %v226_v48 = vsel %vm4438_vm6, %v3881_v6, %v222_v37  ;;  %v229_v49 = vmul.f32 %v3885_v34, %v228_v39  ;;  %v274_v40 = vsel %vm61_vm0, %v4455_v36, 0.0  ;;  %vm235_vm10 = vmor %vm233_vm8, %vm234_vm9 }
 0x119   :  { %v206_v50 = vsel %vm4450_vm7, %v3883_v10, %v202_v45  ;;  %281 = vadd.xlane.f32.xlu1 %v280_v46  ;;  %275 = vadd.xlane.f32.xlu2 %v274_v40  ;;  %v243_v52 = vmul.f32 %v226_v48, %v4326_v56 }
 0x11a   :  { %v230_v53 = vmul.f32 0.5, %v229_v49  ;;  %v241_v54 = vmul.f32 %v206_v50, %v4309_v43 }
 0x11b   :  { %v254_v55 = vmul.f32 %v4375_v51, %v243_v52 }
 0x11c   :  { %v231_v57 = vsub.f32 1.5, %v230_v53  ;;  %v252_v60 = vmul.f32 %v4375_v51, %v241_v54 }
 0x11d   :  { %v4472_v61 = vadd.f32 %v4384_v59, %v254_v55 }
 0x11e   :  { %v232_v62 = vmul.f32 %v3885_v34, %v231_v57  ;;  %v4475_v63 = vadd.f32 %v4384_v59, %v252_v60  ;;  %v3788_v57 = vld [vmem:[%s6140_s4 + $0x8] sm:$0xff] }
 0x11f   :  { %v289_v56 = vsel %vm61_vm0, %v4472_v61, 0.0  ;;  %599 = vmatpush.bf16.msra.mxu0 %v3788_v57  ;;  %3831 = vmatpush.bf16.msra.mxu1 %v3788_v57 }
 0x120   :  { %v236_v0 = vsel %vm235_vm10, %v3885_v34, %v232_v62  ;;  %v283_v43 = vsel %vm61_vm0, %v4475_v63, 0.0  ;;  %3832 = vmatpush.bf16.msra.mxu3 %v3788_v57 }
 0x121   :  { %290 = vadd.xlane.f32.xlu1 %v289_v56  ;;  %284 = vadd.xlane.f32.xlu2 %v283_v43  ;;  %v244_v1 = vmul.f32 %v236_v0, %v4329_v58 }
 0x123   :  { %v255_v2 = vmul.f32 %v4375_v51, %v244_v1 }
 0x125   :  { %v4484_v29 = vadd.f32 %v4384_v59, %v255_v2  ;;  %v3787_v2 = vld [vmem:[%s6140_s4] sm:$0xff] }
 0x126   :  { %600 = vmatpush.bf16.msra.mxu0 %v3787_v2  ;;  %3833 = vmatpush.bf16.msra.mxu1 %v3787_v2 }
 0x127   :  { %v292_v3 = vsel %vm61_vm0, %v4484_v29, 0.0  ;;  %3834 = vmatpush.bf16.msra.mxu3 %v3787_v2  ;;  %v4618_v2 = vld [vmem:[%s6139_s3 + $0x1] ss:$0 sm:$0xff] }
 0x129   :  { %293 = vadd.xlane.f32.xlu2 %v292_v3 }
 0x182   :  { %v279_v5 = vpop.xlane.xlu0 %278 }
 0x183   :  { %v297_v6 = vmul.f32 %v279_v5, %v4287_v22 }
 0x184   :  { %v273_v4 = vpop.xlane.xlu1 %272 }
 0x185   :  { %v295_v28 = vmul.f32 %v273_v4, %v4287_v22  ;;  %v4494_v58 = vsub.f32 %v4406_v9, %v297_v6 }
 0x187   :  { %v4491_v7 = vsub.f32 %v4403_v8, %v295_v28  ;;  %v313_v59 = vmul.f32 %v4494_v58, %v4494_v58 }
 0x189   :  { %v311_v51 = vmul.f32 %v4491_v7, %v4491_v7  ;;  %v325_v13 = vsel %vm61_vm0, %v313_v59, 0.0 }
 0x18a   :  { %326 = vadd.xlane.f32.xlu2 %v325_v13  ;;  %v288_v17 = vpop.xlane.xlu0 %287 }
 0x18b   :  { %v319_v10 = vsel %vm61_vm0, %v311_v51, 0.0  ;;  %v300_v18 = vmul.f32 %v288_v17, %v4287_v22 }
 0x18c   :  { %v282_v11 = vpop.xlane.xlu1 %281  ;;  %320 = vadd.xlane.f32.xlu0 %v319_v10  ;;  %v276_v12 = vpop.xlane.xlu2 %275 }
 0x18d   :  { %v298_v14 = vmul.f32 %v282_v11, %v4287_v22  ;;  %v296_v15 = vmul.f32 %v276_v12, %v4287_v22  ;;  %v4512_v20 = vsub.f32 %v4446_v44, %v300_v18 }
 0x18f   :  { %v4506_v19 = vsub.f32 %v4443_v35, %v298_v14  ;;  %v4509_v16 = vsub.f32 %v4455_v36, %v296_v15  ;;  %v316_v24 = vmul.f32 %v4512_v20, %v4512_v20 }
 0x191   :  { %v314_v21 = vmul.f32 %v4506_v19, %v4506_v19  ;;  %v312_v23 = vmul.f32 %v4509_v16, %v4509_v16  ;;  %v334_v31 = vsel %vm61_vm0, %v316_v24, 0.0 }
 0x192   :  { %335 = vadd.xlane.f32.xlu2 %v334_v31 }
 0x193   :  { %v328_v25 = vsel %vm61_vm0, %v314_v21, 0.0  ;;  %v322_v26 = vsel %vm61_vm0, %v312_v23, 0.0 }
 0x194   :  { %329 = vadd.xlane.f32.xlu0 %v328_v25  ;;  %v291_v27 = vpop.xlane.xlu1 %290  ;;  %323 = vadd.xlane.f32.xlu1 %v322_v26  ;;  %v285_v30 = vpop.xlane.xlu2 %284 }
 0x195   :  { %v301_v32 = vmul.f32 %v291_v27, %v4287_v22  ;;  %v299_v33 = vmul.f32 %v285_v30, %v4287_v22 }
 0x197   :  { %v4526_v34 = vsub.f32 %v4472_v61, %v301_v32  ;;  %v4529_v41 = vsub.f32 %v4475_v63, %v299_v33  ;;  %v4581_v33 = vld [vmem:[%s6138_s2 + $0x2] ss:$0 sm:$0xff] }
 0x199   :  { %v317_v42 = vmul.f32 %v4526_v34, %v4526_v34  ;;  %v315_v37 = vmul.f32 %v4529_v41, %v4529_v41 }
 0x19b   :  { %v337_v38 = vsel %vm61_vm0, %v317_v42, 0.0  ;;  %v331_v39 = vsel %vm61_vm0, %v315_v37, 0.0 }
 0x19c   :  { %338 = vadd.xlane.f32.xlu0 %v337_v38  ;;  %332 = vadd.xlane.f32.xlu1 %v331_v39  ;;  %v294_v45 = vpop.xlane.xlu2 %293 }
 0x19d   :  { %v302_v46 = vmul.f32 %v294_v45, %v4287_v22 }
 0x19f   :  { %v4539_v47 = vsub.f32 %v4484_v29, %v302_v46 }
 0x1a1   :  { %v318_v48 = vmul.f32 %v4539_v47, %v4539_v47 }
 0x1a3   :  { %v340_v49 = vsel %vm61_vm0, %v318_v48, 0.0 }
 0x1a4   :  { %341 = vadd.xlane.f32.xlu1 %v340_v49 }
 0x1fd   :  { %v327_v50 = vpop.xlane.xlu2 %326 }
 0x1fe   :  { %v345_v53 = vmul.f32 %v327_v50, %v4287_v22  ;;  %v4600_v50 = vld [vmem:[%s6138_s2 + $0x3] ss:$0 sm:$0xff] }
 0x1ff   :  { %v321_v40 = vpop.xlane.xlu0 %320 }
 0x200   :  { %v343_v52 = vmul.f32 %v321_v40, %v4287_v22  ;;  %v353_v55 = vadd.f32 1e-05, %v345_v53 }
 0x202   :  { %v351_v54 = vadd.f32 1e-05, %v343_v52  ;;  %vm385_vm14 = vweird.f32 %v353_v55 }
 0x204   :  { %3886 = vrsqrt.f32 %v351_v54  ;;  %vm365_vm13 = vweird.f32 %v351_v54 }
 0x205   :  { %3888 = vrsqrt.f32 %v353_v55  ;;  %v336_v0 = vpop.xlane.xlu2 %335 }
 0x206   :  { %v348_v1 = vmul.f32 %v336_v0, %v4287_v22 }
 0x207   :  { %v324_v60 = vpop.xlane.xlu1 %323  ;;  %v330_v62 = vpop.xlane.xlu0 %329 }
 0x208   :  { %v344_v56 = vmul.f32 %v324_v60, %v4287_v22  ;;  %v346_v43 = vmul.f32 %v330_v62, %v4287_v22  ;;  %v4559_v51 = vadd.f32 1e-05, %v348_v1 }
 0x20a   :  { %v3887_v3 = vpop.eup %3886  ;;  %v4555_v4 = vadd.f32 1e-05, %v344_v56  ;;  %v4557_v28 = vadd.f32 1e-05, %v346_v43  ;;  %vm415_vm7 = vweird.f32 %v4559_v51 }
 0x20b   :  { %v3889_v5 = vpop.eup %3888  ;;  %v360_v6 = vmul.f32 %v3887_v3, %v351_v54  ;;  %vm366_vm11 = vweird.f32 %v3887_v3 }
 0x20c   :  { %v380_v59 = vmul.f32 %v3889_v5, %v353_v55  ;;  %3890 = vrsqrt.f32 %v4555_v4  ;;  %vm386_vm12 = vweird.f32 %v3889_v5  ;;  %vm367_vm15 = vmor %vm365_vm13, %vm366_vm11  ;;  %vm375_vm3 = vweird.f32 %v4555_v4 }
 0x20d   :  { %v361_v10 = vmul.f32 %v3887_v3, %v360_v6  ;;  %3892 = vrsqrt.f32 %v4559_v51  ;;  %vm4586_vm1 = vmor %vm385_vm14, %vm386_vm12  ;;  %vm395_vm8 = vweird.f32 %v4557_v28 }
 0x20e   :  { %v381_v11 = vmul.f32 %v3889_v5, %v380_v59  ;;  %3894 = vrsqrt.f32 %v4557_v28  ;;  %v4635_v59 = vld [vmem:[%s6141_s1] sm:$0xff] }
 0x20f   :  { %v362_v12 = vmul.f32 0.5, %v361_v10  ;;  %v333_v13 = vpop.xlane.xlu1 %332  ;;  %v339_v14 = vpop.xlane.xlu0 %338  ;;  %v4640_v10 = vld [vmem:[%s6139_s3] ss:$0 sm:$0xff] }
 0x210   :  { %v382_v15 = vmul.f32 0.5, %v381_v11  ;;  %v347_v17 = vmul.f32 %v333_v13, %v4287_v22  ;;  %v349_v18 = vmul.f32 %v339_v14, %v4287_v22  ;;  %v1618_v13 = vld [vmem:[%s6141_s1 + $0x18] sm:$0xff]  ;;  %v1619_v14 = vld [vmem:[%s6141_s1 + $0x20] sm:$0xff] }
 0x211   :  { %v363_v21 = vsub.f32 1.5, %v362_v12  ;;  %v1617_v12 = vld [vmem:[%s6141_s1 + $0x10] sm:$0xff]  ;;  %3461 = vst.msk [vmem:[%s6143_s15 + $0x18] sm:$0xff] %vm61_vm0, %v1618_v13 }
 0x212   :  { %v4566_v23 = vpop.eup %3890  ;;  %v383_v24 = vsub.f32 1.5, %v382_v15  ;;  %v4568_v25 = vadd.f32 1e-05, %v347_v17  ;;  %v4574_v31 = vadd.f32 1e-05, %v349_v18  ;;  %3460 = vst.msk [vmem:[%s6143_s15 + $0x10] sm:$0xff] %vm61_vm0, %v1617_v12 }
 0x213   :  { %v4570_v26 = vpop.eup %3892  ;;  %v364_v27 = vmul.f32 %v3887_v3, %v363_v21  ;;  %v370_v30 = vmul.f32 %v4566_v23, %v4555_v4  ;;  %vm376_vm2 = vweird.f32 %v4566_v23  ;;  %3462 = vst.msk [vmem:[%s6143_s15 + $0x20] sm:$0xff] %vm61_vm0, %v1619_v14 }
 0x214   :  { %v4576_v32 = vpop.eup %3894  ;;  %v384_v42 = vmul.f32 %v3889_v5, %v383_v24  ;;  %v410_v37 = vmul.f32 %v4570_v26, %v4559_v51  ;;  %3896 = vrsqrt.f32 %v4568_v25  ;;  %vm416_vm4 = vweird.f32 %v4570_v26  ;;  %vm4626_vm6 = vmor %vm375_vm3, %vm376_vm2 }
 0x215   :  { %v368_v39 = vsel %vm367_vm15, %v3887_v3, %v364_v27  ;;  %v371_v45 = vmul.f32 %v4566_v23, %v370_v30  ;;  %v390_v46 = vmul.f32 %v4576_v32, %v4557_v28  ;;  %3898 = vrsqrt.f32 %v4574_v31  ;;  %vm4661_vm9 = vmor %vm415_vm7, %vm416_vm4  ;;  %v3798_v27 = vld [vmem:[%s6142_s6 + $0x8] sm:$0xff] }
 0x216   :  { %v388_v48 = vsel %vm4586_vm1, %v3889_v5, %v384_v42  ;;  %v439_v49 = vmul.f32 %v368_v39, %v4491_v7  ;;  %v411_v40 = vmul.f32 %v4570_v26, %v410_v37  ;;  %vm396_vm5 = vweird.f32 %v4576_v32  ;;  %668 = vmatpush.bf16.msrb.mxu1 %v3798_v27  ;;  %v3797_v39 = vld [vmem:[%s6142_s6] sm:$0xff] }
 0x217   :  { %v372_v52 = vmul.f32 0.5, %v371_v45  ;;  %v391_v53 = vmul.f32 %v4576_v32, %v390_v46  ;;  %v342_v54 = vpop.xlane.xlu1 %341  ;;  %v441_v60 = vmul.f32 %v388_v48, %v4494_v58  ;;  %vm397_vm10 = vmor %vm395_vm8, %vm396_vm5  ;;  %vm405_vm11 = vweird.f32 %v4568_v25 }
 0x218   :  { %v450_v55 = vmul.f32 %v4581_v33, %v439_v49  ;;  %v412_v57 = vmul.f32 0.5, %v411_v40  ;;  %v350_v7 = vmul.f32 %v342_v54, %v4287_v22  ;;  %v515_v42 = vmul.f32 %v4618_v2, %v4635_v59 }
 0x219   :  { %v373_v62 = vsub.f32 1.5, %v372_v52  ;;  %v392_v56 = vmul.f32 0.5, %v391_v53  ;;  %v452_v17 = vmul.f32 %v4581_v33, %v441_v60  ;;  %vm425_vm12 = vweird.f32 %v4574_v31 }
 0x21a   :  { %v4609_v0 = vpop.eup %3896  ;;  %v413_v43 = vsub.f32 1.5, %v412_v57  ;;  %v4613_v1 = vadd.f32 1e-05, %v350_v7  ;;  %v4621_v58 = vadd.f32 %v4600_v50, %v450_v55  ;;  %669 = vmatpush.bf16.msrb.mxu1 %v3797_v39 }
 0x21b   :  { %v374_v3 = vmul.f32 %v4566_v23, %v373_v62  ;;  %v393_v5 = vsub.f32 1.5, %v392_v56  ;;  %v400_v6 = vmul.f32 %v4609_v0, %v4568_v25  ;;  %v3899_v15 = vpop.eup %3898  ;;  %vm406_vm13 = vweird.f32 %v4609_v0 }
 0x21c   :  { %v414_v11 = vmul.f32 %v4570_v26, %v413_v43  ;;  %3900 = vrsqrt.f32 %v4613_v1  ;;  %v420_v30 = vmul.f32 %v3899_v15, %v4574_v31  ;;  %v504_v38 = vmul.f32 %v4640_v10, %v4621_v58  ;;  %vm407_vm15 = vmor %vm405_vm11, %vm406_vm13 }
 0x21d   :  { %v378_v51 = vsel %vm4626_vm6, %v4566_v23, %v374_v3  ;;  %v394_v21 = vmul.f32 %v4576_v32, %v393_v5  ;;  %v401_v24 = vmul.f32 %v4609_v0, %v400_v6  ;;  %vm426_vm14 = vweird.f32 %v3899_v15 }
 0x21e   :  { %v440_v23 = vmul.f32 %v378_v51, %v4509_v16  ;;  %v418_v16 = vsel %vm4661_vm9, %v4570_v26, %v414_v11  ;;  %v421_v46 = vmul.f32 %v3899_v15, %v420_v30  ;;  %v516_v57 = vmul.f32 %v4618_v2, %v4621_v58  ;;  %vm427_vm1 = vmor %vm425_vm12, %vm426_vm14 }
 0x21f   :  { %v398_v37 = vsel %vm397_vm10, %v4576_v32, %v394_v21  ;;  %v402_v28 = vmul.f32 0.5, %v401_v24  ;;  %v4704_v32 = vadd.f32 %v4600_v50, %v452_v17  ;;  %v444_v52 = vmul.f32 %v418_v16, %v4512_v20 }
 0x220   :  { %v451_v45 = vmul.f32 %v4581_v33, %v440_v23  ;;  %v442_v26 = vmul.f32 %v398_v37, %v4506_v19  ;;  %v422_v54 = vmul.f32 0.5, %v421_v46  ;;  %v523_v7 = vadd.f32 %v515_v42, %v504_v38  ;;  %v3842_v37 = vld [vmem:[%s6139_s3 + $0x3] ss:$0 sm:$0xff] }
 0x221   :  { %v403_v48 = vsub.f32 1.5, %v402_v28  ;;  %v506_v4 = vmul.f32 %v4640_v10, %v4704_v32  ;;  %v518_v5 = vmul.f32 %v4618_v2, %v4704_v32  ;;  %v455_v14 = vmul.f32 %v4581_v33, %v444_v52 }
 0x222   :  { %v3901_v49 = vpop.eup %3900  ;;  %v4708_v40 = vadd.f32 %v4600_v50, %v451_v45  ;;  %v453_v53 = vmul.f32 %v4581_v33, %v442_v26  ;;  %v423_v62 = vsub.f32 1.5, %v422_v54  ;;  %vm435_vm3 = vweird.f32 %v4613_v1 }
 0x223   :  { %v404_v19 = vmul.f32 %v4609_v0, %v403_v48  ;;  %v430_v55 = vmul.f32 %v3901_v49, %v4613_v1  ;;  %vm436_vm2 = vweird.f32 %v3901_v49  ;;  %v3843_v1 = vld [vmem:[%s6139_s3 + $0x2] ss:$0 sm:$0xff] }
 0x224   :  { %v4717_v60 = vadd.f32 %v4600_v50, %v453_v53  ;;  %v505_v20 = vmul.f32 %v4640_v10, %v4708_v40  ;;  %v517_v56 = vmul.f32 %v4618_v2, %v4708_v40  ;;  %v424_v25 = vmul.f32 %v3899_v15, %v423_v62  ;;  %vm437_vm4 = vmor %vm435_vm3, %vm436_vm2 }
 0x225   :  { %v408_v43 = vsel %vm407_vm15, %v4609_v0, %v404_v19  ;;  %v431_v3 = vmul.f32 %v3901_v49, %v430_v55 }
 0x226   :  { %v443_v6 = vmul.f32 %v408_v43, %v4529_v41  ;;  %v524_v11 = vadd.f32 %v516_v57, %v505_v20  ;;  %v507_v12 = vmul.f32 %v4640_v10, %v4717_v60  ;;  %v525_v0 = vadd.f32 %v517_v56, %v506_v4 }
 0x227   :  { %v432_v13 = vmul.f32 0.5, %v431_v3  ;;  %v428_v17 = vsel %vm427_vm1, %v3899_v15, %v424_v25  ;;  %v466_v15 = vadd.f32 %v4600_v50, %v455_v14  ;;  %v538_v4 = vmul.f32 %v3843_v1, %v4621_v58 }
 0x228   :  { %v531_v51 = vpack.c.bf16 %v524_v11, %v523_v7  ;;  %v526_v18 = vadd.f32 %v518_v5, %v507_v12  ;;  %v454_v21 = vmul.f32 %v4581_v33, %v443_v6  ;;  %v445_v41 = vmul.f32 %v428_v17, %v4526_v34 }
 0x229   :  { %v433_v24 = vsub.f32 1.5, %v432_v13  ;;  %v555_v45 = vmul.f32 %v3842_v37, %v466_v15  ;;  %v509_v48 = vmul.f32 %v4640_v10, %v466_v15  ;;  %v521_v52 = vmul.f32 %v4618_v2, %v466_v15 }
 0x22a   :  { %3490 = vmatmul.msk.bf16.vlgmr.msra.gmra.mxu0 %vm61_vm0, %v531_v51  ;;  %v532_v27 = vpack.c.bf16 %v526_v18, %v525_v0  ;;  %v456_v23 = vmul.f32 %v4581_v33, %v445_v41  ;;  %v465_v30 = vadd.f32 %v4600_v50, %v454_v21  ;;  %v550_v5 = vmul.f32 %v3842_v37, %v4621_v58  ;;  %v3796_v58 = vld [vmem:[%s6144_s5 + $0x38] sm:$0xff]  ;;  %v3795_v18 = vld [vmem:[%s6144_s5 + $0x30] sm:$0xff] }
 0x22b   :  { %v434_v31 = vmul.f32 %v3901_v49, %v433_v24  ;;  %v541_v12 = vmul.f32 %v3843_v1, %v4717_v60  ;;  %v551_v13 = vmul.f32 %v3842_v37, %v4708_v40  ;;  %v540_v0 = vmul.f32 %v3843_v1, %v4704_v32  ;;  %895 = vmatpush.bf16.msra.mxu2 %v3796_v58 }
 0x22c   :  { %3491 = vmatmul.msk.bf16.vlgmr.msra.gmra.mxu1 %vm61_vm0, %v532_v27  ;;  %v467_v42 = vadd.f32 %v4600_v50, %v456_v23  ;;  %v508_v38 = vmul.f32 %v4640_v10, %v465_v30  ;;  %v520_v26 = vmul.f32 %v4618_v2, %v465_v30  ;;  %v552_v14 = vmul.f32 %v3842_v37, %v4704_v32  ;;  %v3794_v32 = vld [vmem:[%s6144_s5 + $0x28] sm:$0xff] }
 0x22d   :  { %v438_v34 = vsel %vm437_vm4, %v3901_v49, %v434_v31  ;;  %v519_v49 = vmul.f32 %v4618_v2, %v4717_v60  ;;  %v559_v17 = vadd.f32 %v551_v13, %v540_v0  ;;  %v542_v21 = vmul.f32 %v3843_v1, %v465_v30  ;;  %v3793_v31 = vld [vmem:[%s6144_s5 + $0x20] sm:$0xff] }
 0x22e   :  { %v446_v16 = vmul.f32 %v438_v34, %v4539_v47  ;;  %v544_v39 = vmul.f32 %v3843_v1, %v467_v42  ;;  %v510_v47 = vmul.f32 %v4640_v10, %v467_v42  ;;  %v522_v54 = vmul.f32 %v4618_v2, %v467_v42  ;;  %v3789_v34 = vld [vmem:[%s6144_s5] sm:$0xff] }
 0x22f   :  { %v556_v19 = vmul.f32 %v3842_v37, %v467_v42  ;;  %v527_v55 = vadd.f32 %v519_v49, %v508_v38  ;;  %v528_v57 = vadd.f32 %v520_v26, %v509_v48  ;;  %v539_v2 = vmul.f32 %v3843_v1, %v4708_v40  ;;  %896 = vmatpush.bf16.msra.mxu2 %v3795_v18 }
 0x230   :  { %v457_v28 = vmul.f32 %v4581_v33, %v446_v16  ;;  %v563_v53 = vadd.f32 %v555_v45, %v544_v39  ;;  %v529_v7 = vadd.f32 %v521_v52, %v510_v47  ;;  %v560_v51 = vadd.f32 %v552_v14, %v541_v12 }
 0x231   :  { %v533_v3 = vpack.c.bf16 %v528_v57, %v527_v55  ;;  %v558_v6 = vadd.f32 %v550_v5, %v539_v2  ;;  %v554_v40 = vmul.f32 %v3842_v37, %v465_v30  ;;  %v543_v41 = vmul.f32 %v3843_v1, %v466_v15  ;;  %v3792_v30 = vld [vmem:[%s6144_s5 + $0x18] sm:$0xff]  ;;  %v3790_v15 = vld [vmem:[%s6144_s5 + $0x8] sm:$0xff] }
 0x232   :  { %v468_v46 = vadd.f32 %v4600_v50, %v457_v28  ;;  %v553_v24 = vmul.f32 %v3842_v37, %v4717_v60  ;;  %v3791_v60 = vld [vmem:[%s6144_s5 + $0x10] sm:$0xff] }
 0x233   :  { %v562_v23 = vadd.f32 %v554_v40, %v543_v41  ;;  %897 = vmatpush.bf16.msra.mxu2 %v3794_v32 }
 0x234   :  { %v511_v33 = vmul.f32 %v4640_v10, %v468_v46  ;;  %3458 = vst.msk [vmem:[%s6143_s15] sm:$0xff] %vm61_vm0, %v468_v46  ;;  %v545_v50 = vmul.f32 %v3843_v1, %v468_v46  ;;  %v549_v10 = vmul.f32 %v3842_v37, %v4635_v59  ;;  %v566_v59 = vpack.c.bf16 %v560_v51, %v559_v17 }
 0x235   :  { %v561_v27 = vadd.f32 %v553_v24, %v542_v21 }
 0x236   :  { %v530_v62 = vadd.f32 %v522_v54, %v511_v33  ;;  %v564_v20 = vadd.f32 %v556_v19, %v545_v50  ;;  %v557_v25 = vadd.f32 %v549_v10, %v538_v4 }
 0x237   :  { %v567_v42 = vpack.c.bf16 %v562_v23, %v561_v27  ;;  %898 = vmatpush.bf16.msra.mxu2 %v3793_v31 }
 0x238   :  { %v534_v56 = vpack.c.bf16 %v530_v62, %v529_v7  ;;  %v568_v43 = vpack.c.bf16 %v564_v20, %v563_v53  ;;  %v565_v11 = vpack.c.bf16 %v558_v6, %v557_v25 }
 0x23a   :  { %3493 = vmatmul.msk.bf16.vlgmr.msra.gmra.mxu3 %vm61_vm0, %v534_v56 }
 0x23b   :  { %899 = vmatpush.bf16.msra.mxu2 %v3792_v30 }
 0x23c   :  { %3492 = vmatmul.msk.bf16.gmra.mxu1 %vm61_vm0, %v533_v3 }
 0x23f   :  { %900 = vmatpush.bf16.msra.mxu2 %v3791_v60 }
 0x243   :  { %901 = vmatpush.bf16.msra.mxu2 %v3790_v15 }
 0x247   :  { %902 = vmatpush.bf16.msra.mxu2 %v3789_v34 }
 0x24c   :  { %3502 = vmatmul.msk.bf16.vlgmr.msrb.gmra.mxu1 %vm61_vm0, %v565_v11 }
 0x25c   :  { %3503 = vmatmul.msk.bf16.gmra.mxu1 %vm61_vm0, %v566_v59 }
 0x26c   :  { %3504 = vmatmul.msk.bf16.gmra.mxu1 %vm61_vm0, %v567_v42 }
 0x27c   :  { %3505 = vmatmul.msk.bf16.gmra.mxu1 %vm61_vm0, %v568_v43 }
 0x2a7   :  { %v602_v16 = vpop.f32.mrf.mxu0 }
 0x2a8   :  { %v622_v1 = vmax.f32 %v602_v16, 0.0 }
 0x2a9   :  { %v607_v37 = vpop.f32.mrf.mxu1 }
 0x2aa   :  { %v630_v39 = vmul.f32 %v622_v1, %v622_v1  ;;  %v624_v48 = vmax.f32 %v607_v37, 0.0 }
 0x2ac   :  { %v632_v53 = vmul.f32 %v624_v48, %v624_v48 }
 0x2af   :  { %v604_v28 = vpop.f32.mrf.mxu0 }
 0x2b0   :  { %v623_v38 = vmax.f32 %v604_v28, 0.0 }
 0x2b1   :  { %v609_v46 = vpop.f32.mrf.mxu1 }
 0x2b2   :  { %v631_v45 = vmul.f32 %v623_v38, %v623_v38  ;;  %v625_v47 = vmax.f32 %v609_v46, 0.0 }
 0x2b4   :  { %v843_v26 = vpack.c.bf16 %v631_v45, %v630_v39  ;;  %v633_v52 = vmul.f32 %v625_v47, %v625_v47 }
 0x2b6   :  { %903 = vmatmul.bf16.vlgmr.msra.gmra.mxu2 %v843_v26  ;;  %v844_v33 = vpack.c.bf16 %v633_v52, %v632_v53 }
 0x2b9   :  { %v612_v49 = vpop.f32.mrf.mxu1 }
 0x2ba   :  { %v626_v19 = vmax.f32 %v612_v49, 0.0 }
 0x2bc   :  { %v634_v7 = vmul.f32 %v626_v19, %v626_v19 }
 0x2bd   :  { %v617_v55 = vpop.f32.mrf.mxu3 }
 0x2be   :  { %v628_v43 = vmax.f32 %v617_v55, 0.0 }
 0x2c0   :  { %v636_v2 = vmul.f32 %v628_v43, %v628_v43 }
 0x2c1   :  { %v614_v54 = vpop.f32.mrf.mxu1 }
 0x2c2   :  { %v627_v50 = vmax.f32 %v614_v54, 0.0 }
 0x2c4   :  { %v635_v57 = vmul.f32 %v627_v50, %v627_v50 }
 0x2c5   :  { %v619_v20 = vpop.f32.mrf.mxu3 }
 0x2c6   :  { %908 = vmatmul.bf16.gmra.mxu2 %v844_v33  ;;  %v845_v62 = vpack.c.bf16 %v635_v57, %v634_v7  ;;  %v629_v56 = vmax.f32 %v619_v20, 0.0 }
 0x2c8   :  { %v637_v3 = vmul.f32 %v629_v56, %v629_v56 }
 0x2c9   :  { %v671_v4 = vpop.f32.mrf.mxu1 }
 0x2ca   :  { %v846_v10 = vpack.c.bf16 %v637_v3, %v636_v2  ;;  %v3506_v6 = vmul.f32 -1.442695, %v671_v4 }
 0x2cc   :  { %3902 = vpow2.f32 %v3506_v6 }
 0x2d1   :  { %v673_v5 = vpop.f32.mrf.mxu1 }
 0x2d2   :  { %v3507_v11 = vmul.f32 -1.442695, %v673_v5  ;;  %v3903_v12 = vpop.eup %3902 }
 0x2d3   :  { %v715_v13 = vadd.f32 1.0, %v3903_v12 }
 0x2d4   :  { %3904 = vpow2.f32 %v3507_v11 }
 0x2d5   :  { %3906 = vrcp.f32 %v715_v13  ;;  %v734_v37 = vand.u32 2147483648, %v715_v13  ;;  %vm728_vm6 = vweird.f32 %v715_v13  ;;  %v732_v28 = vand.u32 2147483647, %v715_v13 }
 0x2d6   :  { %913 = vmatmul.bf16.gmra.mxu2 %v845_v62 }
 0x2d7   :  { %v735_v46 = vor.u32 1.1754944e-38, %v734_v37  ;;  %vm733_vm8 = vcmp.eq.f32.partialorder %v732_v28, 8.507059e+37 }
 0x2d9   :  { %v676_v25 = vpop.f32.mrf.mxu1 }
 0x2da   :  { %v3508_v14 = vmul.f32 -1.442695, %v676_v25  ;;  %v3905_v17 = vpop.eup %3904 }
 0x2db   :  { %v716_v51 = vadd.f32 1.0, %v3905_v17  ;;  %v3907_v59 = vpop.eup %3906 }
 0x2dc   :  { %3908 = vpow2.f32 %v3508_v14  ;;  %v724_v40 = vmul.f32 %v3907_v59, %v715_v13  ;;  %vm729_vm5 = vweird.f32 %v3907_v59 }
 0x2dd   :  { %3910 = vrcp.f32 %v716_v51  ;;  %vm730_vm7 = vmor %vm728_vm6, %vm729_vm5  ;;  %v749_v19 = vand.u32 2147483648, %v716_v51  ;;  %vm743_vm10 = vweird.f32 %v716_v51  ;;  %v747_v7 = vand.u32 2147483647, %v716_v51 }
 0x2de   :  { %v725_v41 = vsub.f32 1.0, %v724_v40 }
 0x2df   :  { %v750_v2 = vor.u32 1.1754944e-38, %v749_v19  ;;  %vm748_vm12 = vcmp.eq.f32.partialorder %v747_v7, 8.507059e+37 }
 0x2e0   :  { %v726_v31 = vmul.f32 %v3907_v59, %v725_v41 }
 0x2e1   :  { %v678_v0 = vpop.f32.mrf.mxu1 }
 0x2e2   :  { %v3509_v58 = vmul.f32 -1.442695, %v678_v0  ;;  %v3909_v21 = vpop.eup %3908  ;;  %v727_v15 = vadd.f32 %v3907_v59, %v726_v31 }
 0x2e3   :  { %v4807_v32 = vadd.f32 1.0, %v3909_v21  ;;  %v3911_v24 = vpop.eup %3910 }
 0x2e4   :  { %3912 = vpow2.f32 %v3509_v58  ;;  %v739_v42 = vmul.f32 %v3911_v24, %v716_v51  ;;  %v731_v39 = vsel %vm730_vm7, %v3907_v59, %v727_v15  ;;  %vm744_vm9 = vweird.f32 %v3911_v24 }
 0x2e5   :  { %3914 = vrcp.f32 %v4807_v32  ;;  %v736_v49 = vsel %vm733_vm8, %v735_v46, %v731_v39  ;;  %vm745_vm11 = vmor %vm743_vm10, %vm744_vm9  ;;  %v764_v12 = vand.u32 2147483648, %v4807_v32  ;;  %vm758_vm14 = vweird.f32 %v4807_v32 }
 0x2e6   :  { %918 = vmatmul.bf16.gmra.mxu2 %v846_v10  ;;  %v740_v34 = vsub.f32 1.0, %v739_v42  ;;  %v762_v0 = vand.u32 2147483647, %v4807_v32 }
 0x2e8   :  { %v741_v45 = vmul.f32 %v3911_v24, %v740_v34  ;;  %vm763_vm1 = vcmp.eq.f32.partialorder %v762_v0, 8.507059e+37 }
 0x2e9   :  { %v681_v18 = vpop.f32.mrf.mxu1 }
 0x2ea   :  { %v3510_v27 = vmul.f32 -1.442695, %v681_v18  ;;  %v3913_v23 = vpop.eup %3912  ;;  %v742_v33 = vadd.f32 %v3911_v24, %v741_v45  ;;  %v765_v18 = vor.u32 1.1754944e-38, %v764_v12 }
 0x2eb   :  { %v4810_v60 = vadd.f32 1.0, %v3913_v23  ;;  %v4812_v16 = vpop.eup %3914 }
 0x2ec   :  { %3916 = vpow2.f32 %v3510_v27  ;;  %v754_v26 = vmul.f32 %v4812_v16, %v4807_v32  ;;  %v746_v56 = vsel %vm745_vm11, %v3911_v24, %v742_v33  ;;  %vm759_vm13 = vweird.f32 %v4812_v16 }
 0x2ed   :  { %3918 = vrcp.f32 %v4810_v60  ;;  %v751_v10 = vsel %vm748_vm12, %v750_v2, %v746_v56  ;;  %vm760_vm15 = vmor %vm758_vm14, %vm759_vm13  ;;  %v779_v23 = vand.u32 2147483648, %v4810_v60  ;;  %vm773_vm3 = vweird.f32 %v4810_v60 }
 0x2ee   :  { %v755_v54 = vsub.f32 1.0, %v754_v26  ;;  %v777_v42 = vand.u32 2147483647, %v4810_v60 }
 0x2ef   :  { %v780_v37 = vor.u32 1.1754944e-38, %v779_v23 }
 0x2f0   :  { %v756_v43 = vmul.f32 %v4812_v16, %v755_v54  ;;  %vm778_vm5 = vcmp.eq.f32.partialorder %v777_v42, 8.507059e+37 }
 0x2f1   :  { %v683_v30 = vpop.f32.mrf.mxu1 }
 0x2f2   :  { %v3511_v1 = vmul.f32 -1.442695, %v683_v30  ;;  %v3917_v38 = vpop.eup %3916  ;;  %v757_v6 = vadd.f32 %v4812_v16, %v756_v43 }
 0x2f3   :  { %v4817_v47 = vadd.f32 1.0, %v3917_v38  ;;  %v3919_v50 = vpop.eup %3918 }
 0x2f4   :  { %3920 = vpow2.f32 %v3511_v1  ;;  %v769_v3 = vmul.f32 %v3919_v50, %v4810_v60  ;;  %v761_v51 = vsel %vm760_vm15, %v4812_v16, %v757_v6  ;;  %vm774_vm2 = vweird.f32 %v3919_v50 }
 0x2f5   :  { %3922 = vrcp.f32 %v4817_v47  ;;  %v766_v21 = vsel %vm763_vm1, %v765_v18, %v761_v51  ;;  %vm775_vm4 = vmor %vm773_vm3, %vm774_vm2  ;;  %v794_v45 = vand.u32 2147483648, %v4817_v47  ;;  %vm788_vm7 = vweird.f32 %v4817_v47 }
 0x2f6   :  { %v770_v25 = vsub.f32 1.0, %v769_v3  ;;  %v792_v46 = vand.u32 2147483647, %v4817_v47 }
 0x2f7   :  { %v795_v33 = vor.u32 1.1754944e-38, %v794_v45 }
 0x2f8   :  { %v771_v59 = vmul.f32 %v3919_v50, %v770_v25  ;;  %vm793_vm9 = vcmp.eq.f32.partialorder %v792_v46, 8.507059e+37 }
 0x2f9   :  { %v686_v48 = vpop.f32.mrf.mxu1 }
 0x2fa   :  { %v3512_v55 = vmul.f32 -1.442695, %v686_v48  ;;  %v3921_v62 = vpop.eup %3920  ;;  %v772_v41 = vadd.f32 %v3919_v50, %v771_v59 }
 0x2fb   :  { %v3923_v11 = vpop.eup %3922 }
 0x2fc   :  { %3924 = vpow2.f32 %v3512_v55  ;;  %v784_v58 = vmul.f32 %v3923_v11, %v4817_v47  ;;  %v776_v15 = vsel %vm775_vm4, %v3919_v50, %v772_v41  ;;  %vm789_vm6 = vweird.f32 %v3923_v11 }
 0x2fd   :  { %v781_v1 = vsel %vm778_vm5, %v780_v37, %v776_v15  ;;  %vm790_vm8 = vmor %vm788_vm7, %vm789_vm6 }
 0x2fe   :  { %v785_v24 = vsub.f32 1.0, %v784_v58 }
 0x300   :  { %v786_v34 = vmul.f32 %v3923_v11, %v785_v24 }
 0x301   :  { %v688_v59 = vpop.f32.mrf.mxu1 }
 0x302   :  { %v3925_v14 = vpop.eup %3924  ;;  %v787_v38 = vadd.f32 %v3923_v11, %v786_v34  ;;  %v3513_v58 = vmul.f32 -1.442695, %v688_v59 }
 0x339   :  { %v904_v52 = vpop.f32.mrf.mxu2 }
 0x33a   :  { %v924_v53 = vmul.f32 %v904_v52, %v736_v49  ;;  %v791_v49 = vsel %vm790_vm8, %v3923_v11, %v787_v38 }
 0x33b   :  { %v796_v54 = vsel %vm793_vm9, %v795_v33, %v791_v49 }
 0x33c   :  { %v4820_v57 = vadd.f32 %v924_v53, %v4403_v8  ;;  %v4827_v8 = vadd.f32 1.0, %v3921_v62 }
 0x33e   :  { %v944_v20 = vsel %vm61_vm0, %v4820_v57, 0.0  ;;  %3926 = vrcp.f32 %v4827_v8  ;;  %v809_v7 = vand.u32 2147483648, %v4827_v8  ;;  %vm803_vm11 = vweird.f32 %v4827_v8 }
 0x33f   :  { %945 = vadd.xlane.f32.xlu2 %v944_v20  ;;  %v807_v62 = vand.u32 2147483647, %v4827_v8 }
 0x340   :  { %v810_v3 = vor.u32 1.1754944e-38, %v809_v7 }
 0x341   :  { %v906_v4 = vpop.f32.mrf.mxu2  ;;  %vm808_vm13 = vcmp.eq.f32.partialorder %v807_v62, 8.507059e+37 }
 0x342   :  { %v925_v5 = vmul.f32 %v906_v4, %v751_v10 }
 0x344   :  { %v4833_v13 = vadd.f32 %v925_v5, %v4455_v36  ;;  %v4842_v36 = vadd.f32 1.0, %v3925_v14  ;;  %v3927_v27 = vpop.eup %3926 }
 0x345   :  { %v799_v16 = vmul.f32 %v3927_v27, %v4827_v8  ;;  %vm804_vm10 = vweird.f32 %v3927_v27 }
 0x346   :  { %v947_v17 = vsel %vm61_vm0, %v4833_v13, 0.0  ;;  %3928 = vrcp.f32 %v4842_v36  ;;  %vm805_vm12 = vmor %vm803_vm11, %vm804_vm10  ;;  %vm818_vm15 = vweird.f32 %v4842_v36  ;;  %v822_v8 = vand.u32 2147483647, %v4842_v36 }
 0x347   :  { %948 = vadd.xlane.f32.xlu0 %v947_v17  ;;  %v800_v39 = vsub.f32 1.0, %v799_v16  ;;  %3930 = vpow2.f32 %v3513_v58 }
 0x348   :  { %vm823_vm2 = vcmp.eq.f32.partialorder %v822_v8, 8.507059e+37 }
 0x349   :  { %v909_v40 = vpop.f32.mrf.mxu2  ;;  %v801_v52 = vmul.f32 %v3927_v27, %v800_v39 }
 0x34a   :  { %v926_v32 = vmul.f32 %v909_v40, %v766_v21 }
 0x34c   :  { %v4846_v31 = vadd.f32 %v926_v32, %v4406_v9  ;;  %v3929_v60 = vpop.eup %3928 }
 0x34d   :  { %v814_v53 = vmul.f32 %v3929_v60, %v4842_v36  ;;  %vm819_vm14 = vweird.f32 %v3929_v60  ;;  %v3931_v18 = vpop.eup %3930 }
 0x34e   :  { %v950_v30 = vsel %vm61_vm0, %v4846_v31, 0.0  ;;  %vm820_vm1 = vmor %vm818_vm15, %vm819_vm14 }
 0x34f   :  { %951 = vadd.xlane.f32.xlu1 %v950_v30  ;;  %v815_v55 = vsub.f32 1.0, %v814_v53 }
 0x351   :  { %v911_v9 = vpop.f32.mrf.mxu2  ;;  %v816_v43 = vmul.f32 %v3929_v60, %v815_v55 }
 0x352   :  { %v927_v28 = vmul.f32 %v911_v9, %v781_v1 }
 0x353   :  { %v817_v5 = vadd.f32 %v3929_v60, %v816_v43 }
 0x354   :  { %v4856_v26 = vadd.f32 %v927_v28, %v4443_v35  ;;  %v802_v35 = vadd.f32 %v3927_v27, %v801_v52 }
 0x355   :  { %v821_v11 = vsel %vm820_vm1, %v3929_v60, %v817_v5 }
 0x356   :  { %v953_v48 = vsel %vm61_vm0, %v4856_v26, 0.0  ;;  %v806_v56 = vsel %vm805_vm12, %v3927_v27, %v802_v35 }
 0x357   :  { %954 = vadd.xlane.f32.xlu2 %v953_v48  ;;  %v811_v2 = vsel %vm808_vm13, %v810_v3, %v806_v56 }
 0x359   :  { %v914_v50 = vpop.f32.mrf.mxu2 }
 0x35a   :  { %v928_v19 = vmul.f32 %v914_v50, %v796_v54 }
 0x35c   :  { %v4865_v47 = vadd.f32 %v928_v19, %v4475_v63  ;;  %v824_v63 = vand.u32 2147483648, %v4842_v36  ;;  %v722_v36 = vadd.f32 1.0, %v3931_v18 }
 0x35e   :  { %v956_v20 = vsel %vm61_vm0, %v4865_v47, 0.0  ;;  %v825_v12 = vor.u32 1.1754944e-38, %v824_v63  ;;  %3932 = vrcp.f32 %v722_v36  ;;  %v839_v27 = vand.u32 2147483648, %v722_v36 }
 0x35f   :  { %957 = vadd.xlane.f32.xlu0 %v956_v20  ;;  %vm833_vm4 = vweird.f32 %v722_v36 }
 0x360   :  { %v826_v0 = vsel %vm823_vm2, %v825_v12, %v821_v11  ;;  %v840_v34 = vor.u32 1.1754944e-38, %v839_v27 }
 0x361   :  { %v916_v10 = vpop.f32.mrf.mxu2 }
 0x362   :  { %v929_v4 = vmul.f32 %v916_v10, %v811_v2 }
 0x364   :  { %v4873_v6 = vadd.f32 %v929_v4, %v4446_v44  ;;  %v3933_v21 = vpop.eup %3932 }
 0x365   :  { %v829_v40 = vmul.f32 %v3933_v21, %v722_v36  ;;  %vm834_vm3 = vweird.f32 %v3933_v21 }
 0x366   :  { %v959_v25 = vsel %vm61_vm0, %v4873_v6, 0.0  ;;  %vm835_vm5 = vmor %vm833_vm4, %vm834_vm3 }
 0x367   :  { %960 = vadd.xlane.f32.xlu1 %v959_v25  ;;  %v830_v32 = vsub.f32 1.0, %v829_v40 }
 0x369   :  { %v919_v14 = vpop.f32.mrf.mxu2  ;;  %v831_v41 = vmul.f32 %v3933_v21, %v830_v32 }
 0x36a   :  { %v930_v17 = vmul.f32 %v919_v14, %v826_v0 }
 0x36b   :  { %v832_v24 = vadd.f32 %v3933_v21, %v831_v41 }
 0x36c   :  { %v4880_v51 = vadd.f32 %v930_v17, %v4472_v61  ;;  %v837_v61 = vand.u32 2147483647, %v722_v36 }
 0x36d   :  { %v836_v30 = vsel %vm835_vm5, %v3933_v21, %v832_v24 }
 0x36e   :  { %v962_v44 = vsel %vm61_vm0, %v4880_v51, 0.0  ;;  %vm838_vm6 = vcmp.eq.f32.partialorder %v837_v61, 8.507059e+37 }
 0x36f   :  { %963 = vadd.xlane.f32.xlu1 %v962_v44  ;;  %v841_v1 = vsel %vm838_vm6, %v840_v34, %v836_v30 }
 0x371   :  { %v921_v16 = vpop.f32.mrf.mxu2 }
 0x372   :  { %v931_v9 = vmul.f32 %v921_v16, %v841_v1  ;;  %v3800_v16 = vld [vmem:[%s6140_s4 + $0x18] sm:$0xff] }
 0x373   :  { %1276 = vmatpush.bf16.msrb.mxu3 %v3800_v16 }
 0x374   :  { %v4893_v60 = vadd.f32 %v931_v9, %v4484_v29 }
 0x376   :  { %v965_v48 = vsel %vm61_vm0, %v4893_v60, 0.0 }
 0x3b2   :  { %v946_v23 = vpop.xlane.xlu2 %945 }
 0x3b3   :  { %v968_v42 = vmul.f32 %v946_v23, %v4287_v22 }
 0x3b5   :  { %v4886_v15 = vsub.f32 %v4820_v57, %v968_v42 }
 0x3b7   :  { %v984_v37 = vmul.f32 %v4886_v15, %v4886_v15 }
 0x3b9   :  { %v992_v28 = vsel %vm61_vm0, %v984_v37, 0.0  ;;  %v3810_v37 = vld [vmem:[%s6142_s6 + $0x18] sm:$0xff] }
 0x3ba   :  { %993 = vadd.xlane.f32.xlu2 %v992_v28  ;;  %v949_v38 = vpop.xlane.xlu0 %948  ;;  %1345 = vmatpush.bf16.msrb.mxu0 %v3810_v37 }
 0x3bb   :  { %v969_v39 = vmul.f32 %v949_v38, %v4287_v22 }
 0x3bd   :  { %v4896_v45 = vsub.f32 %v4833_v13, %v969_v39  ;;  %v4957_v39 = vld [vmem:[%s6138_s2 + $0x4] ss:$0 sm:$0xff] }
 0x3bf   :  { %v985_v46 = vmul.f32 %v4896_v45, %v4896_v45 }
 0x3c1   :  { %v995_v49 = vsel %vm61_vm0, %v985_v46, 0.0 }
 0x3c2   :  { %v952_v52 = vpop.xlane.xlu1 %951  ;;  %966 = vadd.xlane.f32.xlu2 %v965_v48  ;;  %996 = vadd.xlane.f32.xlu0 %v995_v49  ;;  %v3799_v49 = vld [vmem:[%s6140_s4 + $0x10] sm:$0xff] }
 0x3c3   :  { %v970_v53 = vmul.f32 %v952_v52, %v4287_v22  ;;  %v3809_v52 = vld [vmem:[%s6142_s6 + $0x10] sm:$0xff]  ;;  %1277 = vmatpush.bf16.msrb.mxu3 %v3799_v49 }
 0x3c4   :  { %1346 = vmatpush.bf16.msrb.mxu0 %v3809_v52 }
 0x3c5   :  { %v4905_v33 = vsub.f32 %v4846_v31, %v970_v53 }
 0x3c7   :  { %v986_v29 = vmul.f32 %v4905_v33, %v4905_v33 }
 0x3c9   :  { %v998_v54 = vsel %vm61_vm0, %v986_v29, 0.0 }
 0x3ca   :  { %v955_v50 = vpop.xlane.xlu2 %954  ;;  %999 = vadd.xlane.f32.xlu0 %v998_v54 }
 0x3cb   :  { %v971_v19 = vmul.f32 %v955_v50, %v4287_v22 }
 0x3cd   :  { %v4912_v35 = vsub.f32 %v4856_v26, %v971_v19  ;;  %v4970_v19 = vld [vmem:[%s6138_s2 + $0x5] ss:$0 sm:$0xff] }
 0x3cf   :  { %v987_v55 = vmul.f32 %v4912_v35, %v4912_v35 }
 0x3d1   :  { %v1001_v7 = vsel %vm61_vm0, %v987_v55, 0.0 }
 0x3d2   :  { %1002 = vadd.xlane.f32.xlu1 %v1001_v7  ;;  %v958_v62 = vpop.xlane.xlu0 %957 }
 0x3d3   :  { %v972_v20 = vmul.f32 %v958_v62, %v4287_v22 }
 0x3d5   :  { %v4919_v56 = vsub.f32 %v4865_v47, %v972_v20 }
 0x3d7   :  { %v988_v43 = vmul.f32 %v4919_v56, %v4919_v56 }
 0x3d9   :  { %v1004_v3 = vsel %vm61_vm0, %v988_v43, 0.0 }
 0x3da   :  { %v961_v2 = vpop.xlane.xlu1 %960  ;;  %1005 = vadd.xlane.f32.xlu2 %v1004_v3 }
 0x3db   :  { %v973_v10 = vmul.f32 %v961_v2, %v4287_v22 }
 0x3dd   :  { %v4926_v4 = vsub.f32 %v4873_v6, %v973_v10 }
 0x3df   :  { %v989_v5 = vmul.f32 %v4926_v4, %v4926_v4 }
 0x3e1   :  { %v1007_v63 = vsel %vm61_vm0, %v989_v5, 0.0  ;;  %v4977_v5 = vld [vmem:[%s6139_s3 + $0x4] ss:$0 sm:$0xff] }
 0x3e2   :  { %v964_v8 = vpop.xlane.xlu1 %963  ;;  %1008 = vadd.xlane.f32.xlu0 %v1007_v63  ;;  %v4982_v63 = vld [vmem:[%s6139_s3 + $0x5] ss:$0 sm:$0xff] }
 0x3e3   :  { %v974_v25 = vmul.f32 %v964_v8, %v4287_v22 }
 0x3e5   :  { %v4933_v11 = vsub.f32 %v4880_v51, %v974_v25  ;;  %v1142_v25 = vld [vmem:[%s6141_s1 + $0x8] sm:$0xff] }
 0x3e7   :  { %v990_v12 = vmul.f32 %v4933_v11, %v4933_v11 }
 0x3e9   :  { %v1010_v0 = vsel %vm61_vm0, %v990_v12, 0.0  ;;  %v4991_v12 = vld [vmem:[%s6139_s3 + $0x6] ss:$0 sm:$0xff] }
 0x3ea   :  { %1011 = vadd.xlane.f32.xlu1 %v1010_v0  ;;  %v4996_v0 = vld [vmem:[%s6139_s3 + $0x7] ss:$0 sm:$0xff] }
 0x42d   :  { %v994_v14 = vpop.xlane.xlu2 %993 }
 0x42e   :  { %v1016_v17 = vmul.f32 %v994_v14, %v4287_v22 }
 0x430   :  { %v1024_v44 = vadd.f32 1e-05, %v1016_v17 }
 0x432   :  { %3934 = vrsqrt.f32 %v1024_v44  ;;  %vm1038_vm8 = vweird.f32 %v1024_v44 }
 0x435   :  { %v967_v59 = vpop.xlane.xlu2 %966  ;;  %v997_v58 = vpop.xlane.xlu0 %996 }
 0x436   :  { %v975_v18 = vmul.f32 %v967_v59, %v4287_v22  ;;  %v1017_v36 = vmul.f32 %v997_v58, %v4287_v22 }
 0x438   :  { %v3935_v21 = vpop.eup %3934  ;;  %v4942_v40 = vsub.f32 %v4893_v60, %v975_v18  ;;  %v1025_v32 = vadd.f32 1e-05, %v1017_v36  ;;  %v1192_v18 = vmul.f32 %v4982_v63, %v1142_v25 }
 0x439   :  { %v1033_v41 = vmul.f32 %v3935_v21, %v1024_v44  ;;  %vm1039_vm7 = vweird.f32 %v3935_v21 }
 0x43a   :  { %3936 = vrsqrt.f32 %v1025_v32  ;;  %v991_v24 = vmul.f32 %v4942_v40, %v4942_v40  ;;  %vm1040_vm9 = vmor %vm1038_vm8, %vm1039_vm7  ;;  %vm1048_vm11 = vweird.f32 %v1025_v32 }
 0x43b   :  { %v1034_v27 = vmul.f32 %v3935_v21, %v1033_v41 }
 0x43c   :  { %v1013_v23 = vsel %vm61_vm0, %v991_v24, 0.0  ;;  %v1226_v24 = vmul.f32 %v4996_v0, %v1142_v25 }
 0x43d   :  { %v1035_v61 = vmul.f32 0.5, %v1034_v27  ;;  %1014 = vadd.xlane.f32.xlu2 %v1013_v23  ;;  %v1000_v42 = vpop.xlane.xlu0 %999 }
 0x43e   :  { %v1018_v30 = vmul.f32 %v1000_v42, %v4287_v22 }
 0x43f   :  { %v1036_v34 = vsub.f32 1.5, %v1035_v61 }
 0x440   :  { %v3937_v1 = vpop.eup %3936  ;;  %v1026_v9 = vadd.f32 1e-05, %v1018_v30 }
 0x441   :  { %v1037_v28 = vmul.f32 %v3935_v21, %v1036_v34  ;;  %v1043_v38 = vmul.f32 %v3937_v1, %v1025_v32  ;;  %vm1049_vm10 = vweird.f32 %v3937_v1 }
 0x442   :  { %3938 = vrsqrt.f32 %v1026_v9  ;;  %vm1050_vm12 = vmor %vm1048_vm11, %vm1049_vm10  ;;  %vm1058_vm14 = vweird.f32 %v1026_v9 }
 0x443   :  { %v1041_v46 = vsel %vm1040_vm9, %v3935_v21, %v1037_v28  ;;  %v1044_v48 = vmul.f32 %v3937_v1, %v1043_v38 }
 0x444   :  { %v1112_v53 = vmul.f32 %v1041_v46, %v4886_v15 }
 0x445   :  { %v1045_v29 = vmul.f32 0.5, %v1044_v48  ;;  %v1003_v54 = vpop.xlane.xlu1 %1002 }
 0x446   :  { %v1019_v50 = vmul.f32 %v1003_v54, %v4287_v22  ;;  %v1123_v55 = vmul.f32 %v4957_v39, %v1112_v53 }
 0x447   :  { %v1046_v7 = vsub.f32 1.5, %v1045_v29 }
 0x448   :  { %v3939_v62 = vpop.eup %3938  ;;  %v1027_v20 = vadd.f32 1e-05, %v1019_v50  ;;  %v1134_v3 = vadd.f32 %v4970_v19, %v1123_v55 }
 0x449   :  { %v1047_v43 = vmul.f32 %v3937_v1, %v1046_v7  ;;  %v1053_v15 = vmul.f32 %v3939_v62, %v1026_v9  ;;  %vm1059_vm13 = vweird.f32 %v3939_v62 }
 0x44a   :  { %3940 = vrsqrt.f32 %v1027_v20  ;;  %v1181_v58 = vmul.f32 %v4977_v5, %v1134_v3  ;;  %v1215_v41 = vmul.f32 %v4991_v12, %v1134_v3  ;;  %v1193_v61 = vmul.f32 %v4982_v63, %v1134_v3  ;;  %vm1060_vm15 = vmor %vm1058_vm14, %vm1059_vm13 }
 0x44b   :  { %v1051_v2 = vsel %vm1050_vm12, %v3937_v1, %v1047_v43  ;;  %v1054_v10 = vmul.f32 %v3939_v62, %v1053_v15  ;;  %v1227_v34 = vmul.f32 %v4996_v0, %v1134_v3  ;;  %vm1068_vm2 = vweird.f32 %v1027_v20 }
 0x44c   :  { %v1113_v8 = vmul.f32 %v1051_v2, %v4896_v45  ;;  %v1200_v1 = vadd.f32 %v1192_v18, %v1181_v58  ;;  %v1234_v46 = vadd.f32 %v1226_v24, %v1215_v41 }
 0x44d   :  { %v1055_v14 = vmul.f32 0.5, %v1054_v10  ;;  %v1006_v17 = vpop.xlane.xlu2 %1005 }
 0x44e   :  { %v1124_v44 = vmul.f32 %v4957_v39, %v1113_v8  ;;  %v1020_v45 = vmul.f32 %v1006_v17, %v4287_v22 }
 0x44f   :  { %v1056_v59 = vsub.f32 1.5, %v1055_v14 }
 0x450   :  { %v3941_v36 = vpop.eup %3940  ;;  %v1135_v21 = vadd.f32 %v4970_v19, %v1124_v44  ;;  %v1028_v32 = vadd.f32 1e-05, %v1020_v45 }
 0x451   :  { %v1057_v27 = vmul.f32 %v3939_v62, %v1056_v59  ;;  %v1063_v23 = vmul.f32 %v3941_v36, %v1027_v20  ;;  %vm1069_vm1 = vweird.f32 %v3941_v36 }
 0x452   :  { %3942 = vrsqrt.f32 %v1028_v32  ;;  %v1182_v42 = vmul.f32 %v4977_v5, %v1135_v21  ;;  %v1216_v30 = vmul.f32 %v4991_v12, %v1135_v21  ;;  %vm1070_vm3 = vmor %vm1068_vm2, %vm1069_vm1  ;;  %vm1078_vm5 = vweird.f32 %v1028_v32 }
 0x453   :  { %v1061_v16 = vsel %vm1060_vm15, %v3939_v62, %v1057_v27  ;;  %v1064_v37 = vmul.f32 %v3941_v36, %v1063_v23  ;;  %v1194_v18 = vmul.f32 %v4982_v63, %v1135_v21 }
 0x454   :  { %v1114_v28 = vmul.f32 %v1061_v16, %v4905_v33  ;;  %v1201_v38 = vadd.f32 %v1193_v61, %v1182_v42  ;;  %v1235_v48 = vadd.f32 %v1227_v34, %v1216_v30  ;;  %v3808_v33 = vld [vmem:[%s6144_s5 + $0x78] sm:$0xff] }
 0x455   :  { %v1065_v9 = vmul.f32 0.5, %v1064_v37  ;;  %v1009_v49 = vpop.xlane.xlu0 %1008  ;;  %1572 = vmatpush.bf16.msra.mxu1 %v3808_v33 }
 0x456   :  { %v1021_v52 = vmul.f32 %v1009_v49, %v4287_v22  ;;  %v1208_v53 = vpack.c.bf16 %v1201_v38, %v1200_v1  ;;  %v1242_v29 = vpack.c.bf16 %v1235_v48, %v1234_v46  ;;  %v1125_v54 = vmul.f32 %v4957_v39, %v1114_v28 }
 0x457   :  { %v1066_v50 = vsub.f32 1.5, %v1065_v9 }
 0x458   :  { %v3943_v55 = vpop.eup %3942  ;;  %v1029_v7 = vadd.f32 1e-05, %v1021_v52  ;;  %3584 = vmatmul.msk.bf16.vlgmr.msrb.gmra.mxu3 %vm61_vm0, %v1208_v53  ;;  %3596 = vmatmul.msk.bf16.vlgmr.msrb.gmra.mxu0 %vm61_vm0, %v1242_v29  ;;  %v1136_v15 = vadd.f32 %v4970_v19, %v1125_v54 }
 0x459   :  { %v1067_v62 = vmul.f32 %v3941_v36, %v1066_v50  ;;  %v1073_v43 = vmul.f32 %v3943_v55, %v1028_v32  ;;  %vm1079_vm4 = vweird.f32 %v3943_v55 }
 0x45a   :  { %3944 = vrsqrt.f32 %v1029_v7  ;;  %v1183_v17 = vmul.f32 %v4977_v5, %v1136_v15  ;;  %v1217_v45 = vmul.f32 %v4991_v12, %v1136_v15  ;;  %vm1080_vm6 = vmor %vm1078_vm5, %vm1079_vm4  ;;  %v1195_v41 = vmul.f32 %v4982_v63, %v1136_v15 }
 0x45b   :  { %v1071_v3 = vsel %vm1070_vm3, %v3941_v36, %v1067_v62  ;;  %v1074_v2 = vmul.f32 %v3943_v55, %v1073_v43  ;;  %v1228_v36 = vmul.f32 %v4996_v0, %v1135_v21  ;;  %v1229_v27 = vmul.f32 %v4996_v0, %v1136_v15 }
 0x45c   :  { %v1115_v10 = vmul.f32 %v1071_v3, %v4912_v35  ;;  %v1202_v32 = vadd.f32 %v1194_v18, %v1183_v17  ;;  %vm1088_vm8 = vweird.f32 %v1029_v7 }
 0x45d   :  { %v1075_v8 = vmul.f32 0.5, %v1074_v2  ;;  %v1236_v34 = vadd.f32 %v1228_v36, %v1217_v45  ;;  %v3805_v36 = vld [vmem:[%s6144_s5 + $0x60] sm:$0xff] }
 0x45e   :  { %v1126_v25 = vmul.f32 %v4957_v39, %v1115_v10 }
 0x45f   :  { %v1076_v14 = vsub.f32 1.5, %v1075_v8 }
 0x460   :  { %v3945_v44 = vpop.eup %3944  ;;  %v1137_v20 = vadd.f32 %v4970_v19, %v1126_v25 }
 0x461   :  { %v1077_v59 = vmul.f32 %v3943_v55, %v1076_v14  ;;  %v1083_v58 = vmul.f32 %v3945_v44, %v1029_v7  ;;  %vm1089_vm7 = vweird.f32 %v3945_v44  ;;  %v1012_v14 = vpop.xlane.xlu1 %1011 }
 0x462   :  { %v1184_v35 = vmul.f32 %v4977_v5, %v1137_v20  ;;  %v1218_v24 = vmul.f32 %v4991_v12, %v1137_v20  ;;  %vm1090_vm9 = vmor %vm1088_vm8, %vm1089_vm7  ;;  %v1196_v54 = vmul.f32 %v4982_v63, %v1137_v20  ;;  %v1022_v17 = vmul.f32 %v1012_v14, %v4287_v22 }
 0x463   :  { %v1081_v23 = vsel %vm1080_vm6, %v3943_v55, %v1077_v59  ;;  %v1084_v61 = vmul.f32 %v3945_v44, %v1083_v58  ;;  %v1230_v55 = vmul.f32 %v4996_v0, %v1137_v20  ;;  %v3807_v59 = vld [vmem:[%s6144_s5 + $0x70] sm:$0xff]  ;;  %v3806_v58 = vld [vmem:[%s6144_s5 + $0x68] sm:$0xff] }
 0x464   :  { %v1116_v42 = vmul.f32 %v1081_v23, %v4919_v56  ;;  %v1203_v30 = vadd.f32 %v1195_v41, %v1184_v35  ;;  %v1237_v16 = vadd.f32 %v1229_v27, %v1218_v24  ;;  %1573 = vmatpush.bf16.msra.mxu1 %v3807_v59  ;;  %v3804_v23 = vld [vmem:[%s6144_s5 + $0x58] sm:$0xff] }
 0x465   :  { %v1085_v37 = vmul.f32 0.5, %v1084_v61 }
 0x466   :  { %v1209_v1 = vpack.c.bf16 %v1203_v30, %v1202_v32  ;;  %v1243_v21 = vpack.c.bf16 %v1237_v16, %v1236_v34  ;;  %v1127_v38 = vmul.f32 %v4957_v39, %v1116_v42  ;;  %v3803_v32 = vld [vmem:[%s6144_s5 + $0x50] sm:$0xff] }
 0x467   :  { %v1086_v28 = vsub.f32 1.5, %v1085_v37 }
 0x468   :  { %3585 = vmatmul.msk.bf16.gmra.mxu3 %vm61_vm0, %v1209_v1  ;;  %3597 = vmatmul.msk.bf16.gmra.mxu0 %vm61_vm0, %v1243_v21  ;;  %v1138_v56 = vadd.f32 %v4970_v19, %v1127_v38 }
 0x469   :  { %v1087_v46 = vmul.f32 %v3945_v44, %v1086_v28  ;;  %1574 = vmatpush.bf16.msra.mxu1 %v3806_v58  ;;  %v3802_v28 = vld [vmem:[%s6144_s5 + $0x48] sm:$0xff] }
 0x46a   :  { %v1185_v53 = vmul.f32 %v4977_v5, %v1138_v56  ;;  %v1219_v29 = vmul.f32 %v4991_v12, %v1138_v56  ;;  %v1197_v50 = vmul.f32 %v4982_v63, %v1138_v56  ;;  %v1231_v7 = vmul.f32 %v4996_v0, %v1138_v56 }
 0x46b   :  { %v1091_v48 = vsel %vm1090_vm9, %v3945_v44, %v1087_v46  ;;  %v1030_v44 = vadd.f32 1e-05, %v1022_v17 }
 0x46c   :  { %v1117_v9 = vmul.f32 %v1091_v48, %v4926_v4  ;;  %v1204_v15 = vadd.f32 %v1196_v54, %v1185_v53  ;;  %v1238_v2 = vadd.f32 %v1230_v55, %v1219_v29 }
 0x46d   :  { %3946 = vrsqrt.f32 %v1030_v44  ;;  %1575 = vmatpush.bf16.msra.mxu1 %v3805_v36  ;;  %vm1098_vm11 = vweird.f32 %v1030_v44 }
 0x46e   :  { %v1128_v49 = vmul.f32 %v4957_v39, %v1117_v9 }
 0x470   :  { %v1139_v52 = vadd.f32 %v4970_v19, %v1128_v49 }
 0x471   :  { %1576 = vmatpush.bf16.msra.mxu1 %v3804_v23 }
 0x472   :  { %v1186_v33 = vmul.f32 %v4977_v5, %v1139_v52  ;;  %v1220_v4 = vmul.f32 %v4991_v12, %v1139_v52  ;;  %v5046_v62 = vmul.f32 %v4982_v63, %v1139_v52  ;;  %v5049_v43 = vmul.f32 %v4996_v0, %v1139_v52  ;;  %v3801_v52 = vld [vmem:[%s6144_s5 + $0x40] sm:$0xff] }
 0x473   :  { %v3947_v20 = vpop.eup %3946 }
 0x474   :  { %v1205_v3 = vadd.f32 %v1197_v50, %v1186_v33  ;;  %v1239_v10 = vadd.f32 %v1231_v7, %v1220_v4  ;;  %v1093_v45 = vmul.f32 %v3947_v20, %v1030_v44  ;;  %vm1099_vm10 = vweird.f32 %v3947_v20 }
 0x475   :  { %vm1100_vm12 = vmor %vm1098_vm11, %vm1099_vm10  ;;  %1577 = vmatpush.bf16.msra.mxu1 %v3803_v32 }
 0x476   :  { %v1210_v8 = vpack.c.bf16 %v1205_v3, %v1204_v15  ;;  %v1244_v25 = vpack.c.bf16 %v1239_v10, %v1238_v2  ;;  %v1094_v18 = vmul.f32 %v3947_v20, %v1093_v45 }
 0x478   :  { %3586 = vmatmul.msk.bf16.gmra.mxu3 %vm61_vm0, %v1210_v8  ;;  %3598 = vmatmul.msk.bf16.gmra.mxu0 %vm61_vm0, %v1244_v25  ;;  %v1095_v35 = vmul.f32 0.5, %v1094_v18 }
 0x479   :  { %1578 = vmatpush.bf16.msra.mxu1 %v3802_v28 }
 0x47a   :  { %v1096_v61 = vsub.f32 1.5, %v1095_v35 }
 0x47c   :  { %v1097_v42 = vmul.f32 %v3947_v20, %v1096_v61 }
 0x47d   :  { %1579 = vmatpush.bf16.msra.mxu1 %v3801_v52 }
 0x47e   :  { %v1101_v34 = vsel %vm1100_vm12, %v3947_v20, %v1097_v42 }
 0x47f   :  { %v1118_v1 = vmul.f32 %v1101_v34, %v4933_v11 }
 0x481   :  { %v1129_v46 = vmul.f32 %v4957_v39, %v1118_v1 }
 0x483   :  { %v1140_v9 = vadd.f32 %v4970_v19, %v1129_v46 }
 0x485   :  { %v1187_v29 = vmul.f32 %v4977_v5, %v1140_v9  ;;  %v1221_v54 = vmul.f32 %v4991_v12, %v1140_v9  ;;  %v1199_v55 = vmul.f32 %v4982_v63, %v1140_v9 }
 0x487   :  { %v1240_v33 = vadd.f32 %v5049_v43, %v1221_v54 }
 0x4b0   :  { %v1015_v41 = vpop.xlane.xlu2 %1014 }
 0x4b1   :  { %v1023_v24 = vmul.f32 %v1015_v41, %v4287_v22 }
 0x4b3   :  { %v1031_v27 = vadd.f32 1e-05, %v1023_v24 }
 0x4b5   :  { %3948 = vrsqrt.f32 %v1031_v27  ;;  %vm1108_vm14 = vweird.f32 %v1031_v27 }
 0x4bb   :  { %v3949_v30 = vpop.eup %3948 }
 0x4bc   :  { %v1103_v16 = vmul.f32 %v3949_v30, %v1031_v27  ;;  %vm1109_vm13 = vweird.f32 %v3949_v30 }
 0x4bd   :  { %vm1110_vm15 = vmor %vm1108_vm14, %vm1109_vm13 }
 0x4be   :  { %v1104_v37 = vmul.f32 %v3949_v30, %v1103_v16 }
 0x4c0   :  { %v1105_v21 = vmul.f32 0.5, %v1104_v37 }
 0x4c2   :  { %v1106_v38 = vsub.f32 1.5, %v1105_v21 }
 0x4c4   :  { %v1107_v48 = vmul.f32 %v3949_v30, %v1106_v38 }
 0x4c6   :  { %v1111_v56 = vsel %vm1110_vm15, %v3949_v30, %v1107_v48 }
 0x4c7   :  { %v1119_v49 = vmul.f32 %v1111_v56, %v4942_v40 }
 0x4c9   :  { %v1130_v11 = vmul.f32 %v4957_v39, %v1119_v49  ;;  %v1233_v39 = vmul.f32 %v4996_v0, %v1140_v9 }
 0x4cb   :  { %v1141_v53 = vadd.f32 %v4970_v19, %v1130_v11  ;;  %v1206_v19 = vadd.f32 %v5046_v62, %v1187_v29 }
 0x4cd   :  { %v1188_v50 = vmul.f32 %v4977_v5, %v1141_v53  ;;  %3459 = vst.msk [vmem:[%s6143_s15 + $0x8] sm:$0xff] %vm61_vm0, %v1141_v53  ;;  %v1222_v40 = vmul.f32 %v4991_v12, %v1141_v53 }
 0x4cf   :  { %v1207_v7 = vadd.f32 %v1199_v55, %v1188_v50  ;;  %v1241_v4 = vadd.f32 %v1233_v39, %v1222_v40 }
 0x4d1   :  { %v1211_v15 = vpack.c.bf16 %v1207_v7, %v1206_v19  ;;  %v1245_v3 = vpack.c.bf16 %v1241_v4, %v1240_v33 }
 0x4d3   :  { %3587 = vmatmul.msk.bf16.gmra.mxu3 %vm61_vm0, %v1211_v15  ;;  %3599 = vmatmul.msk.bf16.gmra.mxu0 %vm61_vm0, %v1245_v3 }
 0x4d5   :  { %v1348_v24 = vpop.f32.mrf.mxu0 }
 0x4d6   :  { %v3600_v23 = vmul.f32 -1.442695, %v1348_v24 }
 0x4d8   :  { %3950 = vpow2.f32 %v3600_v23 }
 0x4db   :  { %v1279_v5 = vpop.f32.mrf.mxu3 }
 0x4dc   :  { %v1299_v63 = vmax.f32 %v1279_v5, 0.0 }
 0x4dd   :  { %v1350_v27 = vpop.f32.mrf.mxu0 }
 0x4de   :  { %v1307_v8 = vmul.f32 %v1299_v63, %v1299_v63  ;;  %v3601_v32 = vmul.f32 -1.442695, %v1350_v27  ;;  %v3951_v42 = vpop.eup %3950 }
 0x4df   :  { %v1392_v30 = vadd.f32 1.0, %v3951_v42 }
 0x4e0   :  { %3952 = vpow2.f32 %v3601_v32 }
 0x4e1   :  { %3954 = vrcp.f32 %v1392_v30  ;;  %v1411_v5 = vand.u32 2147483648, %v1392_v30  ;;  %vm1405_vm2 = vweird.f32 %v1392_v30 }
 0x4e3   :  { %v1281_v2 = vpop.f32.mrf.mxu3 }
 0x4e4   :  { %v1300_v10 = vmax.f32 %v1281_v2, 0.0  ;;  %v1409_v2 = vand.u32 2147483647, %v1392_v30 }
 0x4e5   :  { %v1353_v61 = vpop.f32.mrf.mxu0 }
 0x4e6   :  { %v1308_v12 = vmul.f32 %v1300_v10, %v1300_v10  ;;  %v3602_v34 = vmul.f32 -1.442695, %v1353_v61  ;;  %v3953_v37 = vpop.eup %3952  ;;  %vm1410_vm4 = vcmp.eq.f32.partialorder %v1409_v2, 8.507059e+37 }
 0x4e7   :  { %v5096_v1 = vadd.f32 1.0, %v3953_v37  ;;  %v3955_v21 = vpop.eup %3954 }
 0x4e8   :  { %v1520_v25 = vpack.c.bf16 %v1308_v12, %v1307_v8  ;;  %3956 = vpow2.f32 %v3602_v34  ;;  %v1401_v46 = vmul.f32 %v3955_v21, %v1392_v30  ;;  %vm1406_vm1 = vweird.f32 %v3955_v21 }
 0x4e9   :  { %3958 = vrcp.f32 %v5096_v1  ;;  %vm1407_vm3 = vmor %vm1405_vm2, %vm1406_vm1  ;;  %vm1420_vm6 = vweird.f32 %v5096_v1 }
 0x4ea   :  { %1580 = vmatmul.bf16.vlgmr.msra.gmra.mxu1 %v1520_v25  ;;  %v1402_v49 = vsub.f32 1.0, %v1401_v46 }
 0x4eb   :  { %v1284_v0 = vpop.f32.mrf.mxu3 }
 0x4ec   :  { %v1301_v62 = vmax.f32 %v1284_v0, 0.0  ;;  %v1403_v29 = vmul.f32 %v3955_v21, %v1402_v49 }
 0x4ed   :  { %v1355_v16 = vpop.f32.mrf.mxu0 }
 0x4ee   :  { %v1309_v43 = vmul.f32 %v1301_v62, %v1301_v62  ;;  %v3603_v28 = vmul.f32 -1.442695, %v1355_v16  ;;  %v3957_v38 = vpop.eup %3956  ;;  %v1404_v7 = vadd.f32 %v3955_v21, %v1403_v29  ;;  %v1412_v62 = vor.u32 1.1754944e-38, %v1411_v5 }
 0x4ef   :  { %v5099_v9 = vadd.f32 1.0, %v3957_v38  ;;  %v3959_v11 = vpop.eup %3958 }
 0x4f0   :  { %3960 = vpow2.f32 %v3603_v28  ;;  %v1416_v54 = vmul.f32 %v3959_v11, %v5096_v1  ;;  %v1408_v12 = vsel %vm1407_vm3, %v3955_v21, %v1404_v7  ;;  %vm1421_vm5 = vweird.f32 %v3959_v11 }
 0x4f1   :  { %3962 = vrcp.f32 %v5099_v9  ;;  %vm1422_vm7 = vmor %vm1420_vm6, %vm1421_vm5  ;;  %vm1435_vm10 = vweird.f32 %v5099_v9  ;;  %v1439_v28 = vand.u32 2147483647, %v5099_v9 }
 0x4f2   :  { %v1417_v33 = vsub.f32 1.0, %v1416_v54 }
 0x4f3   :  { %v1286_v14 = vpop.f32.mrf.mxu3  ;;  %vm1440_vm12 = vcmp.eq.f32.partialorder %v1439_v28, 8.507059e+37 }
 0x4f4   :  { %v1302_v17 = vmax.f32 %v1286_v14, 0.0  ;;  %v1418_v25 = vmul.f32 %v3959_v11, %v1417_v33 }
 0x4f5   :  { %v1358_v48 = vpop.f32.mrf.mxu0 }
 0x4f6   :  { %v1310_v44 = vmul.f32 %v1302_v17, %v1302_v17  ;;  %v3604_v52 = vmul.f32 -1.442695, %v1358_v48  ;;  %v3961_v53 = vpop.eup %3960  ;;  %v1413_v17 = vsel %vm1410_vm4, %v1412_v62, %v1408_v12 }
 0x4f7   :  { %v5103_v40 = vadd.f32 1.0, %v3961_v53  ;;  %v5105_v4 = vpop.eup %3962 }
 0x4f8   :  { %v1521_v20 = vpack.c.bf16 %v1310_v44, %v1309_v43  ;;  %3964 = vpow2.f32 %v3604_v52  ;;  %v1431_v0 = vmul.f32 %v5105_v4, %v5099_v9  ;;  %vm1436_vm9 = vweird.f32 %v5105_v4 }
 0x4f9   :  { %3966 = vrcp.f32 %v5103_v40  ;;  %vm1437_vm11 = vmor %vm1435_vm10, %vm1436_vm9  ;;  %v1456_v54 = vand.u32 2147483648, %v5103_v40  ;;  %vm1450_vm14 = vweird.f32 %v5103_v40 }
 0x4fa   :  { %1585 = vmatmul.bf16.gmra.mxu1 %v1521_v20  ;;  %v1419_v20 = vadd.f32 %v3959_v11, %v1418_v25 }
 0x4fb   :  { %v1289_v45 = vpop.f32.mrf.mxu3 }
 0x4fc   :  { %v1303_v59 = vmax.f32 %v1289_v45, 0.0  ;;  %v1432_v45 = vsub.f32 1.0, %v1431_v0  ;;  %v1423_v24 = vsel %vm1422_vm7, %v3959_v11, %v1419_v20 }
 0x4fd   :  { %v1360_v39 = vpop.f32.mrf.mxu0 }
 0x4fe   :  { %v1311_v36 = vmul.f32 %v1303_v59, %v1303_v59  ;;  %v3605_v63 = vmul.f32 -1.442695, %v1360_v39  ;;  %v3965_v8 = vpop.eup %3964  ;;  %v1433_v27 = vmul.f32 %v5105_v4, %v1432_v45 }
 0x4ff   :  { %v5110_v14 = vadd.f32 1.0, %v3965_v8  ;;  %v3967_v59 = vpop.eup %3966 }
 0x500   :  { %3968 = vpow2.f32 %v3605_v63  ;;  %v1446_v23 = vmul.f32 %v3967_v59, %v5103_v40  ;;  %v1434_v34 = vadd.f32 %v5105_v4, %v1433_v27  ;;  %vm1451_vm13 = vweird.f32 %v3967_v59 }
 0x501   :  { %3970 = vrcp.f32 %v5110_v14  ;;  %vm1452_vm15 = vmor %vm1450_vm14, %vm1451_vm13  ;;  %v1471_v2 = vand.u32 2147483648, %v5110_v14  ;;  %vm1465_vm3 = vweird.f32 %v5110_v14 }
 0x502   :  { %v1447_v16 = vsub.f32 1.0, %v1446_v23  ;;  %v1438_v46 = vsel %vm1437_vm11, %v5105_v4, %v1434_v34  ;;  %v1457_v4 = vor.u32 1.1754944e-38, %v1456_v54 }
 0x503   :  { %v1291_v58 = vpop.f32.mrf.mxu3  ;;  %v1472_v0 = vor.u32 1.1754944e-38, %v1471_v2 }
 0x504   :  { %v1304_v18 = vmax.f32 %v1291_v58, 0.0  ;;  %v1426_v58 = vand.u32 2147483648, %v5096_v1  ;;  %v1448_v48 = vmul.f32 %v3967_v59, %v1447_v16 }
 0x506   :  { %v1312_v35 = vmul.f32 %v1304_v18, %v1304_v18  ;;  %v1427_v61 = vor.u32 1.1754944e-38, %v1426_v58  ;;  %v1449_v53 = vadd.f32 %v3967_v59, %v1448_v48 }
 0x508   :  { %v1522_v41 = vpack.c.bf16 %v1312_v35, %v1311_v36  ;;  %v1424_v36 = vand.u32 2147483647, %v5096_v1  ;;  %v3969_v35 = vpop.eup %3968  ;;  %v1441_v1 = vand.u32 2147483648, %v5099_v9 }
 0x509   :  { %v3971_v37 = vpop.eup %3970 }
 0x50a   :  { %1590 = vmatmul.bf16.gmra.mxu1 %v1522_v41  ;;  %vm1425_vm8 = vcmp.eq.f32.partialorder %v1424_v36, 8.507059e+37  ;;  %v1442_v49 = vor.u32 1.1754944e-38, %v1441_v1  ;;  %vm1466_vm2 = vweird.f32 %v3971_v37 }
 0x50b   :  { %v1428_v32 = vsel %vm1425_vm8, %v1427_v61, %v1423_v24  ;;  %vm1467_vm4 = vmor %vm1465_vm3, %vm1466_vm2 }
 0x550   :  { %v1363_v27 = vpop.f32.mrf.mxu0 }
 0x551   :  { %v3606_v23 = vmul.f32 -1.442695, %v1363_v27 }
 0x556   :  { %v1294_v56 = vpop.f32.mrf.mxu3 }
 0x557   :  { %v1305_v50 = vmax.f32 %v1294_v56, 0.0  ;;  %v1461_v56 = vmul.f32 %v3971_v37, %v5110_v14 }
 0x558   :  { %v1365_v61 = vpop.f32.mrf.mxu0 }
 0x559   :  { %v1313_v15 = vmul.f32 %v1305_v50, %v1305_v50  ;;  %v1462_v9 = vsub.f32 1.0, %v1461_v56 }
 0x55b   :  { %v1463_v7 = vmul.f32 %v3971_v37, %v1462_v9 }
 0x55e   :  { %v1296_v55 = vpop.f32.mrf.mxu3 }
 0x55f   :  { %v1306_v19 = vmax.f32 %v1296_v55, 0.0  ;;  %v1454_v55 = vand.u32 2147483647, %v5103_v40 }
 0x561   :  { %v1314_v3 = vmul.f32 %v1306_v19, %v1306_v19  ;;  %v1453_v19 = vsel %vm1452_vm15, %v3967_v59, %v1449_v53  ;;  %vm1455_vm1 = vcmp.eq.f32.partialorder %v1454_v55, 8.507059e+37 }
 0x563   :  { %v1523_v10 = vpack.c.bf16 %v1314_v3, %v1313_v15  ;;  %v1458_v15 = vsel %vm1455_vm1, %v1457_v4, %v1453_v19 }
 0x565   :  { %1595 = vmatmul.bf16.gmra.mxu1 %v1523_v10  ;;  %v1469_v10 = vand.u32 2147483647, %v5110_v14 }
 0x567   :  { %v1581_v43 = vpop.f32.mrf.mxu1  ;;  %vm1470_vm5 = vcmp.eq.f32.partialorder %v1469_v10, 8.507059e+37 }
 0x568   :  { %v1601_v44 = vmul.f32 %v1581_v43, %v1413_v17 }
 0x56a   :  { %v5114_v18 = vadd.f32 %v1601_v44, %v4820_v57  ;;  %v5123_v57 = vadd.f32 1.0, %v3969_v35 }
 0x56c   :  { %v1623_v41 = vsel %vm61_vm0, %v5114_v18, 0.0  ;;  %3972 = vrcp.f32 %v5123_v57  ;;  %vm1480_vm7 = vweird.f32 %v5123_v57  ;;  %v1484_v14 = vand.u32 2147483647, %v5123_v57 }
 0x56d   :  { %1624 = vadd.xlane.f32.xlu0 %v1623_v41  ;;  %3974 = vpow2.f32 %v3606_v23 }
 0x56e   :  { %vm1485_vm9 = vcmp.eq.f32.partialorder %v1484_v14, 8.507059e+37 }
 0x56f   :  { %v1583_v42 = vpop.f32.mrf.mxu1 }
 0x570   :  { %v1602_v30 = vmul.f32 %v1583_v42, %v1428_v32 }
 0x572   :  { %v5129_v21 = vadd.f32 %v1602_v30, %v4833_v13  ;;  %v1443_v13 = vsel %vm1440_vm12, %v1442_v49, %v1438_v46  ;;  %v3973_v29 = vpop.eup %3972 }
 0x573   :  { %v1476_v33 = vmul.f32 %v3973_v29, %v5123_v57  ;;  %vm1481_vm6 = vweird.f32 %v3973_v29  ;;  %v3975_v32 = vpop.eup %3974 }
 0x574   :  { %v1626_v38 = vsel %vm61_vm0, %v5129_v21, 0.0  ;;  %vm1482_vm8 = vmor %vm1480_vm7, %vm1481_vm6  ;;  %v1398_v42 = vadd.f32 1.0, %v3975_v32 }
 0x575   :  { %1627 = vadd.xlane.f32.xlu1 %v1626_v38  ;;  %v1477_v63 = vsub.f32 1.0, %v1476_v33 }
 0x576   :  { %v1501_v56 = vand.u32 2147483648, %v1398_v42  ;;  %vm1495_vm11 = vweird.f32 %v1398_v42  ;;  %v1499_v49 = vand.u32 2147483647, %v1398_v42 }
 0x577   :  { %v1586_v11 = vpop.f32.mrf.mxu1  ;;  %v1478_v25 = vmul.f32 %v3973_v29, %v1477_v63 }
 0x578   :  { %v1603_v52 = vmul.f32 %v1586_v11, %v1443_v13  ;;  %v1502_v53 = vor.u32 1.1754944e-38, %v1501_v56  ;;  %vm1500_vm13 = vcmp.eq.f32.partialorder %v1499_v49, 8.507059e+37 }
 0x579   :  { %v1479_v44 = vadd.f32 %v3973_v29, %v1478_v25 }
 0x57a   :  { %v5140_v50 = vadd.f32 %v1603_v52, %v4846_v31  ;;  %v1464_v31 = vadd.f32 %v3971_v37, %v1463_v7 }
 0x57b   :  { %v1483_v59 = vsel %vm1482_vm8, %v3973_v29, %v1479_v44 }
 0x57c   :  { %v1629_v39 = vsel %vm61_vm0, %v5140_v50, 0.0  ;;  %v1468_v12 = vsel %vm1467_vm4, %v3971_v37, %v1464_v31 }
 0x57d   :  { %1630 = vadd.xlane.f32.xlu2 %v1629_v39  ;;  %v1473_v62 = vsel %vm1470_vm5, %v1472_v0, %v1468_v12 }
 0x57f   :  { %v1588_v3 = vpop.f32.mrf.mxu1 }
 0x580   :  { %v1604_v5 = vmul.f32 %v1588_v3, %v1458_v15 }
 0x582   :  { %v5149_v40 = vadd.f32 %v1604_v5, %v4856_v26  ;;  %v1486_v26 = vand.u32 2147483648, %v5123_v57  ;;  %v3607_v57 = vmul.f32 -1.442695, %v1365_v61 }
 0x584   :  { %v1632_v8 = vsel %vm61_vm0, %v5149_v40, 0.0  ;;  %v1487_v58 = vor.u32 1.1754944e-38, %v1486_v26  ;;  %3976 = vpow2.f32 %v3607_v57  ;;  %v3812_v26 = vld [vmem:[%s6146_s9 + $0x8] sm:$0xff] }
 0x585   :  { %1633 = vadd.xlane.f32.xlu0 %v1632_v8  ;;  %3978 = vrcp.f32 %v1398_v42  ;;  %1991 = vmatpush.bf16.msra.mxu3 %v3812_v26 }
 0x586   :  { %v1488_v36 = vsel %vm1485_vm9, %v1487_v58, %v1483_v59 }
 0x587   :  { %v1591_v17 = vpop.f32.mrf.mxu1 }
 0x588   :  { %v1605_v43 = vmul.f32 %v1591_v17, %v1473_v62 }
 0x58a   :  { %v5157_v20 = vadd.f32 %v1605_v43, %v4865_v47  ;;  %v3977_v30 = vpop.eup %3976 }
 0x58b   :  { %v1399_v34 = vadd.f32 1.0, %v3977_v30  ;;  %v3979_v16 = vpop.eup %3978 }
 0x58c   :  { %v1635_v45 = vsel %vm61_vm0, %v5157_v20, 0.0  ;;  %v1491_v37 = vmul.f32 %v3979_v16, %v1398_v42  ;;  %vm1496_vm10 = vweird.f32 %v3979_v16 }
 0x58d   :  { %1636 = vadd.xlane.f32.xlu1 %v1635_v45  ;;  %3980 = vrcp.f32 %v1399_v34  ;;  %vm1497_vm12 = vmor %vm1495_vm11, %vm1496_vm10  ;;  %v1516_v7 = vand.u32 2147483648, %v1399_v34  ;;  %vm1510_vm15 = vweird.f32 %v1399_v34  ;;  %v1514_v15 = vand.u32 2147483647, %v1399_v34 }
 0x58f   :  { %v1593_v35 = vpop.f32.mrf.mxu1  ;;  %v1517_v2 = vor.u32 1.1754944e-38, %v1516_v7  ;;  %vm1515_vm2 = vcmp.eq.f32.partialorder %v1514_v15, 8.507059e+37 }
 0x590   :  { %v1606_v41 = vmul.f32 %v1593_v35, %v1488_v36 }
 0x592   :  { %v5164_v24 = vadd.f32 %v1606_v41, %v4873_v6  ;;  %v1492_v6 = vsub.f32 1.0, %v1491_v37 }
 0x593   :  { %v3981_v1 = vpop.eup %3980 }
 0x594   :  { %v1638_v47 = vsel %vm61_vm0, %v5164_v24, 0.0  ;;  %v1493_v28 = vmul.f32 %v3979_v16, %v1492_v6  ;;  %v1506_v38 = vmul.f32 %v3981_v1, %v1399_v34  ;;  %vm1511_vm14 = vweird.f32 %v3981_v1 }
 0x595   :  { %1639 = vadd.xlane.f32.xlu2 %v1638_v47  ;;  %vm1512_vm1 = vmor %vm1510_vm15, %vm1511_vm14 }
 0x596   :  { %v1494_v46 = vadd.f32 %v3979_v16, %v1493_v28  ;;  %v1507_v48 = vsub.f32 1.0, %v1506_v38 }
 0x598   :  { %v1498_v13 = vsel %vm1497_vm12, %v3979_v16, %v1494_v46  ;;  %v1508_v11 = vmul.f32 %v3981_v1, %v1507_v48 }
 0x599   :  { %v1503_v29 = vsel %vm1500_vm13, %v1502_v53, %v1498_v13  ;;  %v3811_v13 = vld [vmem:[%s6146_s9] sm:$0xff] }
 0x59a   :  { %v1509_v19 = vadd.f32 %v3981_v1, %v1508_v11  ;;  %1992 = vmatpush.bf16.msra.mxu3 %v3811_v13 }
 0x59c   :  { %v1513_v31 = vsel %vm1512_vm1, %v3981_v1, %v1509_v19  ;;  %v3814_v1 = vld [vmem:[%s6146_s9 + $0x18] sm:$0xff] }
 0x59d   :  { %2044 = vmatpush.bf16.msrb.mxu2 %v3814_v1 }
 0x5e0   :  { %v1625_v52 = vpop.xlane.xlu0 %1624 }
 0x5e1   :  { %v1647_v9 = vmul.f32 %v1625_v52, %v4287_v22 }
 0x5e2   :  { %v1596_v54 = vpop.f32.mrf.mxu1 }
 0x5e3   :  { %v5170_v55 = vsub.f32 %v5114_v18, %v1647_v9  ;;  %v1607_v39 = vmul.f32 %v1596_v54, %v1503_v29 }
 0x5e5   :  { %v5173_v33 = vadd.f32 %v1607_v39, %v4880_v51  ;;  %v1663_v4 = vmul.f32 %v5170_v55, %v5170_v55  ;;  %v1518_v51 = vsel %vm1515_vm2, %v1517_v2, %v1513_v31 }
 0x5e7   :  { %v1641_v3 = vsel %vm61_vm0, %v5173_v33, 0.0  ;;  %v1671_v5 = vsel %vm61_vm0, %v1663_v4, 0.0  ;;  %v3815_v4 = vld [vmem:[%s6146_s9 + $0x20] sm:$0xff] }
 0x5e8   :  { %v1628_v63 = vpop.xlane.xlu1 %1627  ;;  %1642 = vadd.xlane.f32.xlu2 %v1641_v3  ;;  %1672 = vadd.xlane.f32.xlu0 %v1671_v5 }
 0x5e9   :  { %v1648_v10 = vmul.f32 %v1628_v63, %v4287_v22 }
 0x5ea   :  { %v1598_v8 = vpop.f32.mrf.mxu1 }
 0x5eb   :  { %v5182_v12 = vsub.f32 %v5129_v21, %v1648_v10  ;;  %v1608_v25 = vmul.f32 %v1598_v8, %v1518_v51 }
 0x5ed   :  { %v5185_v0 = vadd.f32 %v1608_v25, %v4893_v60  ;;  %v1664_v62 = vmul.f32 %v5182_v12, %v5182_v12  ;;  %v3816_v60 = vld [vmem:[%s6146_s9 + $0x28] sm:$0xff] }
 0x5ee   :  { %2097 = vmatpush.bf16.msra.mxu0 %v3816_v60  ;;  %v3813_v60 = vld [vmem:[%s6146_s9 + $0x10] sm:$0xff] }
 0x5ef   :  { %v1674_v17 = vsel %vm61_vm0, %v1664_v62, 0.0  ;;  %v1644_v43 = vsel %vm61_vm0, %v5185_v0, 0.0  ;;  %2045 = vmatpush.bf16.msrb.mxu2 %v3813_v60 }
 0x5f0   :  { %v1631_v44 = vpop.xlane.xlu2 %1630  ;;  %1675 = vadd.xlane.f32.xlu1 %v1674_v17  ;;  %1645 = vadd.xlane.f32.xlu0 %v1644_v43  ;;  %v5255_v43 = vld [vmem:[%s6145_s7] ss:$0 sm:$0xff] }
 0x5f1   :  { %v1649_v14 = vmul.f32 %v1631_v44, %v4287_v22 }
 0x5f2   :  { %2098 = vmatpush.bf16.msra.mxu0 %v3815_v4 }
 0x5f3   :  { %v5200_v45 = vsub.f32 %v5140_v50, %v1649_v14 }
 0x5f5   :  { %v1665_v59 = vmul.f32 %v5200_v45, %v5200_v45 }
 0x5f7   :  { %v1677_v58 = vsel %vm61_vm0, %v1665_v59, 0.0 }
 0x5f8   :  { %1678 = vadd.xlane.f32.xlu1 %v1677_v58  ;;  %v1634_v36 = vpop.xlane.xlu0 %1633 }
 0x5f9   :  { %v1650_v35 = vmul.f32 %v1634_v36, %v4287_v22  ;;  %v5264_v36 = vld [vmem:[%s6145_s7 + $0x1] ss:$0 sm:$0xff] }
 0x5fb   :  { %v5207_v41 = vsub.f32 %v5149_v40, %v1650_v35 }
 0x5fd   :  { %v1666_v47 = vmul.f32 %v5207_v41, %v5207_v41 }
 0x5ff   :  { %v1680_v27 = vsel %vm61_vm0, %v1666_v47, 0.0 }
 0x600   :  { %v1637_v23 = vpop.xlane.xlu1 %1636  ;;  %1681 = vadd.xlane.f32.xlu2 %v1680_v27 }
 0x601   :  { %v1651_v61 = vmul.f32 %v1637_v23, %v4287_v22 }
 0x603   :  { %v5214_v57 = vsub.f32 %v5157_v20, %v1651_v61 }
 0x605   :  { %v1667_v32 = vmul.f32 %v5214_v57, %v5214_v57 }
 0x607   :  { %v1683_v42 = vsel %vm61_vm0, %v1667_v32, 0.0 }
 0x608   :  { %v1640_v30 = vpop.xlane.xlu2 %1639  ;;  %1684 = vadd.xlane.f32.xlu0 %v1683_v42  ;;  %v5273_v42 = vld [vmem:[%s6147_s8] ss:$0 sm:$0xff] }
 0x609   :  { %v1652_v34 = vmul.f32 %v1640_v30, %v4287_v22  ;;  %v5278_v30 = vld [vmem:[%s6147_s8 + $0x1] ss:$0 sm:$0xff] }
 0x60b   :  { %v5221_v16 = vsub.f32 %v5164_v24, %v1652_v34 }
 0x60d   :  { %v1668_v37 = vmul.f32 %v5221_v16, %v5221_v16 }
 0x60f   :  { %v1686_v6 = vsel %vm61_vm0, %v1668_v37, 0.0  ;;  %v1821_v37 = vld [vmem:[%s6141_s1 + $0x28] sm:$0xff] }
 0x610   :  { %1687 = vadd.xlane.f32.xlu1 %v1686_v6  ;;  %v5288_v6 = vld [vmem:[%s6147_s8 + $0x3] ss:$0 sm:$0xff] }
 0x65b   :  { %v1643_v28 = vpop.xlane.xlu2 %1642  ;;  %v1673_v38 = vpop.xlane.xlu0 %1672 }
 0x65c   :  { %v1653_v46 = vmul.f32 %v1643_v28, %v4287_v22  ;;  %v1695_v48 = vmul.f32 %v1673_v38, %v4287_v22  ;;  %v5293_v38 = vld [vmem:[%s6147_s8 + $0x5] ss:$0 sm:$0xff] }
 0x65e   :  { %v5232_v56 = vsub.f32 %v5173_v33, %v1653_v46  ;;  %v1703_v49 = vadd.f32 1e-05, %v1695_v48  ;;  %v5299_v48 = vld [vmem:[%s6147_s8 + $0x2] ss:$0 sm:$0xff] }
 0x660   :  { %3982 = vrsqrt.f32 %v1703_v49  ;;  %v1669_v11 = vmul.f32 %v5232_v56, %v5232_v56  ;;  %vm1717_vm4 = vweird.f32 %v1703_v49 }
 0x662   :  { %v1689_v52 = vsel %vm61_vm0, %v1669_v11, 0.0  ;;  %v1873_v11 = vmul.f32 %v5278_v30, %v1821_v37 }
 0x663   :  { %v1676_v53 = vpop.xlane.xlu1 %1675  ;;  %1690 = vadd.xlane.f32.xlu2 %v1689_v52  ;;  %v1646_v9 = vpop.xlane.xlu0 %1645  ;;  %v5305_v52 = vld [vmem:[%s6147_s8 + $0x4] ss:$0 sm:$0xff] }
 0x664   :  { %v1696_v29 = vmul.f32 %v1676_v53, %v4287_v22  ;;  %v1654_v54 = vmul.f32 %v1646_v9, %v4287_v22 }
 0x666   :  { %v3983_v39 = vpop.eup %3982  ;;  %v1704_v19 = vadd.f32 1e-05, %v1696_v29  ;;  %v5243_v7 = vsub.f32 %v5185_v0, %v1654_v54  ;;  %v1907_v29 = vmul.f32 %v5288_v6, %v1821_v37 }
 0x667   :  { %v1712_v15 = vmul.f32 %v3983_v39, %v1703_v49  ;;  %vm1718_vm3 = vweird.f32 %v3983_v39 }
 0x668   :  { %3984 = vrsqrt.f32 %v1704_v19  ;;  %v1670_v3 = vmul.f32 %v5243_v7, %v5243_v7  ;;  %vm1719_vm5 = vmor %vm1717_vm4, %vm1718_vm3  ;;  %vm1727_vm7 = vweird.f32 %v1704_v19 }
 0x669   :  { %v1713_v5 = vmul.f32 %v3983_v39, %v1712_v15 }
 0x66a   :  { %v1692_v31 = vsel %vm61_vm0, %v1670_v3, 0.0 }
 0x66b   :  { %v1714_v63 = vmul.f32 0.5, %v1713_v5  ;;  %v1679_v2 = vpop.xlane.xlu1 %1678  ;;  %1693 = vadd.xlane.f32.xlu0 %v1692_v31 }
 0x66c   :  { %v1697_v10 = vmul.f32 %v1679_v2, %v4287_v22 }
 0x66d   :  { %v1715_v51 = vsub.f32 1.5, %v1714_v63 }
 0x66e   :  { %v3985_v8 = vpop.eup %3984  ;;  %v1705_v25 = vadd.f32 1e-05, %v1697_v10 }
 0x66f   :  { %v1716_v62 = vmul.f32 %v3983_v39, %v1715_v51  ;;  %v1722_v17 = vmul.f32 %v3985_v8, %v1704_v19  ;;  %vm1728_vm6 = vweird.f32 %v3985_v8 }
 0x670   :  { %3986 = vrsqrt.f32 %v1705_v25  ;;  %vm1729_vm8 = vmor %vm1727_vm7, %vm1728_vm6  ;;  %vm1737_vm9 = vweird.f32 %v1705_v25 }
 0x671   :  { %v1720_v44 = vsel %vm1719_vm5, %v3983_v39, %v1716_v62  ;;  %v1723_v26 = vmul.f32 %v3985_v8, %v1722_v17  ;;  %v1941_v39 = vmul.f32 %v5293_v38, %v1821_v37 }
 0x672   :  { %v1791_v14 = vmul.f32 %v1720_v44, %v5170_v55 }
 0x673   :  { %v1724_v59 = vmul.f32 0.5, %v1723_v26  ;;  %v1682_v58 = vpop.xlane.xlu2 %1681 }
 0x674   :  { %v1802_v35 = vmul.f32 %v5255_v43, %v1791_v14  ;;  %v1698_v47 = vmul.f32 %v1682_v58, %v4287_v22 }
 0x675   :  { %v1725_v27 = vsub.f32 1.5, %v1724_v59 }
 0x676   :  { %v3987_v23 = vpop.eup %3986  ;;  %v5268_v61 = vadd.f32 1e-05, %v1698_v47  ;;  %v1813_v34 = vadd.f32 %v5264_v36, %v1802_v35 }
 0x677   :  { %v1726_v32 = vmul.f32 %v3985_v8, %v1725_v27  ;;  %v1732_v55 = vmul.f32 %v3987_v23, %v1705_v25  ;;  %vm1738_vm10 = vweird.f32 %v3987_v23 }
 0x678   :  { %3988 = vrsqrt.f32 %v5268_v61  ;;  %v1874_v3 = vmul.f32 %v5278_v30, %v1813_v34  ;;  %v1896_v5 = vmul.f32 %v5299_v48, %v1813_v34  ;;  %v1908_v2 = vmul.f32 %v5288_v6, %v1813_v34  ;;  %vm1739_vm11 = vmor %vm1737_vm9, %vm1738_vm10 }
 0x679   :  { %v1730_v1 = vsel %vm1729_vm8, %v3985_v8, %v1726_v32  ;;  %v1733_v28 = vmul.f32 %v3987_v23, %v1732_v55  ;;  %v1930_v10 = vmul.f32 %v5305_v52, %v1813_v34  ;;  %v1942_v26 = vmul.f32 %v5293_v38, %v1813_v34 }
 0x67a   :  { %v1792_v46 = vmul.f32 %v1730_v1, %v5182_v12  ;;  %v1862_v12 = vmul.f32 %v5273_v42, %v1813_v34  ;;  %v1915_v59 = vadd.f32 %v1907_v29, %v1896_v5  ;;  %vm1747_vm13 = vweird.f32 %v5268_v61 }
 0x67b   :  { %v1734_v49 = vmul.f32 0.5, %v1733_v28  ;;  %v1685_v13 = vpop.xlane.xlu0 %1684  ;;  %v1949_v27 = vadd.f32 %v1941_v39, %v1930_v10 }
 0x67c   :  { %v1803_v53 = vmul.f32 %v5255_v43, %v1792_v46  ;;  %v1699_v9 = vmul.f32 %v1685_v13, %v4287_v22  ;;  %v1881_v8 = vadd.f32 %v1873_v11, %v1862_v12 }
 0x67d   :  { %v1735_v54 = vsub.f32 1.5, %v1734_v49 }
 0x67e   :  { %v3989_v19 = vpop.eup %3988  ;;  %v1814_v4 = vadd.f32 %v5264_v36, %v1803_v53  ;;  %v5313_v15 = vadd.f32 1e-05, %v1699_v9 }
 0x67f   :  { %v1736_v31 = vmul.f32 %v3987_v23, %v1735_v54  ;;  %v1742_v63 = vmul.f32 %v3989_v19, %v5268_v61  ;;  %vm1748_vm12 = vweird.f32 %v3989_v19 }
 0x680   :  { %3990 = vrsqrt.f32 %v5313_v15  ;;  %v1863_v51 = vmul.f32 %v5273_v42, %v1814_v4  ;;  %v1897_v25 = vmul.f32 %v5299_v48, %v1814_v4  ;;  %v1931_v44 = vmul.f32 %v5305_v52, %v1814_v4  ;;  %vm1749_vm14 = vmor %vm1747_vm13, %vm1748_vm12 }
 0x681   :  { %v1740_v62 = vsel %vm1739_vm11, %v3987_v23, %v1736_v31  ;;  %v1743_v17 = vmul.f32 %v3989_v19, %v1742_v63  ;;  %vm1757_vm15 = vweird.f32 %v5313_v15  ;;  %v1943_v10 = vmul.f32 %v5293_v38, %v1814_v4 }
 0x682   :  { %v1793_v60 = vmul.f32 %v1740_v62, %v5200_v45  ;;  %v1882_v14 = vadd.f32 %v1874_v3, %v1863_v51  ;;  %v1916_v58 = vadd.f32 %v1908_v2, %v1897_v25  ;;  %v1950_v32 = vadd.f32 %v1942_v26, %v1931_v44 }
 0x683   :  { %v1744_v35 = vmul.f32 0.5, %v1743_v17  ;;  %v1688_v47 = vpop.xlane.xlu1 %1687  ;;  %v1875_v3 = vmul.f32 %v5278_v30, %v1814_v4  ;;  %v1909_v2 = vmul.f32 %v5288_v6, %v1814_v4 }
 0x684   :  { %v1804_v55 = vmul.f32 %v5255_v43, %v1793_v60  ;;  %v1700_v37 = vmul.f32 %v1688_v47, %v4287_v22  ;;  %v1889_v1 = vpack.c.bf16 %v1882_v14, %v1881_v8  ;;  %v1923_v23 = vpack.c.bf16 %v1916_v58, %v1915_v59 }
 0x685   :  { %v1745_v28 = vsub.f32 1.5, %v1744_v35  ;;  %v1957_v46 = vpack.c.bf16 %v1950_v32, %v1949_v27 }
 0x686   :  { %v3991_v49 = vpop.eup %3990  ;;  %v1708_v34 = vadd.f32 1e-05, %v1700_v37  ;;  %3668 = vmatmul.msk.bf16.vlgmr.msra.gmra.mxu3 %vm61_vm0, %v1889_v1  ;;  %3680 = vmatmul.msk.bf16.vlgmr.msrb.gmra.mxu2 %vm61_vm0, %v1923_v23  ;;  %v1815_v45 = vadd.f32 %v5264_v36, %v1804_v55 }
 0x687   :  { %v1746_v13 = vmul.f32 %v3989_v19, %v1745_v28  ;;  %v1752_v11 = vmul.f32 %v3991_v49, %v5313_v15  ;;  %3692 = vmatmul.msk.bf16.vlgmr.msra.gmra.mxu0 %vm61_vm0, %v1957_v46  ;;  %vm1758_vm1 = vweird.f32 %v3991_v49 }
 0x688   :  { %3992 = vrsqrt.f32 %v1708_v34  ;;  %v1864_v54 = vmul.f32 %v5273_v42, %v1815_v45  ;;  %v1898_v5 = vmul.f32 %v5299_v48, %v1815_v45  ;;  %v1932_v31 = vmul.f32 %v5305_v52, %v1815_v45  ;;  %vm1759_vm2 = vmor %vm1757_vm15, %vm1758_vm1 }
 0x689   :  { %v1750_v53 = vsel %vm1749_vm14, %v3989_v19, %v1746_v13  ;;  %v1753_v9 = vmul.f32 %v3991_v49, %v1752_v11  ;;  %v1910_v62 = vmul.f32 %v5288_v6, %v1815_v45  ;;  %v1944_v60 = vmul.f32 %v5293_v38, %v1815_v45 }
 0x68a   :  { %v1794_v12 = vmul.f32 %v1750_v53, %v5207_v41  ;;  %v1876_v41 = vmul.f32 %v5278_v30, %v1815_v45  ;;  %v1883_v25 = vadd.f32 %v1875_v3, %v1864_v54  ;;  %v1917_v58 = vadd.f32 %v1909_v2, %v1898_v5 }
 0x68b   :  { %v1754_v29 = vmul.f32 0.5, %v1753_v9  ;;  %v1951_v4 = vadd.f32 %v1943_v10, %v1932_v31  ;;  %vm1767_vm4 = vweird.f32 %v1708_v34 }
 0x68c   :  { %v1805_v39 = vmul.f32 %v5255_v43, %v1794_v12 }
 0x68d   :  { %v1755_v61 = vsub.f32 1.5, %v1754_v29 }
 0x68e   :  { %v3993_v63 = vpop.eup %3992  ;;  %v1816_v19 = vadd.f32 %v5264_v36, %v1805_v39 }
 0x68f   :  { %v1756_v51 = vmul.f32 %v3991_v49, %v1755_v61  ;;  %v1762_v8 = vmul.f32 %v3993_v63, %v1708_v34  ;;  %vm1768_vm3 = vweird.f32 %v3993_v63 }
 0x690   :  { %v1865_v17 = vmul.f32 %v5273_v42, %v1816_v19  ;;  %v1899_v44 = vmul.f32 %v5299_v48, %v1816_v19  ;;  %v1933_v26 = vmul.f32 %v5305_v52, %v1816_v19  ;;  %vm1769_vm5 = vmor %vm1767_vm4, %vm1768_vm3  ;;  %v1877_v12 = vmul.f32 %v5278_v30, %v1816_v19 }
 0x691   :  { %v1760_v14 = vsel %vm1759_vm2, %v3991_v49, %v1756_v51  ;;  %v1763_v59 = vmul.f32 %v3993_v63, %v1762_v8  ;;  %v1911_v54 = vmul.f32 %v5288_v6, %v1816_v19 }
 0x692   :  { %v1795_v35 = vmul.f32 %v1760_v14, %v5214_v57  ;;  %v1884_v47 = vadd.f32 %v1876_v41, %v1865_v17  ;;  %v1918_v27 = vadd.f32 %v1910_v62, %v1899_v44  ;;  %v1952_v32 = vadd.f32 %v1944_v60, %v1933_v26  ;;  %v3818_v60 = vld [vmem:[%s6146_s9 + $0x38] sm:$0xff] }
 0x693   :  { %v1764_v55 = vmul.f32 0.5, %v1763_v59  ;;  %2544 = vmatpush.bf16.msrb.mxu1 %v3818_v60 }
 0x694   :  { %v1890_v15 = vpack.c.bf16 %v1884_v47, %v1883_v25  ;;  %v1924_v37 = vpack.c.bf16 %v1918_v27, %v1917_v58  ;;  %v1958_v1 = vpack.c.bf16 %v1952_v32, %v1951_v4  ;;  %v1806_v23 = vmul.f32 %v5255_v43, %v1795_v35 }
 0x695   :  { %v1765_v28 = vsub.f32 1.5, %v1764_v55 }
 0x696   :  { %3669 = vmatmul.msk.bf16.gmra.mxu3 %vm61_vm0, %v1890_v15  ;;  %3681 = vmatmul.msk.bf16.gmra.mxu2 %vm61_vm0, %v1924_v37  ;;  %v1817_v57 = vadd.f32 %v5264_v36, %v1806_v23 }
 0x697   :  { %v1766_v46 = vmul.f32 %v3993_v63, %v1765_v28  ;;  %3693 = vmatmul.msk.bf16.gmra.mxu0 %vm61_vm0, %v1958_v1 }
 0x698   :  { %v1866_v11 = vmul.f32 %v5273_v42, %v1817_v57  ;;  %v1900_v53 = vmul.f32 %v5299_v48, %v1817_v57  ;;  %v1934_v34 = vmul.f32 %v5305_v52, %v1817_v57  ;;  %v1878_v29 = vmul.f32 %v5278_v30, %v1817_v57 }
 0x699   :  { %v1770_v49 = vsel %vm1769_vm5, %v3993_v63, %v1766_v46  ;;  %v1912_v39 = vmul.f32 %v5288_v6, %v1817_v57  ;;  %v1946_v31 = vmul.f32 %v5293_v38, %v1817_v57 }
 0x69a   :  { %v1796_v45 = vmul.f32 %v1770_v49, %v5221_v16  ;;  %v1945_v16 = vmul.f32 %v5293_v38, %v1816_v19  ;;  %v1885_v63 = vadd.f32 %v1877_v12, %v1866_v11  ;;  %v1919_v41 = vadd.f32 %v1911_v54, %v1900_v53 }
 0x69c   :  { %v1807_v13 = vmul.f32 %v5255_v43, %v1796_v45  ;;  %v1953_v51 = vadd.f32 %v1945_v16, %v1934_v34 }
 0x69e   :  { %v5363_v9 = vadd.f32 %v5264_v36, %v1807_v13 }
 0x6a0   :  { %v1867_v3 = vmul.f32 %v5273_v42, %v5363_v9  ;;  %v1901_v61 = vmul.f32 %v5299_v48, %v5363_v9  ;;  %v1935_v5 = vmul.f32 %v5305_v52, %v5363_v9  ;;  %v1879_v54 = vmul.f32 %v5278_v30, %v5363_v9 }
 0x6a2   :  { %v1886_v2 = vadd.f32 %v1878_v29, %v1867_v3  ;;  %v1920_v10 = vadd.f32 %v1912_v39, %v1901_v61  ;;  %v1954_v8 = vadd.f32 %v1946_v31, %v1935_v5  ;;  %v1913_v3 = vmul.f32 %v5288_v6, %v5363_v9 }
 0x6a4   :  { %v1891_v25 = vpack.c.bf16 %v1886_v2, %v1885_v63  ;;  %v1925_v62 = vpack.c.bf16 %v1920_v10, %v1919_v41  ;;  %v1959_v19 = vpack.c.bf16 %v1954_v8, %v1953_v51 }
 0x6a6   :  { %3670 = vmatmul.msk.bf16.gmra.mxu3 %vm61_vm0, %v1891_v25  ;;  %3682 = vmatmul.msk.bf16.gmra.mxu2 %vm61_vm0, %v1925_v62  ;;  %v5425_v25 = vld [vmem:[%s6147_s8 + $0x7] ss:$0 sm:$0xff] }
 0x6a7   :  { %3694 = vmatmul.msk.bf16.gmra.mxu0 %vm61_vm0, %v1959_v19 }
 0x6d6   :  { %v1691_v17 = vpop.xlane.xlu2 %1690 }
 0x6d7   :  { %v1701_v44 = vmul.f32 %v1691_v17, %v4287_v22 }
 0x6d9   :  { %v1709_v26 = vadd.f32 1e-05, %v1701_v44 }
 0x6db   :  { %3994 = vrsqrt.f32 %v1709_v26  ;;  %vm1777_vm7 = vweird.f32 %v1709_v26 }
 0x6de   :  { %v1694_v14 = vpop.xlane.xlu0 %1693 }
 0x6df   :  { %v1702_v59 = vmul.f32 %v1694_v14, %v4287_v22 }
 0x6e1   :  { %v3995_v58 = vpop.eup %3994  ;;  %v1710_v4 = vadd.f32 1e-05, %v1702_v59 }
 0x6e2   :  { %v1772_v35 = vmul.f32 %v3995_v58, %v1709_v26  ;;  %vm1778_vm6 = vweird.f32 %v3995_v58 }
 0x6e3   :  { %3996 = vrsqrt.f32 %v1710_v4  ;;  %vm1779_vm8 = vmor %vm1777_vm7, %vm1778_vm6  ;;  %vm1787_vm10 = vweird.f32 %v1710_v4 }
 0x6e4   :  { %v1773_v47 = vmul.f32 %v3995_v58, %v1772_v35 }
 0x6e6   :  { %v1774_v27 = vmul.f32 0.5, %v1773_v47 }
 0x6e8   :  { %v1775_v32 = vsub.f32 1.5, %v1774_v27 }
 0x6e9   :  { %v3997_v55 = vpop.eup %3996 }
 0x6ea   :  { %v1776_v15 = vmul.f32 %v3995_v58, %v1775_v32  ;;  %v1782_v37 = vmul.f32 %v3997_v55, %v1710_v4  ;;  %vm1788_vm9 = vweird.f32 %v3997_v55 }
 0x6eb   :  { %vm1789_vm11 = vmor %vm1787_vm10, %vm1788_vm9 }
 0x6ec   :  { %v1780_v1 = vsel %vm1779_vm8, %v3995_v58, %v1776_v15  ;;  %v1783_v23 = vmul.f32 %v3997_v55, %v1782_v37  ;;  %v3817_v15 = vld [vmem:[%s6146_s9 + $0x30] sm:$0xff] }
 0x6ed   :  { %v1797_v28 = vmul.f32 %v1780_v1, %v5232_v56  ;;  %2545 = vmatpush.bf16.msrb.mxu1 %v3817_v15 }
 0x6ee   :  { %v1784_v46 = vmul.f32 0.5, %v1783_v23 }
 0x6ef   :  { %v1808_v57 = vmul.f32 %v5255_v43, %v1797_v28 }
 0x6f0   :  { %v1785_v49 = vsub.f32 1.5, %v1784_v46 }
 0x6f1   :  { %v1819_v13 = vadd.f32 %v5264_v36, %v1808_v57 }
 0x6f2   :  { %v1786_v45 = vmul.f32 %v3997_v55, %v1785_v49 }
 0x6f3   :  { %v1868_v34 = vmul.f32 %v5273_v42, %v1819_v13  ;;  %v1902_v29 = vmul.f32 %v5299_v48, %v1819_v13  ;;  %v1936_v39 = vmul.f32 %v5305_v52, %v1819_v13  ;;  %v1880_v16 = vmul.f32 %v5278_v30, %v1819_v13 }
 0x6f4   :  { %v1790_v11 = vsel %vm1789_vm11, %v3997_v55, %v1786_v45  ;;  %v1948_v30 = vmul.f32 %v5293_v38, %v1819_v13 }
 0x6f5   :  { %v1798_v53 = vmul.f32 %v1790_v11, %v5243_v7  ;;  %v1914_v7 = vmul.f32 %v5288_v6, %v1819_v13  ;;  %v1887_v31 = vadd.f32 %v1879_v54, %v1868_v34  ;;  %v1921_v63 = vadd.f32 %v1913_v3, %v1902_v29 }
 0x6f7   :  { %v1809_v12 = vmul.f32 %v5255_v43, %v1798_v53  ;;  %v1947_v43 = vmul.f32 %v5293_v38, %v5363_v9  ;;  %v1824_v38 = vld [vmem:[%s6141_s1 + $0x48] sm:$0xff] }
 0x6f9   :  { %v1820_v56 = vadd.f32 %v5264_v36, %v1809_v12  ;;  %v1955_v2 = vadd.f32 %v1947_v43, %v1936_v39  ;;  %v1823_v39 = vld [vmem:[%s6141_s1 + $0x40] sm:$0xff] }
 0x6fb   :  { %3463 = vst.msk [vmem:[%s6143_s15 + $0x28] sm:$0xff] %vm61_vm0, %v1820_v56  ;;  %v1869_v36 = vmul.f32 %v5273_v42, %v1820_v56  ;;  %v1903_v61 = vmul.f32 %v5299_v48, %v1820_v56  ;;  %v1937_v5 = vmul.f32 %v5305_v52, %v1820_v56  ;;  %v5417_v42 = vld [vmem:[%s6147_s8 + $0x6] ss:$0 sm:$0xff] }
 0x6fc   :  { %v2293_v62 = vadd.f32 %v5417_v42, %v1824_v38 }
 0x6fd   :  { %v1888_v41 = vadd.f32 %v1880_v16, %v1869_v36  ;;  %v1922_v6 = vadd.f32 %v1914_v7, %v1903_v61  ;;  %v1956_v10 = vadd.f32 %v1948_v30, %v1937_v5 }
 0x6ff   :  { %v1892_v9 = vpack.c.bf16 %v1888_v41, %v1887_v31  ;;  %v1926_v51 = vpack.c.bf16 %v1922_v6, %v1921_v63  ;;  %v1960_v8 = vpack.c.bf16 %v1956_v10, %v1955_v2  ;;  %v1822_v41 = vld [vmem:[%s6141_s1 + $0x38] sm:$0xff] }
 0x701   :  { %3671 = vmatmul.msk.bf16.gmra.mxu3 %vm61_vm0, %v1892_v9  ;;  %3683 = vmatmul.msk.bf16.gmra.mxu2 %vm61_vm0, %v1926_v51 }
 0x702   :  { %3695 = vmatmul.msk.bf16.gmra.mxu0 %vm61_vm0, %v1960_v8 }
 0x704   :  { %v2100_v48 = vpop.f32.mrf.mxu0 }
 0x705   :  { %v3696_v52 = vmul.f32 -1.442695, %v2100_v48 }
 0x707   :  { %3998 = vpow2.f32 %v3696_v52 }
 0x709   :  { %v1994_v19 = vpop.f32.mrf.mxu3  ;;  %v2047_v61 = vpop.f32.mrf.mxu2 }
 0x70a   :  { %v2275_v17 = vadd.f32 %v5425_v25, %v1994_v19  ;;  %v2294_v44 = vmax.f32 %v2293_v62, %v1994_v19 }
 0x70c   :  { %v2276_v26 = vmax.f32 %v1824_v38, %v2275_v17  ;;  %v2295_v60 = vsub.f32 %v2293_v62, %v2294_v44  ;;  %v2102_v14 = vpop.f32.mrf.mxu0  ;;  %v2298_v32 = vsub.f32 %v1994_v19, %v2294_v44  ;;  %v2321_v45 = vadd.f32 %v5417_v42, %v2294_v44 }
 0x70d   :  { %v3999_v59 = vpop.eup %3998  ;;  %v3697_v58 = vmul.f32 -1.442695, %v2102_v14 }
 0x70e   :  { %v5429_v4 = vadd.f32 1.0, %v3999_v59  ;;  %v2277_v35 = vsub.f32 %v1824_v38, %v2276_v26  ;;  %v2280_v47 = vsub.f32 %v2275_v17, %v2276_v26  ;;  %v2296_v27 = vmul.f32 1.442695, %v2295_v60 }
 0x70f   :  { %4000 = vpow2.f32 %v3697_v58  ;;  %v2299_v28 = vmul.f32 1.442695, %v2298_v32 }
 0x710   :  { %4002 = vrcp.f32 %v5429_v4  ;;  %v2278_v55 = vmul.f32 1.442695, %v2277_v35  ;;  %v2281_v1 = vmul.f32 1.442695, %v2280_v47  ;;  %vm2157_vm12 = vweird.f32 %v5429_v4 }
 0x711   :  { %4004 = vpow2.f32 %v2296_v27  ;;  %v5435_v37 = vpop.f32.mrf.mxu3  ;;  %v2161_v10 = vand.u32 2147483647, %v5429_v4  ;;  %v2163_v9 = vand.u32 2147483648, %v5429_v4 }
 0x712   :  { %4006 = vpow2.f32 %v2278_v55  ;;  %v2306_v23 = vadd.f32 %v5425_v25, %v5435_v37  ;;  %v5445_v29 = vmax.f32 %v2321_v45, %v5435_v37 }
 0x713   :  { %4008 = vpow2.f32 %v2281_v1  ;;  %vm5484_vm14 = vcmp.eq.f32.partialorder %v2161_v10, 8.507059e+37 }
 0x714   :  { %v2307_v46 = vmax.f32 %v2294_v44, %v2306_v23  ;;  %v2105_v57 = vpop.f32.mrf.mxu0  ;;  %4010 = vpow2.f32 %v2299_v28  ;;  %v2323_v5 = vsub.f32 %v2321_v45, %v5445_v29  ;;  %v2326_v51 = vsub.f32 %v5435_v37, %v5445_v29 }
 0x715   :  { %v4001_v49 = vpop.eup %4000  ;;  %v3698_v8 = vmul.f32 -1.442695, %v2105_v57  ;;  %v2349_v19 = vadd.f32 %v5417_v42, %v5445_v29  ;;  %v2164_v45 = vor.u32 1.1754944e-38, %v2163_v9 }
 0x716   :  { %v5440_v13 = vpop.eup %4002  ;;  %v5442_v11 = vadd.f32 1.0, %v4001_v49  ;;  %v2308_v53 = vsub.f32 %v2294_v44, %v2307_v46  ;;  %v2311_v12 = vsub.f32 %v2306_v23, %v2307_v46  ;;  %v2324_v62 = vmul.f32 1.442695, %v2323_v5 }
 0x717   :  { %v4005_v34 = vpop.eup %4004  ;;  %v2153_v54 = vmul.f32 %v5440_v13, %v5429_v4  ;;  %vm2158_vm13 = vweird.f32 %v5440_v13 }
 0x718   :  { %v4007_v56 = vpop.eup %4006  ;;  %4012 = vrcp.f32 %v5442_v11  ;;  %v2309_v16 = vmul.f32 1.442695, %v2308_v53  ;;  %v2312_v7 = vmul.f32 1.442695, %v2311_v12  ;;  %v2304_v36 = vmul.f32 %v4005_v34, %v1823_v39  ;;  %v5496_v53 = vpop.f32.mrf.mxu2  ;;  %vm5507_vm1 = vmor %vm2157_vm12, %vm2158_vm13 }
 0x719   :  { %v2286_v3 = vmul.f32 %v4007_v56, %v1823_v39  ;;  %v5453_v43 = vpop.f32.mrf.mxu3  ;;  %v4009_v30 = vpop.eup %4008  ;;  %v2154_v31 = vsub.f32 1.0, %v2153_v54  ;;  %v2301_v26 = vmul.f32 %v4005_v34, %v1822_v41  ;;  %v2283_v55 = vmul.f32 %v4007_v56, %v1822_v41 }
 0x71a   :  { %4014 = vpow2.f32 %v2309_v16  ;;  %v4011_v63 = vpop.eup %4010  ;;  %v5475_v14 = vadd.f32 %v5425_v25, %v5453_v43  ;;  %v5479_v35 = vmax.f32 %v2349_v19, %v5453_v43  ;;  %v2284_v15 = vmul.f32 %v4009_v30, %v2047_v61 }
 0x71b   :  { %4016 = vpow2.f32 %v2312_v7  ;;  %v2287_v6 = vadd.f32 %v4009_v30, %v2286_v3  ;;  %v5466_v48 = vadd.f32 %v4011_v63, %v2304_v36  ;;  %v2155_v44 = vmul.f32 %v5440_v13, %v2154_v31 }
 0x71c   :  { %v2107_v38 = vpop.f32.mrf.mxu0  ;;  %v2302_v60 = vmul.f32 %v4011_v63, %v2047_v61  ;;  %v2176_v1 = vand.u32 2147483647, %v5442_v11  ;;  %v2178_v23 = vand.u32 2147483648, %v5442_v11  ;;  %v2335_v49 = vmax.f32 %v5445_v29, %v5475_v14 }
 0x71d   :  { %4018 = vrcp.f32 %v2287_v6  ;;  %v2156_v46 = vadd.f32 %v5440_v13, %v2155_v44  ;;  %v2351_v12 = vsub.f32 %v2349_v19, %v5479_v35  ;;  %v3699_v34 = vmul.f32 -1.442695, %v2107_v38 }
 0x71e   :  { %v5459_v2 = vpop.eup %4012  ;;  %4020 = vpow2.f32 %v3698_v8  ;;  %v5492_v57 = vadd.f32 %v2302_v60, %v2301_v26  ;;  %v2285_v7 = vadd.f32 %v2284_v15, %v2283_v55  ;;  %v2327_v36 = vmul.f32 1.442695, %v2326_v51 }
 0x71f   :  { %v2168_v52 = vmul.f32 %v5459_v2, %v5442_v11  ;;  %4022 = vpow2.f32 %v2324_v62  ;;  %vm2173_vm15 = vweird.f32 %v5459_v2  ;;  %vm2172_vm2 = vweird.f32 %v5442_v11 }
 0x720   :  { %v4015_v17 = vpop.eup %4014  ;;  %vm5512_vm3 = vcmp.eq.f32.partialorder %v2176_v1, 8.507059e+37  ;;  %v2160_v30 = vsel %vm5507_vm1, %v5440_v13, %v2156_v46  ;;  %v2179_v31 = vor.u32 1.1754944e-38, %v2178_v23  ;;  %v2336_v4 = vsub.f32 %v5445_v29, %v2335_v49  ;;  %vm5524_vm4 = vmor %vm2172_vm2, %vm2173_vm15  ;;  %v5565_v3 = vpop.f32.mrf.mxu2 }
 0x721   :  { %v2169_v59 = vsub.f32 1.0, %v2168_v52  ;;  %v2317_v58 = vmul.f32 %v4015_v17, %v5466_v48  ;;  %v5481_v47 = vpop.f32.mrf.mxu3  ;;  %v4017_v27 = vpop.eup %4016  ;;  %v2314_v54 = vmul.f32 %v4015_v17, %v5492_v57  ;;  %v2352_v6 = vmul.f32 1.442695, %v2351_v12 }
 0x722   :  { %v2315_v39 = vmul.f32 %v4017_v27, %v5496_v53  ;;  %v2362_v63 = vadd.f32 %v5425_v25, %v5481_v47  ;;  %v2354_v10 = vsub.f32 %v5453_v43, %v5479_v35  ;;  %v2377_v13 = vadd.f32 %v5417_v42, %v5479_v35 }
 0x723   :  { %v2170_v37 = vmul.f32 %v5459_v2, %v2169_v59  ;;  %v2318_v28 = vadd.f32 %v4017_v27, %v2317_v58  ;;  %v4019_v16 = vpop.eup %4018  ;;  %v2165_v19 = vsel %vm5484_vm14, %v2164_v45, %v2160_v30  ;;  %v2337_v26 = vmul.f32 1.442695, %v2336_v4 }
 0x724   :  { %v4021_v5 = vpop.eup %4020  ;;  %v2110_v41 = vpop.f32.mrf.mxu0  ;;  %v2289_v51 = vmul.f32 %v4019_v16, %v2285_v7  ;;  %v2316_v38 = vadd.f32 %v2315_v39, %v2314_v54  ;;  %v2363_v52 = vmax.f32 %v5479_v35, %v2362_v63  ;;  %v5543_v17 = vmax.f32 %v2377_v13, %v5481_v47 }
 0x725   :  { %4024 = vrcp.f32 %v2318_v28  ;;  %v2171_v56 = vadd.f32 %v5459_v2, %v2170_v37  ;;  %v4023_v29 = vpop.eup %4022  ;;  %v5540_v43 = vadd.f32 1.0, %v4021_v5  ;;  %v2339_v60 = vsub.f32 %v5475_v14, %v2335_v49 }
 0x726   :  { %4026 = vpow2.f32 %v3699_v34  ;;  %v2364_v59 = vsub.f32 %v5479_v35, %v2363_v52  ;;  %v2379_v58 = vsub.f32 %v2377_v13, %v5543_v17  ;;  %v3700_v27 = vmul.f32 -1.442695, %v2110_v41 }
 0x727   :  { %v2175_v8 = vsel %vm5524_vm4, %v5459_v2, %v2171_v56  ;;  %4028 = vpow2.f32 %v2327_v36  ;;  %v2502_v32 = vmul.f32 %v2289_v51, %v2165_v19  ;;  %v2355_v15 = vmul.f32 1.442695, %v2354_v10 }
 0x728   :  { %v2180_v2 = vsel %vm5512_vm3, %v2179_v31, %v2175_v8  ;;  %4030 = vpow2.f32 %v2352_v6  ;;  %v2332_v1 = vmul.f32 %v4023_v29, %v5466_v48  ;;  %v2365_v23 = vmul.f32 1.442695, %v2364_v59 }
 0x729   :  { %v5532_v9 = vpop.f32.mrf.mxu3  ;;  %4032 = vrcp.f32 %v5540_v43  ;;  %v2367_v28 = vsub.f32 %v2362_v63, %v2363_v52  ;;  %v2380_v35 = vmul.f32 1.442695, %v2379_v58  ;;  %v2382_v46 = vsub.f32 %v5481_v47, %v5543_v17 }
 0x72a   :  { %4034 = vpow2.f32 %v2337_v26  ;;  %v2340_v45 = vmul.f32 1.442695, %v2339_v60  ;;  %v5556_v12 = vadd.f32 %v5425_v25, %v5532_v9  ;;  %v2405_v48 = vadd.f32 %v5417_v42, %v5543_v17 }
 0x72b   :  { %v4025_v62 = vpop.eup %4024  ;;  %4036 = vpow2.f32 %v3700_v27  ;;  %v2368_v47 = vmul.f32 1.442695, %v2367_v28  ;;  %v2383_v7 = vmul.f32 1.442695, %v2382_v46  ;;  %v2329_v13 = vmul.f32 %v4023_v29, %v5492_v57  ;;  %v2054_v28 = vpop.f32.mrf.mxu2 }
 0x72c   :  { %v2320_v44 = vmul.f32 %v4025_v62, %v2316_v38  ;;  %v4027_v37 = vpop.eup %4026  ;;  %4038 = vpow2.f32 %v2355_v15  ;;  %v2112_v56 = vpop.f32.mrf.mxu0  ;;  %v5568_v36 = vmax.f32 %v2405_v48, %v5532_v9  ;;  %v2391_v5 = vmax.f32 %v5543_v17, %v5556_v12 }
 0x72d   :  { %v4029_v49 = vpop.eup %4028  ;;  %v5558_v34 = vadd.f32 1.0, %v4027_v37  ;;  %4040 = vpow2.f32 %v2365_v23  ;;  %v3701_v30 = vmul.f32 -1.442695, %v2112_v56  ;;  %vm2187_vm5 = vweird.f32 %v5540_v43 }
 0x72e   :  { %v2503_v55 = vmul.f32 %v2320_v44, %v2180_v2  ;;  %v4031_v39 = vpop.eup %4030  ;;  %v2333_v16 = vadd.f32 %v4029_v49, %v2332_v1  ;;  %4042 = vpow2.f32 %v2380_v35  ;;  %v2407_v41 = vsub.f32 %v2405_v48, %v5568_v36 }
 0x72f   :  { %v5570_v61 = vpop.eup %4032  ;;  %4044 = vpow2.f32 %v2340_v45  ;;  %v2410_v6 = vsub.f32 %v5532_v9, %v5568_v36  ;;  %v2330_v51 = vmul.f32 %v4029_v49, %v5496_v53  ;;  %v2392_v62 = vsub.f32 %v5543_v17, %v2391_v5 }
 0x730   :  { %v2510_v14 = vpack.c.bf16 %v2503_v55, %v2502_v32  ;;  %v4035_v4 = vpop.eup %4034  ;;  %v2360_v63 = vmul.f32 %v4031_v39, %v2333_v16  ;;  %4046 = vrcp.f32 %v5558_v34  ;;  %v2408_v8 = vmul.f32 1.442695, %v2407_v41 }
 0x731   :  { %v5562_v54 = vpop.f32.mrf.mxu3  ;;  %v4037_v11 = vpop.eup %4036  ;;  %4048 = vpow2.f32 %v2368_v47  ;;  %v2183_v52 = vmul.f32 %v5570_v61, %v5540_v43  ;;  %v2345_v60 = vmul.f32 %v4035_v4, %v2333_v16  ;;  %v2411_v29 = vmul.f32 1.442695, %v2410_v6 }
 0x732   :  { %3712 = vmatmul.msk.bf16.vlgmr.msrb.gmra.mxu1 %vm61_vm0, %v2510_v14  ;;  %v2418_v31 = vadd.f32 %v5425_v25, %v5562_v54  ;;  %v4039_v10 = vpop.eup %4038  ;;  %4050 = vpow2.f32 %v2383_v7  ;;  %v5586_v9 = vadd.f32 1.0, %v4037_v11  ;;  %v2331_v59 = vadd.f32 %v2330_v51, %v2329_v13 }
 0x733   :  { %v4041_v38 = vpop.eup %4040  ;;  %4052 = vpow2.f32 %v3701_v30  ;;  %v2361_v26 = vadd.f32 %v4039_v10, %v2360_v63  ;;  %v2184_v17 = vsub.f32 1.0, %v2183_v52  ;;  %v2393_v55 = vmul.f32 1.442695, %v2392_v62 }
 0x734   :  { %v2419_v19 = vmax.f32 %v5568_v36, %v2418_v31  ;;  %v4043_v44 = vpop.eup %4042  ;;  %4054 = vpow2.f32 %v2408_v8  ;;  %v2357_v23 = vmul.f32 %v4031_v39, %v2331_v59  ;;  %v2358_v46 = vmul.f32 %v4039_v10, %v5565_v3 }
 0x735   :  { %v4045_v57 = vpop.eup %4044  ;;  %v2388_v2 = vmul.f32 %v4043_v44, %v2361_v26  ;;  %v2373_v58 = vmul.f32 %v4041_v38, %v2361_v26  ;;  %4056 = vrcp.f32 %v5586_v9  ;;  %v2395_v45 = vsub.f32 %v5556_v12, %v2391_v5  ;;  %v2057_v26 = vpop.f32.mrf.mxu2 }
 0x736   :  { %v5588_v53 = vpop.eup %4046  ;;  %v2420_v27 = vsub.f32 %v5568_v36, %v2419_v19  ;;  %v2423_v15 = vsub.f32 %v2418_v31, %v2419_v19  ;;  %v2346_v1 = vadd.f32 %v4045_v57, %v2345_v60  ;;  %4058 = vpow2.f32 %v2411_v29 }
 0x737   :  { %v4049_v32 = vpop.eup %4048  ;;  %v2198_v49 = vmul.f32 %v5588_v53, %v5558_v34  ;;  %v2359_v30 = vadd.f32 %v2358_v46, %v2357_v23  ;;  %v2396_v31 = vmul.f32 1.442695, %v2395_v45  ;;  %v2185_v63 = vmul.f32 %v5570_v61, %v2184_v17 }
 0x738   :  { %v4051_v37 = vpop.eup %4050  ;;  %v2421_v14 = vmul.f32 1.442695, %v2420_v27  ;;  %v2374_v47 = vadd.f32 %v4049_v32, %v2373_v58  ;;  %v2424_v39 = vmul.f32 1.442695, %v2423_v15  ;;  %v2342_v12 = vmul.f32 %v4035_v4, %v2331_v59 }
 0x739   :  { %v4053_v35 = vpop.eup %4052  ;;  %v2389_v56 = vadd.f32 %v4051_v37, %v2388_v2  ;;  %v2343_v5 = vmul.f32 %v4045_v57, %v5565_v3  ;;  %v2199_v11 = vsub.f32 1.0, %v2198_v49  ;;  %v2370_v10 = vmul.f32 %v4041_v38, %v2359_v30 }
 0x73a   :  { %v4055_v48 = vpop.eup %4054  ;;  %v5596_v16 = vadd.f32 1.0, %v4053_v35  ;;  %4060 = vpow2.f32 %v2421_v14  ;;  %v2371_v13 = vmul.f32 %v4049_v32, %v2054_v28  ;;  %v2385_v8 = vmul.f32 %v4043_v44, %v2359_v30 }
 0x73b   :  { %4062 = vpow2.f32 %v2393_v55  ;;  %v2416_v7 = vmul.f32 %v4055_v48, %v2389_v56  ;;  %v5600_v41 = vpop.eup %4056  ;;  %v2386_v52 = vmul.f32 %v4051_v37, %v2054_v28  ;;  %vm2188_vm6 = vweird.f32 %v5570_v61 }
 0x73c   :  { %4064 = vrcp.f32 %v5596_v16  ;;  %v4059_v6 = vpop.eup %4058  ;;  %v2344_v3 = vadd.f32 %v2343_v5, %v2342_v12  ;;  %v2186_v38 = vadd.f32 %v5570_v61, %v2185_v63  ;;  %v2200_v57 = vmul.f32 %v5588_v53, %v2199_v11  ;;  %vm5623_vm8 = vmor %vm2187_vm5, %vm2188_vm6 }
 0x73d   :  { %4066 = vrcp.f32 %v2346_v1  ;;  %v5603_v62 = vadd.f32 %v4059_v6, %v2416_v7  ;;  %v2372_v29 = vadd.f32 %v2371_v13, %v2370_v10  ;;  %v2213_v59 = vmul.f32 %v5600_v41, %v5586_v9 }
 0x73e   :  { %4068 = vrcp.f32 %v2374_v47  ;;  %vm2203_vm7 = vweird.f32 %v5588_v53  ;;  %v2387_v27 = vadd.f32 %v2386_v52, %v2385_v8  ;;  %v2193_v17 = vand.u32 2147483648, %v5540_v43 }
 0x73f   :  { %4070 = vpow2.f32 %v2424_v39  ;;  %v2201_v55 = vadd.f32 %v5588_v53, %v2200_v57  ;;  %v2191_v1 = vand.u32 2147483647, %v5540_v43  ;;  %vm2202_vm9 = vweird.f32 %v5558_v34 }
 0x740   :  { %v4061_v51 = vpop.eup %4060  ;;  %4072 = vpow2.f32 %v2396_v31  ;;  %v2206_v23 = vand.u32 2147483647, %v5558_v34  ;;  %v2208_v28 = vand.u32 2147483648, %v5558_v34  ;;  %v2413_v35 = vmul.f32 %v4055_v48, %v2387_v27  ;;  %vm2204_vm10 = vmor %vm2202_vm9, %vm2203_vm7 }
 0x741   :  { %v4063_v19 = vpop.eup %4062  ;;  %v2429_v60 = vmul.f32 %v4061_v51, %v5603_v62  ;;  %v2190_v49 = vsel %vm5623_vm8, %v5570_v61, %v2186_v38  ;;  %v2414_v47 = vmul.f32 %v4059_v6, %v2057_v26  ;;  %v2205_v39 = vsel %vm2204_vm10, %v5588_v53, %v2201_v55  ;;  %v5640_v6 = vpop.f32.mrf.mxu2 }
 0x742   :  { %v5607_v4 = vpop.eup %4064  ;;  %v2401_v32 = vmul.f32 %v4063_v19, %v2389_v56  ;;  %v2194_v30 = vor.u32 1.1754944e-38, %v2193_v17  ;;  %v2209_v31 = vor.u32 1.1754944e-38, %v2208_v28  ;;  %v2214_v34 = vsub.f32 1.0, %v2213_v59 }
 0x743   :  { %v4067_v44 = vpop.eup %4066  ;;  %v2228_v2 = vmul.f32 %v5607_v4, %v5596_v16  ;;  %vm2192_vm11 = vcmp.eq.f32.partialorder %v2191_v1, 8.507059e+37  ;;  %vm2207_vm12 = vcmp.eq.f32.partialorder %v2206_v23, 8.507059e+37  ;;  %v5637_v12 = vadd.f32 %v2414_v47, %v2413_v35 }
 0x744   :  { %v4069_v58 = vpop.eup %4068  ;;  %v2348_v14 = vmul.f32 %v4067_v44, %v2344_v3  ;;  %v2195_v48 = vsel %vm2192_vm11, %v2194_v30, %v2190_v49  ;;  %v2210_v63 = vsel %vm2207_vm12, %v2209_v31, %v2205_v39  ;;  %v2215_v53 = vmul.f32 %v5600_v41, %v2214_v34 }
 0x745   :  { %v4071_v15 = vpop.eup %4070  ;;  %v2376_v56 = vmul.f32 %v4069_v58, %v2372_v29  ;;  %v2229_v43 = vsub.f32 1.0, %v2228_v2  ;;  %v2426_v10 = vmul.f32 %v4061_v51, %v5637_v12  ;;  %v2398_v52 = vmul.f32 %v4063_v19, %v2387_v27 }
 0x746   :  { %v2430_v46 = vadd.f32 %v4071_v15, %v2429_v60  ;;  %v4073_v45 = vpop.eup %4072  ;;  %v2504_v5 = vmul.f32 %v2348_v14, %v2195_v48  ;;  %v2427_v13 = vmul.f32 %v4071_v15, %v5640_v6  ;;  %vm2233_vm13 = vweird.f32 %v5607_v4 }
 0x747   :  { %v2402_v7 = vadd.f32 %v4073_v45, %v2401_v32  ;;  %v2230_v61 = vmul.f32 %v5607_v4, %v2229_v43  ;;  %v2505_v11 = vmul.f32 %v2376_v56, %v2210_v63  ;;  %v2399_v3 = vmul.f32 %v4073_v45, %v2057_v26 }
 0x748   :  { %4074 = vrcp.f32 %v2430_v46  ;;  %vm2218_vm14 = vweird.f32 %v5600_v41  ;;  %v2238_v57 = vand.u32 2147483648, %v5596_v16  ;;  %v2216_v44 = vadd.f32 %v5600_v41, %v2215_v53 }
 0x749   :  { %4076 = vrcp.f32 %v2402_v7  ;;  %v2511_v8 = vpack.c.bf16 %v2505_v11, %v2504_v5  ;;  %v2231_v60 = vadd.f32 %v5607_v4, %v2230_v61  ;;  %vm2232_vm15 = vweird.f32 %v5596_v16 }
 0x74a   :  { %v2236_v51 = vand.u32 2147483647, %v5596_v16  ;;  %v2428_v29 = vadd.f32 %v2427_v13, %v2426_v10  ;;  %vm2217_vm1 = vweird.f32 %v5586_v9  ;;  %v2223_v26 = vand.u32 2147483648, %v5586_v9  ;;  %vm2234_vm2 = vmor %vm2232_vm15, %vm2233_vm13 }
 0x74b   :  { %3713 = vmatmul.msk.bf16.gmra.mxu1 %vm61_vm0, %v2511_v8  ;;  %v2221_v59 = vand.u32 2147483647, %v5586_v9  ;;  %v2400_v2 = vadd.f32 %v2399_v3, %v2398_v52  ;;  %v2235_v58 = vsel %vm2234_vm2, %v5607_v4, %v2231_v60  ;;  %vm2219_vm3 = vmor %vm2217_vm1, %vm2218_vm14  ;;  %v2239_v32 = vor.u32 1.1754944e-38, %v2238_v57 }
 0x74c   :  { %v2220_v17 = vsel %vm2219_vm3, %v5600_v41, %v2216_v44  ;;  %vm2237_vm4 = vcmp.eq.f32.partialorder %v2236_v51, 8.507059e+37  ;;  %v2224_v16 = vor.u32 1.1754944e-38, %v2223_v26  ;;  %v2433_v9 = vadd.f32 %v5417_v42, %v5568_v36 }
 0x74d   :  { %v2240_v15 = vsel %vm2237_vm4, %v2239_v32, %v2235_v58  ;;  %vm2222_vm5 = vcmp.eq.f32.partialorder %v2221_v59, 8.507059e+37 }
 0x74e   :  { %v4075_v38 = vpop.eup %4074  ;;  %v2225_v1 = vsel %vm2222_vm5, %v2224_v16, %v2220_v17  ;;  %v2434_v4 = vmax.f32 %v2433_v9, %v5562_v54 }
 0x74f   :  { %v4077_v19 = vpop.eup %4076  ;;  %v2432_v27 = vmul.f32 %v4075_v38, %v2428_v29 }
 0x750   :  { %v2404_v55 = vmul.f32 %v4077_v19, %v2400_v2  ;;  %v2435_v14 = vsub.f32 %v2433_v9, %v2434_v4  ;;  %v2438_v41 = vsub.f32 %v5562_v54, %v2434_v4  ;;  %v2461_v45 = vadd.f32 %v5417_v42, %v2434_v4 }
 0x751   :  { %v2507_v37 = vmul.f32 %v2432_v27, %v2240_v15 }
 0x752   :  { %v2506_v23 = vmul.f32 %v2404_v55, %v2225_v1  ;;  %v2436_v49 = vmul.f32 1.442695, %v2435_v14  ;;  %v2439_v56 = vmul.f32 1.442695, %v2438_v41 }
 0x754   :  { %v2512_v28 = vpack.c.bf16 %v2507_v37, %v2506_v23 }
 0x75b   :  { %3714 = vmatmul.msk.bf16.gmra.mxu1 %vm61_vm0, %v2512_v28 }
 0x77f   :  { %v2115_v35 = vpop.f32.mrf.mxu0 }
 0x780   :  { %v3702_v46 = vmul.f32 -1.442695, %v2115_v35 }
 0x782   :  { %4078 = vpow2.f32 %v3702_v46 }
 0x783   :  { %4080 = vpow2.f32 %v2436_v49 }
 0x784   :  { %v2009_v47 = vpop.f32.mrf.mxu3  ;;  %4082 = vpow2.f32 %v2439_v56  ;;  %v2062_v9 = vpop.f32.mrf.mxu2 }
 0x785   :  { %v2446_v43 = vadd.f32 %v5425_v25, %v2009_v47  ;;  %v2462_v39 = vmax.f32 %v2461_v45, %v2009_v47 }
 0x787   :  { %v2447_v7 = vmax.f32 %v2434_v4, %v2446_v43  ;;  %v2463_v30 = vsub.f32 %v2461_v45, %v2462_v39  ;;  %v2117_v36 = vpop.f32.mrf.mxu0  ;;  %v2466_v34 = vsub.f32 %v2009_v47, %v2462_v39  ;;  %v2489_v13 = vadd.f32 %v5417_v42, %v2462_v39 }
 0x788   :  { %v4079_v31 = vpop.eup %4078  ;;  %v3703_v48 = vmul.f32 -1.442695, %v2117_v36 }
 0x789   :  { %v5665_v63 = vadd.f32 1.0, %v4079_v31  ;;  %v2448_v54 = vsub.f32 %v2434_v4, %v2447_v7  ;;  %v2451_v61 = vsub.f32 %v2446_v43, %v2447_v7  ;;  %v2464_v5 = vmul.f32 1.442695, %v2463_v30  ;;  %v4081_v11 = vpop.eup %4080 }
 0x78a   :  { %4084 = vpow2.f32 %v3703_v48  ;;  %v2467_v8 = vmul.f32 1.442695, %v2466_v34  ;;  %v4083_v38 = vpop.eup %4082  ;;  %v2444_v57 = vmul.f32 %v4081_v11, %v5603_v62  ;;  %v2441_v62 = vmul.f32 %v4081_v11, %v5637_v12 }
 0x78b   :  { %4086 = vrcp.f32 %v5665_v63  ;;  %v2449_v53 = vmul.f32 1.442695, %v2448_v54  ;;  %v2452_v10 = vmul.f32 1.442695, %v2451_v61  ;;  %v2442_v32 = vmul.f32 %v4083_v38, %v5640_v6 }
 0x78c   :  { %4088 = vpow2.f32 %v2464_v5  ;;  %v2011_v52 = vpop.f32.mrf.mxu3  ;;  %v2445_v2 = vadd.f32 %v4083_v38, %v2444_v57  ;;  %vm2247_vm6 = vweird.f32 %v5665_v63  ;;  %v2251_v38 = vand.u32 2147483647, %v5665_v63 }
 0x78d   :  { %4090 = vpow2.f32 %v2449_v53  ;;  %v2474_v3 = vadd.f32 %v5425_v25, %v2011_v52  ;;  %v2490_v60 = vmax.f32 %v2489_v13, %v2011_v52  ;;  %v2443_v12 = vadd.f32 %v2442_v32, %v2441_v62  ;;  %v2064_v53 = vpop.f32.mrf.mxu2 }
 0x78e   :  { %4092 = vpow2.f32 %v2452_v10  ;;  %v2253_v57 = vand.u32 2147483648, %v5665_v63  ;;  %vm2252_vm12 = vcmp.eq.f32.partialorder %v2251_v38, 8.507059e+37 }
 0x78f   :  { %v2475_v44 = vmax.f32 %v2462_v39, %v2474_v3  ;;  %3467 = vst.msk [vmem:[%s6143_s15 + $0x48] sm:$0xff] %vm61_vm0, %v2490_v60  ;;  %4094 = vpow2.f32 %v2467_v8  ;;  %v2491_v25 = vsub.f32 %v2489_v13, %v2490_v60  ;;  %v2494_v58 = vsub.f32 %v2011_v52, %v2490_v60 }
 0x790   :  { %v4085_v51 = vpop.eup %4084 }
 0x791   :  { %v5675_v42 = vpop.eup %4086  ;;  %v5677_v29 = vadd.f32 1.0, %v4085_v51  ;;  %v2476_v19 = vsub.f32 %v2462_v39, %v2475_v44  ;;  %v2479_v26 = vsub.f32 %v2474_v3, %v2475_v44  ;;  %v2492_v1 = vmul.f32 1.442695, %v2491_v25 }
 0x792   :  { %v4089_v59 = vpop.eup %4088  ;;  %v2243_v17 = vmul.f32 %v5675_v42, %v5665_v63  ;;  %v2495_v4 = vmul.f32 1.442695, %v2494_v58  ;;  %vm2248_vm7 = vweird.f32 %v5675_v42 }
 0x793   :  { %v4091_v27 = vpop.eup %4090  ;;  %4096 = vrcp.f32 %v5677_v29  ;;  %v2477_v55 = vmul.f32 1.442695, %v2476_v19  ;;  %v2480_v15 = vmul.f32 1.442695, %v2479_v26  ;;  %v2472_v28 = vmul.f32 %v4089_v59, %v2445_v2  ;;  %vm5696_vm9 = vmor %vm2247_vm6, %vm2248_vm7 }
 0x794   :  { %v2457_v16 = vmul.f32 %v4091_v27, %v2445_v2  ;;  %v4093_v37 = vpop.eup %4092  ;;  %v2244_v14 = vsub.f32 1.0, %v2243_v17  ;;  %v2469_v41 = vmul.f32 %v4089_v59, %v2443_v12  ;;  %v2454_v54 = vmul.f32 %v4091_v27, %v2443_v12 }
 0x795   :  { %4098 = vpow2.f32 %v2477_v55  ;;  %v4095_v23 = vpop.eup %4094  ;;  %v2455_v61 = vmul.f32 %v4093_v37, %v2062_v9  ;;  %v2268_v51 = vand.u32 2147483648, %v5677_v29  ;;  %vm2262_vm10 = vweird.f32 %v5677_v29 }
 0x796   :  { %4100 = vpow2.f32 %v2480_v15  ;;  %v2458_v35 = vadd.f32 %v4093_v37, %v2457_v16  ;;  %v2473_v46 = vadd.f32 %v4095_v23, %v2472_v28  ;;  %v2470_v49 = vmul.f32 %v4095_v23, %v2062_v9 }
 0x797   :  { %4102 = vpow2.f32 %v2492_v1  ;;  %v2245_v47 = vmul.f32 %v5675_v42, %v2244_v14  ;;  %v2456_v26 = vadd.f32 %v2455_v61, %v2454_v54  ;;  %v2266_v25 = vand.u32 2147483647, %v5677_v29 }
 0x798   :  { %4104 = vpow2.f32 %v2495_v4  ;;  %v2471_v30 = vadd.f32 %v2470_v49, %v2469_v41  ;;  %v2254_v27 = vor.u32 1.1754944e-38, %v2253_v57  ;;  %v2269_v32 = vor.u32 1.1754944e-38, %v2268_v51 }
 0x799   :  { %v4097_v6 = vpop.eup %4096  ;;  %4106 = vrcp.f32 %v2458_v35  ;;  %v2246_v48 = vadd.f32 %v5675_v42, %v2245_v47  ;;  %vm2267_vm13 = vcmp.eq.f32.partialorder %v2266_v25, 8.507059e+37 }
 0x79a   :  { %v2258_v45 = vmul.f32 %v4097_v6, %v5677_v29  ;;  %vm2263_vm8 = vweird.f32 %v4097_v6 }
 0x79b   :  { %v4099_v56 = vpop.eup %4098  ;;  %vm2264_vm11 = vmor %vm2262_vm10, %vm2263_vm8  ;;  %v2250_v63 = vsel %vm5696_vm9, %v5675_v42, %v2246_v48 }
 0x79c   :  { %v2259_v43 = vsub.f32 1.0, %v2258_v45  ;;  %v2485_v39 = vmul.f32 %v4099_v56, %v2473_v46  ;;  %v4101_v7 = vpop.eup %4100  ;;  %v2482_v10 = vmul.f32 %v4099_v56, %v2471_v30  ;;  %v2255_v55 = vsel %vm2252_vm12, %v2254_v27, %v2250_v63 }
 0x79d   :  { %v4103_v34 = vpop.eup %4102  ;;  %v2483_v8 = vmul.f32 %v4101_v7, %v2064_v53 }
 0x79e   :  { %v2260_v36 = vmul.f32 %v4097_v6, %v2259_v43  ;;  %v2486_v31 = vadd.f32 %v4101_v7, %v2485_v39  ;;  %v4105_v5 = vpop.eup %4104  ;;  %v2500_v11 = vmul.f32 %v4103_v34, %v2473_v46  ;;  %v2497_v52 = vmul.f32 %v4103_v34, %v2471_v30 }
 0x79f   :  { %v2498_v3 = vmul.f32 %v4105_v5, %v2064_v53  ;;  %v4107_v60 = vpop.eup %4106  ;;  %v2484_v58 = vadd.f32 %v2483_v8, %v2482_v10 }
 0x7a0   :  { %4108 = vrcp.f32 %v2486_v31  ;;  %v2261_v13 = vadd.f32 %v4097_v6, %v2260_v36  ;;  %v2501_v44 = vadd.f32 %v4105_v5, %v2500_v11  ;;  %v2460_v2 = vmul.f32 %v4107_v60, %v2456_v26 }
 0x7a1   :  { %v2499_v59 = vadd.f32 %v2498_v3, %v2497_v52 }
 0x7a2   :  { %3466 = vst.msk [vmem:[%s6143_s15 + $0x40] sm:$0xff] %vm61_vm0, %v2501_v44  ;;  %v2265_v62 = vsel %vm2264_vm11, %v4097_v6, %v2261_v13  ;;  %v2508_v15 = vmul.f32 %v2460_v2, %v2255_v55 }
 0x7a3   :  { %3465 = vst.msk [vmem:[%s6143_s15 + $0x38] sm:$0xff] %vm61_vm0, %v2499_v59  ;;  %v2270_v16 = vsel %vm2267_vm13, %v2269_v32, %v2265_v62 }
 0x7a6   :  { %v4109_v29 = vpop.eup %4108 }
 0x7a7   :  { %v2488_v17 = vmul.f32 %v4109_v29, %v2484_v58 }
 0x7a9   :  { %v2509_v37 = vmul.f32 %v2488_v17, %v2270_v16 }
 0x7ab   :  { %v2513_v1 = vpack.c.bf16 %v2509_v37, %v2508_v15 }
 0x7ad   :  { %3715 = vmatmul.msk.bf16.gmra.mxu1 %vm61_vm0, %v2513_v1 }
 0x7af   :  { %v2547_v42 = vpop.f32.mrf.mxu1 }
 0x7b0   :  { %v5716_v23 = vadd.f32 %v2547_v42, %v5114_v18 }
 0x7b2   :  { %v2579_v28 = vsel %vm61_vm0, %v5716_v23, 0.0 }
 0x7b3   :  { %2580 = vadd.xlane.f32.xlu1 %v2579_v28 }
 0x7b7   :  { %v2549_v9 = vpop.f32.mrf.mxu1 }
 0x7b8   :  { %v5721_v4 = vadd.f32 %v2549_v9, %v5129_v21 }
 0x7ba   :  { %v2582_v12 = vsel %vm61_vm0, %v5721_v4, 0.0 }
 0x7bb   :  { %2583 = vadd.xlane.f32.xlu2 %v2582_v12 }
 0x7c8   :  { %v2552_v14 = vpop.f32.mrf.mxu1 }
 0x7c9   :  { %v5726_v35 = vadd.f32 %v2552_v14, %v5140_v50 }
 0x7cb   :  { %v2585_v18 = vsel %vm61_vm0, %v5726_v35, 0.0 }
 0x7cc   :  { %2586 = vadd.xlane.f32.xlu0 %v2585_v18 }
 0x7d0   :  { %v2554_v6 = vpop.f32.mrf.mxu1 }
 0x7d1   :  { %v5731_v41 = vadd.f32 %v2554_v6, %v5149_v40 }
 0x7d3   :  { %v2588_v21 = vsel %vm61_vm0, %v5731_v41, 0.0 }
 0x7d4   :  { %2589 = vadd.xlane.f32.xlu1 %v2588_v21 }
 0x7d8   :  { %v2557_v46 = vpop.f32.mrf.mxu1 }
 0x7d9   :  { %v5736_v49 = vadd.f32 %v2557_v46, %v5157_v20 }
 0x7db   :  { %v2591_v50 = vsel %vm61_vm0, %v5736_v49, 0.0 }
 0x7dc   :  { %2592 = vadd.xlane.f32.xlu2 %v2591_v50 }
 0x7e0   :  { %v2559_v45 = vpop.f32.mrf.mxu1 }
 0x7e1   :  { %v5741_v56 = vadd.f32 %v2559_v45, %v5164_v24 }
 0x7e3   :  { %v2594_v40 = vsel %vm61_vm0, %v5741_v56, 0.0 }
 0x7e4   :  { %2595 = vadd.xlane.f32.xlu0 %v2594_v40 }
 0x826   :  { %v2581_v47 = vpop.xlane.xlu1 %2580 }
 0x827   :  { %v2603_v43 = vmul.f32 %v2581_v47, %v4287_v22 }
 0x829   :  { %v5747_v39 = vsub.f32 %v5716_v23, %v2603_v43 }
 0x82a   :  { %v2562_v20 = vpop.f32.mrf.mxu1 }
 0x82b   :  { %v5750_v7 = vadd.f32 %v2562_v20, %v5173_v33  ;;  %v2619_v30 = vmul.f32 %v5747_v39, %v5747_v39 }
 0x82d   :  { %v2627_v24 = vsel %vm61_vm0, %v2619_v30, 0.0  ;;  %v2597_v36 = vsel %vm61_vm0, %v5750_v7, 0.0 }
 0x82e   :  { %v2584_v31 = vpop.xlane.xlu2 %2583  ;;  %2628 = vadd.xlane.f32.xlu1 %v2627_v24  ;;  %2598 = vadd.xlane.f32.xlu0 %v2597_v36 }
 0x82f   :  { %v2604_v34 = vmul.f32 %v2584_v31, %v4287_v22 }
 0x831   :  { %v5759_v48 = vsub.f32 %v5721_v4, %v2604_v34 }
 0x832   :  { %v2564_v54 = vpop.f32.mrf.mxu1 }
 0x833   :  { %v5762_v33 = vadd.f32 %v2564_v54, %v5185_v0  ;;  %v2620_v61 = vmul.f32 %v5759_v48, %v5759_v48  ;;  %v5816_v54 = vld [vmem:[%s6145_s7 + $0x2] ss:$0 sm:$0xff] }
 0x835   :  { %v2630_v5 = vsel %vm61_vm0, %v2620_v61, 0.0  ;;  %v2600_v11 = vsel %vm61_vm0, %v5762_v33, 0.0 }
 0x836   :  { %2631 = vadd.xlane.f32.xlu2 %v2630_v5  ;;  %2601 = vadd.xlane.f32.xlu1 %v2600_v11 }
 0x83f   :  { %v2587_v53 = vpop.xlane.xlu0 %2586 }
 0x840   :  { %v2605_v10 = vmul.f32 %v2587_v53, %v4287_v22  ;;  %v5823_v53 = vld [vmem:[%s6145_s7 + $0x3] ss:$0 sm:$0xff] }
 0x842   :  { %v5771_v13 = vsub.f32 %v5726_v35, %v2605_v10 }
 0x844   :  { %v2621_v0 = vmul.f32 %v5771_v13, %v5771_v13 }
 0x846   :  { %v2633_v8 = vsel %vm61_vm0, %v2621_v0, 0.0 }
 0x847   :  { %v2590_v52 = vpop.xlane.xlu1 %2589  ;;  %2634 = vadd.xlane.f32.xlu2 %v2633_v8 }
 0x848   :  { %v2606_v3 = vmul.f32 %v2590_v52, %v4287_v22 }
 0x84a   :  { %v5778_v60 = vsub.f32 %v5731_v41, %v2606_v3 }
 0x84c   :  { %v2622_v38 = vmul.f32 %v5778_v60, %v5778_v60 }
 0x84e   :  { %v2636_v57 = vsel %vm61_vm0, %v2622_v38, 0.0  ;;  %v5842_v38 = vld [vmem:[%s6147_s8 + $0xa] ss:$0 sm:$0xff] }
 0x84f   :  { %v2593_v44 = vpop.xlane.xlu2 %2592  ;;  %2637 = vadd.xlane.f32.xlu0 %v2636_v57 }
 0x850   :  { %v2607_v51 = vmul.f32 %v2593_v44, %v4287_v22  ;;  %v2777_v44 = vld [vmem:[%s6141_s1 + $0x30] sm:$0xff] }
 0x852   :  { %v5785_v19 = vsub.f32 %v5736_v49, %v2607_v51  ;;  %v5850_v51 = vld [vmem:[%s6147_s8 + $0xb] ss:$0 sm:$0xff] }
 0x854   :  { %v2623_v26 = vmul.f32 %v5785_v19, %v5785_v19 }
 0x856   :  { %v2639_v25 = vsel %vm61_vm0, %v2623_v26, 0.0 }
 0x857   :  { %2640 = vadd.xlane.f32.xlu1 %v2639_v25  ;;  %v2596_v59 = vpop.xlane.xlu0 %2595  ;;  %v3820_v25 = vld [vmem:[%s6148_s10 + $0x8] sm:$0xff] }
 0x858   :  { %v2608_v63 = vmul.f32 %v2596_v59, %v4287_v22  ;;  %v3830_v59 = vld [vmem:[%s6149_s12 + $0x8] sm:$0xff]  ;;  %2908 = vmatpush.bf16.msrb.mxu3 %v3820_v25 }
 0x859   :  { %2977 = vmatpush.bf16.msra.mxu2 %v3830_v59 }
 0x85a   :  { %v5792_v2 = vsub.f32 %v5741_v56, %v2608_v63 }
 0x85c   :  { %v2624_v62 = vmul.f32 %v5792_v2, %v5792_v2 }
 0x85e   :  { %v2642_v58 = vsel %vm61_vm0, %v2624_v62, 0.0 }
 0x85f   :  { %2643 = vadd.xlane.f32.xlu2 %v2642_v58 }
 0x8a1   :  { %v2629_v29 = vpop.xlane.xlu1 %2628  ;;  %v2599_v27 = vpop.xlane.xlu0 %2598 }
 0x8a2   :  { %v2651_v32 = vmul.f32 %v2629_v29, %v4287_v22  ;;  %v2609_v17 = vmul.f32 %v2599_v27, %v4287_v22  ;;  %v2858_v29 = vmul.f32 %v5850_v51, %v2777_v44 }
 0x8a4   :  { %v2659_v55 = vadd.f32 1e-05, %v2651_v32  ;;  %v5800_v16 = vsub.f32 %v5750_v7, %v2609_v17 }
 0x8a6   :  { %4110 = vrsqrt.f32 %v2659_v55  ;;  %v2625_v15 = vmul.f32 %v5800_v16, %v5800_v16  ;;  %vm2673_vm15 = vweird.f32 %v2659_v55 }
 0x8a8   :  { %v2645_v37 = vsel %vm61_vm0, %v2625_v15, 0.0 }
 0x8a9   :  { %v2632_v1 = vpop.xlane.xlu2 %2631  ;;  %v2602_v42 = vpop.xlane.xlu1 %2601  ;;  %2646 = vadd.xlane.f32.xlu0 %v2645_v37 }
 0x8aa   :  { %v2652_v28 = vmul.f32 %v2632_v1, %v4287_v22  ;;  %v2610_v9 = vmul.f32 %v2602_v42, %v4287_v22  ;;  %v3819_v1 = vld [vmem:[%s6148_s10] sm:$0xff] }
 0x8ab   :  { %v3829_v42 = vld [vmem:[%s6149_s12] sm:$0xff]  ;;  %2909 = vmatpush.bf16.msrb.mxu3 %v3819_v1 }
 0x8ac   :  { %v4111_v12 = vpop.eup %4110  ;;  %v2660_v14 = vadd.f32 1e-05, %v2652_v28  ;;  %v5808_v18 = vsub.f32 %v5762_v33, %v2610_v9  ;;  %2978 = vmatpush.bf16.msra.mxu2 %v3829_v42 }
 0x8ad   :  { %v2668_v6 = vmul.f32 %v4111_v12, %v2659_v55  ;;  %vm2674_vm14 = vweird.f32 %v4111_v12 }
 0x8ae   :  { %4112 = vrsqrt.f32 %v2660_v14  ;;  %v2626_v21 = vmul.f32 %v5808_v18, %v5808_v18  ;;  %vm2675_vm1 = vmor %vm2673_vm15, %vm2674_vm14  ;;  %vm2683_vm3 = vweird.f32 %v2660_v14 }
 0x8af   :  { %v2669_v46 = vmul.f32 %v4111_v12, %v2668_v6 }
 0x8b0   :  { %v2648_v50 = vsel %vm61_vm0, %v2626_v21, 0.0 }
 0x8b1   :  { %v2670_v45 = vmul.f32 0.5, %v2669_v46  ;;  %2649 = vadd.xlane.f32.xlu1 %v2648_v50 }
 0x8b3   :  { %v2671_v40 = vsub.f32 1.5, %v2670_v45 }
 0x8b4   :  { %v4113_v47 = vpop.eup %4112 }
 0x8b5   :  { %v2678_v43 = vmul.f32 %v4113_v47, %v2660_v14  ;;  %v2672_v20 = vmul.f32 %v4111_v12, %v2671_v40  ;;  %vm2684_vm2 = vweird.f32 %v4113_v47 }
 0x8b6   :  { %vm2685_vm4 = vmor %vm2683_vm3, %vm2684_vm2 }
 0x8b7   :  { %v2679_v30 = vmul.f32 %v4113_v47, %v2678_v43  ;;  %v2676_v36 = vsel %vm2675_vm1, %v4111_v12, %v2672_v20 }
 0x8b8   :  { %v2747_v61 = vmul.f32 %v2676_v36, %v5747_v39  ;;  %v5832_v39 = vld [vmem:[%s6147_s8 + $0x8] ss:$0 sm:$0xff] }
 0x8b9   :  { %v2680_v24 = vmul.f32 0.5, %v2679_v30 }
 0x8ba   :  { %v2758_v10 = vmul.f32 %v5816_v54, %v2747_v61  ;;  %v2635_v0 = vpop.xlane.xlu2 %2634 }
 0x8bb   :  { %v2681_v31 = vsub.f32 1.5, %v2680_v24  ;;  %v2653_v52 = vmul.f32 %v2635_v0, %v4287_v22 }
 0x8bc   :  { %v2769_v3 = vadd.f32 %v5823_v53, %v2758_v10 }
 0x8bd   :  { %v2682_v34 = vmul.f32 %v4113_v47, %v2681_v31  ;;  %v2661_v57 = vadd.f32 1e-05, %v2653_v52 }
 0x8be   :  { %v2813_v63 = vmul.f32 %v5832_v39, %v2769_v3  ;;  %v2847_v58 = vmul.f32 %v5842_v38, %v2769_v3  ;;  %v2859_v37 = vmul.f32 %v5850_v51, %v2769_v3 }
 0x8bf   :  { %v2686_v5 = vsel %vm2685_vm4, %v4113_v47, %v2682_v34  ;;  %4114 = vrsqrt.f32 %v2661_v57  ;;  %vm2693_vm6 = vweird.f32 %v2661_v57 }
 0x8c0   :  { %v2748_v11 = vmul.f32 %v2686_v5, %v5759_v48  ;;  %v5837_v48 = vld [vmem:[%s6147_s8 + $0x9] ss:$0 sm:$0xff]  ;;  %v2866_v6 = vadd.f32 %v2858_v29, %v2847_v58 }
 0x8c1   :  { %v2824_v62 = vmul.f32 %v5837_v48, %v2777_v44  ;;  %v2825_v32 = vmul.f32 %v5837_v48, %v2769_v3 }
 0x8c2   :  { %v2759_v8 = vmul.f32 %v5816_v54, %v2748_v11  ;;  %v2638_v27 = vpop.xlane.xlu0 %2637 }
 0x8c3   :  { %v2654_v17 = vmul.f32 %v2638_v27, %v4287_v22  ;;  %v2832_v28 = vadd.f32 %v2824_v62, %v2813_v63 }
 0x8c4   :  { %v5853_v26 = vadd.f32 %v5823_v53, %v2759_v8 }
 0x8c5   :  { %v4115_v9 = vpop.eup %4114  ;;  %v2662_v12 = vadd.f32 1e-05, %v2654_v17 }
 0x8c6   :  { %v2814_v55 = vmul.f32 %v5832_v39, %v5853_v26  ;;  %v2848_v15 = vmul.f32 %v5842_v38, %v5853_v26  ;;  %v2688_v46 = vmul.f32 %v4115_v9, %v2661_v57  ;;  %vm2694_vm5 = vweird.f32 %v4115_v9 }
 0x8c7   :  { %4116 = vrsqrt.f32 %v2662_v12  ;;  %vm2695_vm7 = vmor %vm2693_vm6, %vm2694_vm5  ;;  %vm2703_vm9 = vweird.f32 %v2662_v12 }
 0x8c8   :  { %v2833_v14 = vadd.f32 %v2825_v32, %v2814_v55  ;;  %v2867_v21 = vadd.f32 %v2859_v37, %v2848_v15  ;;  %v2689_v40 = vmul.f32 %v4115_v9, %v2688_v46  ;;  %v2826_v37 = vmul.f32 %v5837_v48, %v5853_v26 }
 0x8ca   :  { %v2840_v50 = vpack.c.bf16 %v2833_v14, %v2832_v28  ;;  %v2874_v45 = vpack.c.bf16 %v2867_v21, %v2866_v6  ;;  %v2690_v47 = vmul.f32 0.5, %v2689_v40  ;;  %v2641_v43 = vpop.xlane.xlu1 %2640 }
 0x8cb   :  { %v2655_v20 = vmul.f32 %v2641_v43, %v4287_v22 }
 0x8cc   :  { %3730 = vmatmul.msk.bf16.vlgmr.msrb.gmra.mxu3 %vm61_vm0, %v2840_v50  ;;  %3742 = vmatmul.msk.bf16.vlgmr.msra.gmra.mxu2 %vm61_vm0, %v2874_v45  ;;  %v2691_v30 = vsub.f32 1.5, %v2690_v47 }
 0x8cd   :  { %v4117_v24 = vpop.eup %4116  ;;  %v2663_v36 = vadd.f32 1e-05, %v2655_v20 }
 0x8ce   :  { %v2692_v31 = vmul.f32 %v4115_v9, %v2691_v30  ;;  %v2698_v34 = vmul.f32 %v4117_v24, %v2662_v12  ;;  %vm2704_vm8 = vweird.f32 %v4117_v24 }
 0x8cf   :  { %4118 = vrsqrt.f32 %v2663_v36  ;;  %vm2705_vm10 = vmor %vm2703_vm9, %vm2704_vm8  ;;  %vm2713_vm12 = vweird.f32 %v2663_v36 }
 0x8d0   :  { %v2696_v61 = vsel %vm2695_vm7, %v4115_v9, %v2692_v31  ;;  %v2699_v5 = vmul.f32 %v4117_v24, %v2698_v34 }
 0x8d1   :  { %v2749_v11 = vmul.f32 %v2696_v61, %v5771_v13 }
 0x8d2   :  { %v2700_v10 = vmul.f32 0.5, %v2699_v5  ;;  %v2644_v0 = vpop.xlane.xlu2 %2643 }
 0x8d3   :  { %v2656_v8 = vmul.f32 %v2644_v0, %v4287_v22  ;;  %v2760_v52 = vmul.f32 %v5816_v54, %v2749_v11 }
 0x8d4   :  { %v2701_v3 = vsub.f32 1.5, %v2700_v10 }
 0x8d5   :  { %v4119_v44 = vpop.eup %4118  ;;  %v2664_v25 = vadd.f32 1e-05, %v2656_v8  ;;  %v2771_v63 = vadd.f32 %v5823_v53, %v2760_v52 }
 0x8d6   :  { %v2702_v59 = vmul.f32 %v4117_v24, %v2701_v3  ;;  %v2708_v57 = vmul.f32 %v4119_v44, %v2663_v36  ;;  %vm2714_vm11 = vweird.f32 %v4119_v44 }
 0x8d7   :  { %4120 = vrsqrt.f32 %v2664_v25  ;;  %v2815_v17 = vmul.f32 %v5832_v39, %v2771_v63  ;;  %v2849_v1 = vmul.f32 %v5842_v38, %v2771_v63  ;;  %vm2715_vm13 = vmor %vm2713_vm12, %vm2714_vm11  ;;  %v2827_v12 = vmul.f32 %v5837_v48, %v2771_v63 }
 0x8d8   :  { %v2706_v62 = vsel %vm2705_vm10, %v4117_v24, %v2702_v59  ;;  %v2709_v58 = vmul.f32 %v4119_v44, %v2708_v57  ;;  %v2861_v6 = vmul.f32 %v5850_v51, %v2771_v63  ;;  %vm2723_vm15 = vweird.f32 %v2664_v25 }
 0x8d9   :  { %v2750_v13 = vmul.f32 %v2706_v62, %v5778_v60  ;;  %v2860_v60 = vmul.f32 %v5850_v51, %v5853_v26  ;;  %v2834_v50 = vadd.f32 %v2826_v37, %v2815_v17  ;;  %v3828_v17 = vld [vmem:[%s6150_s11 + $0x38] sm:$0xff] }
 0x8da   :  { %v2710_v29 = vmul.f32 0.5, %v2709_v58  ;;  %3204 = vmatpush.bf16.msrb.mxu0 %v3828_v17 }
 0x8db   :  { %v2761_v27 = vmul.f32 %v5816_v54, %v2750_v13  ;;  %v2868_v47 = vadd.f32 %v2860_v60, %v2849_v1 }
 0x8dc   :  { %v2711_v32 = vsub.f32 1.5, %v2710_v29 }
 0x8dd   :  { %v4121_v55 = vpop.eup %4120  ;;  %v2772_v15 = vadd.f32 %v5823_v53, %v2761_v27 }
 0x8de   :  { %v2712_v42 = vmul.f32 %v4119_v44, %v2711_v32  ;;  %v2718_v28 = vmul.f32 %v4121_v55, %v2664_v25  ;;  %vm2724_vm14 = vweird.f32 %v4121_v55 }
 0x8df   :  { %v2816_v9 = vmul.f32 %v5832_v39, %v2772_v15  ;;  %v2850_v14 = vmul.f32 %v5842_v38, %v2772_v15  ;;  %vm2725_vm1 = vmor %vm2723_vm15, %vm2724_vm14  ;;  %v2828_v8 = vmul.f32 %v5837_v48, %v2772_v15  ;;  %v2862_v52 = vmul.f32 %v5850_v51, %v2772_v15 }
 0x8e0   :  { %v2716_v21 = vsel %vm2715_vm13, %v4119_v44, %v2712_v42  ;;  %v2719_v46 = vmul.f32 %v4121_v55, %v2718_v28  ;;  %v3826_v28 = vld [vmem:[%s6150_s11 + $0x28] sm:$0xff] }
 0x8e1   :  { %v2751_v45 = vmul.f32 %v2716_v21, %v5785_v19  ;;  %v2835_v40 = vadd.f32 %v2827_v12, %v2816_v9  ;;  %v2869_v43 = vadd.f32 %v2861_v6, %v2850_v14  ;;  %v3825_v12 = vld [vmem:[%s6150_s11 + $0x20] sm:$0xff] }
 0x8e2   :  { %v2720_v20 = vmul.f32 0.5, %v2719_v46 }
 0x8e3   :  { %v2841_v30 = vpack.c.bf16 %v2835_v40, %v2834_v50  ;;  %v2875_v26 = vpack.c.bf16 %v2869_v43, %v2868_v47  ;;  %v2762_v36 = vmul.f32 %v5816_v54, %v2751_v45 }
 0x8e4   :  { %v2721_v24 = vsub.f32 1.5, %v2720_v20 }
 0x8e5   :  { %3731 = vmatmul.msk.bf16.gmra.mxu3 %vm61_vm0, %v2841_v30  ;;  %3743 = vmatmul.msk.bf16.gmra.mxu2 %vm61_vm0, %v2875_v26  ;;  %v2773_v19 = vadd.f32 %v5823_v53, %v2762_v36 }
 0x8e6   :  { %v2722_v31 = vmul.f32 %v4121_v55, %v2721_v24 }
 0x8e7   :  { %v2817_v10 = vmul.f32 %v5832_v39, %v2773_v19  ;;  %v2851_v0 = vmul.f32 %v5842_v38, %v2773_v19  ;;  %v2829_v44 = vmul.f32 %v5837_v48, %v2773_v19  ;;  %v2863_v25 = vmul.f32 %v5850_v51, %v2773_v19 }
 0x8e8   :  { %v2726_v34 = vsel %vm2725_vm1, %v4121_v55, %v2722_v31  ;;  %v3827_v55 = vld [vmem:[%s6150_s11 + $0x30] sm:$0xff] }
 0x8e9   :  { %v2752_v61 = vmul.f32 %v2726_v34, %v5792_v2  ;;  %v2836_v59 = vadd.f32 %v2828_v8, %v2817_v10  ;;  %v2870_v63 = vadd.f32 %v2862_v52, %v2851_v0  ;;  %3205 = vmatpush.bf16.msrb.mxu0 %v3827_v55  ;;  %v3824_v8 = vld [vmem:[%s6150_s11 + $0x18] sm:$0xff] }
 0x8eb   :  { %v2763_v5 = vmul.f32 %v5816_v54, %v2752_v61 }
 0x8ed   :  { %v5906_v11 = vadd.f32 %v5823_v53, %v2763_v5  ;;  %3206 = vmatpush.bf16.msrb.mxu0 %v3826_v28 }
 0x8ef   :  { %v2818_v3 = vmul.f32 %v5832_v39, %v5906_v11  ;;  %v2852_v2 = vmul.f32 %v5842_v38, %v5906_v11  ;;  %v2830_v5 = vmul.f32 %v5837_v48, %v5906_v11  ;;  %v2864_v10 = vmul.f32 %v5850_v51, %v5906_v11 }
 0x8f1   :  { %v2837_v57 = vadd.f32 %v2829_v44, %v2818_v3  ;;  %v2871_v62 = vadd.f32 %v2863_v25, %v2852_v2  ;;  %3207 = vmatpush.bf16.msrb.mxu0 %v3825_v12  ;;  %v3823_v2 = vld [vmem:[%s6150_s11 + $0x10] sm:$0xff] }
 0x8f3   :  { %v2842_v58 = vpack.c.bf16 %v2837_v57, %v2836_v59  ;;  %v2876_v13 = vpack.c.bf16 %v2871_v62, %v2870_v63 }
 0x8f5   :  { %3732 = vmatmul.msk.bf16.gmra.mxu3 %vm61_vm0, %v2842_v58  ;;  %3744 = vmatmul.msk.bf16.gmra.mxu2 %vm61_vm0, %v2876_v13 }
 0x8f6   :  { %3208 = vmatpush.bf16.msrb.mxu0 %v3824_v8 }
 0x8fa   :  { %3209 = vmatpush.bf16.msrb.mxu0 %v3823_v2 }
 0x91c   :  { %v2647_v29 = vpop.xlane.xlu0 %2646 }
 0x91d   :  { %v2657_v27 = vmul.f32 %v2647_v29, %v4287_v22 }
 0x91f   :  { %v2665_v32 = vadd.f32 1e-05, %v2657_v27 }
 0x921   :  { %4122 = vrsqrt.f32 %v2665_v32  ;;  %vm2733_vm3 = vweird.f32 %v2665_v32 }
 0x924   :  { %v2650_v15 = vpop.xlane.xlu1 %2649 }
 0x925   :  { %v2658_v37 = vmul.f32 %v2650_v15, %v4287_v22 }
 0x927   :  { %v4123_v1 = vpop.eup %4122  ;;  %v2666_v42 = vadd.f32 1e-05, %v2658_v37 }
 0x928   :  { %v2728_v60 = vmul.f32 %v4123_v1, %v2665_v32  ;;  %vm2734_vm2 = vweird.f32 %v4123_v1 }
 0x929   :  { %4124 = vrsqrt.f32 %v2666_v42  ;;  %vm2735_vm4 = vmor %vm2733_vm3, %vm2734_vm2  ;;  %vm2743_vm6 = vweird.f32 %v2666_v42 }
 0x92a   :  { %v2729_v9 = vmul.f32 %v4123_v1, %v2728_v60 }
 0x92c   :  { %v2730_v14 = vmul.f32 0.5, %v2729_v9 }
 0x92e   :  { %v2731_v6 = vsub.f32 1.5, %v2730_v14 }
 0x92f   :  { %v4125_v21 = vpop.eup %4124 }
 0x930   :  { %v2732_v46 = vmul.f32 %v4123_v1, %v2731_v6  ;;  %v2738_v50 = vmul.f32 %v4125_v21, %v2666_v42  ;;  %vm2744_vm5 = vweird.f32 %v4125_v21 }
 0x931   :  { %vm2745_vm7 = vmor %vm2743_vm6, %vm2744_vm5 }
 0x932   :  { %v2736_v45 = vsel %vm2735_vm4, %v4123_v1, %v2732_v46  ;;  %v2739_v40 = vmul.f32 %v4125_v21, %v2738_v50 }
 0x933   :  { %v2753_v47 = vmul.f32 %v2736_v45, %v5800_v16 }
 0x934   :  { %v2740_v43 = vmul.f32 0.5, %v2739_v40 }
 0x935   :  { %v2764_v30 = vmul.f32 %v5816_v54, %v2753_v47 }
 0x936   :  { %v2741_v20 = vsub.f32 1.5, %v2740_v43 }
 0x937   :  { %v2775_v36 = vadd.f32 %v5823_v53, %v2764_v30 }
 0x938   :  { %v2742_v26 = vmul.f32 %v4125_v21, %v2741_v20 }
 0x939   :  { %v2819_v61 = vmul.f32 %v5832_v39, %v2775_v36  ;;  %v2853_v16 = vmul.f32 %v5842_v38, %v2775_v36  ;;  %v2865_v0 = vmul.f32 %v5850_v51, %v2775_v36 }
 0x93a   :  { %v2746_v24 = vsel %vm2745_vm7, %v4125_v21, %v2742_v26 }
 0x93b   :  { %v2754_v31 = vmul.f32 %v2746_v24, %v5808_v18  ;;  %v2838_v52 = vadd.f32 %v2830_v5, %v2819_v61  ;;  %v2872_v11 = vadd.f32 %v2864_v10, %v2853_v16 }
 0x93d   :  { %v2765_v34 = vmul.f32 %v5816_v54, %v2754_v31  ;;  %v2831_v54 = vmul.f32 %v5837_v48, %v2775_v36  ;;  %v3822_v48 = vld [vmem:[%s6150_s11 + $0x8] sm:$0xff] }
 0x93e   :  { %3210 = vmatpush.bf16.msrb.mxu0 %v3822_v48 }
 0x93f   :  { %v2776_v19 = vadd.f32 %v5823_v53, %v2765_v34 }
 0x941   :  { %3464 = vst.msk [vmem:[%s6143_s15 + $0x30] sm:$0xff] %vm61_vm0, %v2776_v19  ;;  %v2820_v18 = vmul.f32 %v5832_v39, %v2776_v19  ;;  %v2854_v53 = vmul.f32 %v5842_v38, %v2776_v19  ;;  %v3821_v38 = vld [vmem:[%s6150_s11] sm:$0xff] }
 0x942   :  { %3211 = vmatpush.bf16.msrb.mxu0 %v3821_v38 }
 0x943   :  { %v2839_v3 = vadd.f32 %v2831_v54, %v2820_v18  ;;  %v2873_v44 = vadd.f32 %v2865_v0, %v2854_v53 }
 0x945   :  { %v2843_v39 = vpack.c.bf16 %v2839_v3, %v2838_v52  ;;  %v2877_v25 = vpack.c.bf16 %v2873_v44, %v2872_v11 }
 0x947   :  { %3733 = vmatmul.msk.bf16.gmra.mxu3 %vm61_vm0, %v2843_v39  ;;  %3745 = vmatmul.msk.bf16.gmra.mxu2 %vm61_vm0, %v2877_v25 }
 0x94f   :  { %v2911_v51 = vpop.f32.mrf.mxu3  ;;  %v2980_v6 = vpop.f32.mrf.mxu2 }
 0x950   :  { %v2931_v59 = vmax.f32 %v2911_v51, 0.0  ;;  %v3746_v21 = vmul.f32 -1.442695, %v2980_v6 }
 0x952   :  { %v2939_v62 = vmul.f32 %v2931_v59, %v2931_v59  ;;  %4126 = vpow2.f32 %v3746_v21 }
 0x957   :  { %v2913_v57 = vpop.f32.mrf.mxu3  ;;  %v2982_v46 = vpop.f32.mrf.mxu2 }
 0x958   :  { %v2932_v63 = vmax.f32 %v2913_v57, 0.0  ;;  %v3747_v50 = vmul.f32 -1.442695, %v2982_v46  ;;  %v4127_v45 = vpop.eup %4126 }
 0x959   :  { %v3024_v40 = vadd.f32 1.0, %v4127_v45 }
 0x95a   :  { %v2940_v58 = vmul.f32 %v2932_v63, %v2932_v63  ;;  %4128 = vpow2.f32 %v3747_v50 }
 0x95b   :  { %4130 = vrcp.f32 %v3024_v40  ;;  %v3043_v2 = vand.u32 2147483648, %v3024_v40  ;;  %vm3037_vm9 = vweird.f32 %v3024_v40  ;;  %v3041_v39 = vand.u32 2147483647, %v3024_v40 }
 0x95c   :  { %v3152_v13 = vpack.c.bf16 %v2940_v58, %v2939_v62 }
 0x95d   :  { %v3044_v51 = vor.u32 1.1754944e-38, %v3043_v2  ;;  %vm3042_vm11 = vcmp.eq.f32.partialorder %v3041_v39, 8.507059e+37 }
 0x95e   :  { %3212 = vmatmul.bf16.vlgmr.msrb.gmra.mxu0 %v3152_v13 }
 0x960   :  { %v4129_v47 = vpop.eup %4128 }
 0x961   :  { %v3025_v20 = vadd.f32 1.0, %v4129_v47  ;;  %v4131_v26 = vpop.eup %4130 }
 0x962   :  { %v3033_v24 = vmul.f32 %v4131_v26, %v3024_v40  ;;  %vm3038_vm8 = vweird.f32 %v4131_v26 }
 0x963   :  { %4132 = vrcp.f32 %v3025_v20  ;;  %vm3039_vm10 = vmor %vm3037_vm9, %vm3038_vm8  ;;  %vm3052_vm13 = vweird.f32 %v3025_v20 }
 0x964   :  { %v3034_v16 = vsub.f32 1.0, %v3033_v24 }
 0x966   :  { %v3035_v53 = vmul.f32 %v4131_v26, %v3034_v16 }
 0x968   :  { %v2916_v29 = vpop.f32.mrf.mxu3  ;;  %v2985_v43 = vpop.f32.mrf.mxu2  ;;  %v3036_v3 = vadd.f32 %v4131_v26, %v3035_v53 }
 0x969   :  { %v2933_v27 = vmax.f32 %v2916_v29, 0.0  ;;  %v3748_v36 = vmul.f32 -1.442695, %v2985_v43  ;;  %v4133_v5 = vpop.eup %4132  ;;  %v3058_v29 = vand.u32 2147483648, %v3025_v20 }
 0x96a   :  { %v3048_v0 = vmul.f32 %v4133_v5, %v3025_v20  ;;  %v3040_v48 = vsel %vm3039_vm10, %v4131_v26, %v3036_v3  ;;  %vm3053_vm12 = vweird.f32 %v4133_v5 }
 0x96b   :  { %v2941_v55 = vmul.f32 %v2933_v27, %v2933_v27  ;;  %4134 = vpow2.f32 %v3748_v36  ;;  %v3045_v57 = vsel %vm3042_vm11, %v3044_v51, %v3040_v48  ;;  %vm3054_vm14 = vmor %vm3052_vm13, %vm3053_vm12 }
 0x96c   :  { %v3049_v11 = vsub.f32 1.0, %v3048_v0 }
 0x96e   :  { %v3050_v38 = vmul.f32 %v4133_v5, %v3049_v11 }
 0x970   :  { %v2918_v32 = vpop.f32.mrf.mxu3  ;;  %v2987_v34 = vpop.f32.mrf.mxu2  ;;  %v3051_v13 = vadd.f32 %v4133_v5, %v3050_v38 }
 0x971   :  { %v2934_v17 = vmax.f32 %v2918_v32, 0.0  ;;  %v3749_v8 = vmul.f32 -1.442695, %v2987_v34  ;;  %v4135_v52 = vpop.eup %4134  ;;  %v3056_v32 = vand.u32 2147483647, %v3025_v20 }
 0x972   :  { %v3026_v25 = vadd.f32 1.0, %v4135_v52 }
 0x973   :  { %v2942_v15 = vmul.f32 %v2934_v17, %v2934_v17  ;;  %4136 = vpow2.f32 %v3749_v8  ;;  %vm3057_vm15 = vcmp.eq.f32.partialorder %v3056_v32, 8.507059e+37 }
 0x974   :  { %4138 = vrcp.f32 %v3026_v25  ;;  %v3073_v36 = vand.u32 2147483648, %v3026_v25  ;;  %vm3067_vm2 = vweird.f32 %v3026_v25 }
 0x975   :  { %v3153_v37 = vpack.c.bf16 %v2942_v15, %v2941_v55 }
 0x977   :  { %3217 = vmatmul.bf16.gmra.mxu0 %v3153_v37  ;;  %v3055_v37 = vsel %vm3054_vm14, %v4133_v5, %v3051_v13 }
 0x978   :  { %v2921_v1 = vpop.f32.mrf.mxu3  ;;  %v2990_v44 = vpop.f32.mrf.mxu2 }
 0x979   :  { %v2935_v42 = vmax.f32 %v2921_v1, 0.0  ;;  %v3750_v59 = vmul.f32 -1.442695, %v2990_v44  ;;  %v4137_v62 = vpop.eup %4136 }
 0x97a   :  { %v3027_v17 = vadd.f32 1.0, %v4137_v62  ;;  %v4139_v1 = vpop.eup %4138 }
 0x97b   :  { %v2943_v9 = vmul.f32 %v2935_v42, %v2935_v42  ;;  %4140 = vpow2.f32 %v3750_v59  ;;  %v3059_v42 = vor.u32 1.1754944e-38, %v3058_v29  ;;  %vm3068_vm1 = vweird.f32 %v4139_v1 }
 0x97c   :  { %4142 = vrcp.f32 %v3027_v17  ;;  %vm3069_vm3 = vmor %vm3067_vm2, %vm3068_vm1  ;;  %v3088_v0 = vand.u32 2147483648, %v3027_v17  ;;  %vm3082_vm6 = vweird.f32 %v3027_v17  ;;  %v3086_v52 = vand.u32 2147483647, %v3027_v17 }
 0x97e   :  { %v3089_v39 = vor.u32 1.1754944e-38, %v3088_v0  ;;  %vm3087_vm8 = vcmp.eq.f32.partialorder %v3086_v52, 8.507059e+37 }
 0x980   :  { %v2923_v28 = vpop.f32.mrf.mxu3  ;;  %v2992_v55 = vpop.f32.mrf.mxu2 }
 0x981   :  { %v2936_v60 = vmax.f32 %v2923_v28, 0.0  ;;  %v3751_v28 = vmul.f32 -1.442695, %v2992_v55 }
 0x983   :  { %v2944_v12 = vmul.f32 %v2936_v60, %v2936_v60  ;;  %v3060_v60 = vsel %vm3057_vm15, %v3059_v42, %v3055_v37  ;;  %4144 = vpow2.f32 %v3751_v28 }
 0x985   :  { %v3154_v14 = vpack.c.bf16 %v2944_v12, %v2943_v9  ;;  %v4141_v12 = vpop.eup %4140 }
 0x986   :  { %v3028_v21 = vadd.f32 1.0, %v4141_v12  ;;  %v4143_v45 = vpop.eup %4142 }
 0x987   :  { %3222 = vmatmul.bf16.gmra.mxu0 %v3154_v14  ;;  %v3063_v14 = vmul.f32 %v4139_v1, %v3026_v25  ;;  %v3078_v43 = vmul.f32 %v4143_v45, %v3027_v17  ;;  %vm3083_vm5 = vweird.f32 %v4143_v45 }
 0x988   :  { %4146 = vrcp.f32 %v3028_v21  ;;  %vm3084_vm7 = vmor %vm3082_vm6, %vm3083_vm5  ;;  %v3103_v59 = vand.u32 2147483648, %v3028_v21  ;;  %vm3097_vm10 = vweird.f32 %v3028_v21 }
 0x989   :  { %v3064_v50 = vsub.f32 1.0, %v3063_v14  ;;  %v4145_v40 = vpop.eup %4144  ;;  %v3079_v26 = vsub.f32 1.0, %v3078_v43 }
 0x98a   :  { %v5978_v20 = vadd.f32 1.0, %v4145_v40  ;;  %v3104_v29 = vor.u32 1.1754944e-38, %v3103_v59 }
 0x98b   :  { %v3065_v47 = vmul.f32 %v4139_v1, %v3064_v50  ;;  %v3080_v34 = vmul.f32 %v4143_v45, %v3079_v26 }
 0x98c   :  { %4148 = vrcp.f32 %v5978_v20  ;;  %v3118_v37 = vand.u32 2147483648, %v5978_v20  ;;  %vm3112_vm14 = vweird.f32 %v5978_v20 }
 0x98e   :  { %v4147_v24 = vpop.eup %4146 }
 0x98f   :  { %vm3098_vm9 = vweird.f32 %v4147_v24 }
 0x990   :  { %vm3099_vm11 = vmor %vm3097_vm10, %vm3098_vm9 }
 0x992   :  { %v4149_v53 = vpop.eup %4148 }
 0x993   :  { %v3108_v2 = vmul.f32 %v4149_v53, %v5978_v20  ;;  %vm3113_vm13 = vweird.f32 %v4149_v53 }
 0x994   :  { %vm3114_vm15 = vmor %vm3112_vm14, %vm3113_vm13 }
 0x9ca   :  { %v2926_v30 = vpop.f32.mrf.mxu3 }
 0x9cb   :  { %v2937_v31 = vmax.f32 %v2926_v30, 0.0  ;;  %v3066_v30 = vadd.f32 %v4139_v1, %v3065_v47 }
 0x9cd   :  { %v2945_v10 = vmul.f32 %v2937_v31, %v2937_v31  ;;  %v3070_v31 = vsel %vm3069_vm3, %v4139_v1, %v3066_v30  ;;  %v3116_v1 = vand.u32 2147483647, %v5978_v20 }
 0x9cf   :  { %vm3117_vm1 = vcmp.eq.f32.partialorder %v3116_v1, 8.507059e+37 }
 0x9d2   :  { %v2928_v19 = vpop.f32.mrf.mxu3 }
 0x9d3   :  { %v2938_v61 = vmax.f32 %v2928_v19, 0.0  ;;  %v3093_v19 = vmul.f32 %v4147_v24, %v3028_v21 }
 0x9d5   :  { %v2946_v18 = vmul.f32 %v2938_v61, %v2938_v61  ;;  %v3074_v61 = vor.u32 1.1754944e-38, %v3073_v36 }
 0x9d7   :  { %v3155_v54 = vpack.c.bf16 %v2946_v18, %v2945_v10  ;;  %v3081_v18 = vadd.f32 %v4143_v45, %v3080_v34 }
 0x9d9   :  { %3227 = vmatmul.bf16.gmra.mxu0 %v3155_v54  ;;  %v3094_v54 = vsub.f32 1.0, %v3093_v19  ;;  %v3085_v11 = vsel %vm3084_vm7, %v4143_v45, %v3081_v18 }
 0x9db   :  { %v3213_v63 = vpop.f32.mrf.mxu0  ;;  %v3095_v44 = vmul.f32 %v4147_v24, %v3094_v54 }
 0x9dc   :  { %v3233_v58 = vmul.f32 %v3213_v63, %v3045_v57  ;;  %v3101_v63 = vand.u32 2147483647, %v3028_v21  ;;  %v2995_v21 = vpop.f32.mrf.mxu2 }
 0x9dd   :  { %v3096_v51 = vadd.f32 %v4147_v24, %v3095_v44 }
 0x9de   :  { %v5969_v27 = vadd.f32 %v3233_v58, %v5716_v23  ;;  %vm3102_vm12 = vcmp.eq.f32.partialorder %v3101_v63, 8.507059e+37 }
 0x9df   :  { %v3100_v58 = vsel %vm3099_vm11, %v4147_v24, %v3096_v51 }
 0x9e0   :  { %v3252_v15 = vsel %vm61_vm0, %v5969_v27, 0.0  ;;  %v3105_v32 = vsel %vm3102_vm12, %v3104_v29, %v3100_v58 }
 0x9e1   :  { %3253 = vadd.xlane.f32.xlu2 %v3252_v15 }
 0x9e3   :  { %v3215_v9 = vpop.f32.mrf.mxu0 }
 0x9e4   :  { %v3234_v23 = vmul.f32 %v3215_v9, %v3060_v60  ;;  %v3119_v60 = vor.u32 1.1754944e-38, %v3118_v37  ;;  %v2997_v50 = vpop.f32.mrf.mxu2 }
 0x9e5   :  { %v3753_v45 = vmul.f32 -1.442695, %v2997_v50 }
 0x9e6   :  { %v5974_v6 = vadd.f32 %v3234_v23, %v5721_v4  ;;  %v3071_v4 = vand.u32 2147483647, %v3026_v25  ;;  %v3090_v25 = vsel %vm3087_vm8, %v3089_v39, %v3085_v11 }
 0x9e8   :  { %v3255_v46 = vsel %vm61_vm0, %v5974_v6, 0.0  ;;  %vm3072_vm4 = vcmp.eq.f32.partialorder %v3071_v4, 8.507059e+37 }
 0x9e9   :  { %3256 = vadd.xlane.f32.xlu0 %v3255_v46  ;;  %v3075_v16 = vsel %vm3072_vm4, %v3074_v61, %v3070_v31  ;;  %v3752_v46 = vmul.f32 -1.442695, %v2995_v21 }
 0x9eb   :  { %4150 = vpow2.f32 %v3752_v46 }
 0x9ec   :  { %4152 = vpow2.f32 %v3753_v45 }
 0x9f1   :  { %v4151_v40 = vpop.eup %4150 }
 0x9f2   :  { %v3030_v47 = vadd.f32 1.0, %v4151_v40  ;;  %v4153_v43 = vpop.eup %4152 }
 0x9f3   :  { %v3031_v20 = vadd.f32 1.0, %v4153_v43 }
 0x9f4   :  { %v3218_v5 = vpop.f32.mrf.mxu0  ;;  %4154 = vrcp.f32 %v3030_v47  ;;  %v3133_v19 = vand.u32 2147483648, %v3030_v47  ;;  %vm3127_vm3 = vweird.f32 %v3030_v47  ;;  %v3131_v61 = vand.u32 2147483647, %v3030_v47 }
 0x9f5   :  { %v3235_v10 = vmul.f32 %v3218_v5, %v3075_v16  ;;  %4156 = vrcp.f32 %v3031_v20  ;;  %v3148_v52 = vand.u32 2147483648, %v3031_v20  ;;  %vm3142_vm7 = vweird.f32 %v3031_v20 }
 0x9f6   :  { %vm3132_vm5 = vcmp.eq.f32.partialorder %v3131_v61, 8.507059e+37  ;;  %v3146_v11 = vand.u32 2147483647, %v3031_v20 }
 0x9f7   :  { %v5982_v8 = vadd.f32 %v3235_v10, %v5726_v35  ;;  %v3109_v35 = vsub.f32 1.0, %v3108_v2  ;;  %v3134_v10 = vor.u32 1.1754944e-38, %v3133_v19 }
 0x9f8   :  { %vm3147_vm9 = vcmp.eq.f32.partialorder %v3146_v11, 8.507059e+37  ;;  %v6068_v11 = vld [vmem:[%s6151_s13] ss:$0 sm:$0xff] }
 0x9f9   :  { %v3258_v3 = vsel %vm61_vm0, %v5982_v8, 0.0  ;;  %v3110_v13 = vmul.f32 %v4149_v53, %v3109_v35 }
 0x9fa   :  { %3259 = vadd.xlane.f32.xlu1 %v3258_v3  ;;  %v4155_v30 = vpop.eup %4154 }
 0x9fb   :  { %v3111_v15 = vadd.f32 %v4149_v53, %v3110_v13  ;;  %v3123_v26 = vmul.f32 %v4155_v30, %v3030_v47  ;;  %v4157_v24 = vpop.eup %4156  ;;  %vm3128_vm2 = vweird.f32 %v4155_v30 }
 0x9fc   :  { %v3220_v48 = vpop.f32.mrf.mxu0  ;;  %v3138_v4 = vmul.f32 %v4157_v24, %v3031_v20  ;;  %vm3129_vm4 = vmor %vm3127_vm3, %vm3128_vm2  ;;  %vm3143_vm6 = vweird.f32 %v4157_v24 }
 0x9fd   :  { %v3236_v38 = vmul.f32 %v3220_v48, %v3090_v25  ;;  %v3115_v28 = vsel %vm3114_vm15, %v4149_v53, %v3111_v15  ;;  %vm3144_vm8 = vmor %vm3142_vm7, %vm3143_vm6  ;;  %v3149_v48 = vor.u32 1.1754944e-38, %v3148_v52 }
 0x9fe   :  { %v3120_v9 = vsel %vm3117_vm1, %v3119_v60, %v3115_v28  ;;  %v3139_v34 = vsub.f32 1.0, %v3138_v4 }
 0x9ff   :  { %v5988_v57 = vadd.f32 %v3236_v38, %v5731_v41 }
 0xa00   :  { %v3140_v5 = vmul.f32 %v4157_v24, %v3139_v34 }
 0xa01   :  { %v3261_v62 = vsel %vm61_vm0, %v5988_v57, 0.0 }
 0xa02   :  { %3262 = vadd.xlane.f32.xlu2 %v3261_v62  ;;  %v3141_v0 = vadd.f32 %v4157_v24, %v3140_v5 }
 0xa04   :  { %v3223_v17 = vpop.f32.mrf.mxu0  ;;  %v3145_v39 = vsel %vm3144_vm8, %v4157_v24, %v3141_v0 }
 0xa05   :  { %v3237_v55 = vmul.f32 %v3223_v17, %v3105_v32  ;;  %v3150_v51 = vsel %vm3147_vm9, %v3149_v48, %v3145_v39  ;;  %v6073_v39 = vld [vmem:[%s6151_s13 + $0x1] ss:$0 sm:$0xff] }
 0xa07   :  { %v5994_v41 = vadd.f32 %v3237_v55, %v5736_v49 }
 0xa09   :  { %v3264_v42 = vsel %vm61_vm0, %v5994_v41, 0.0 }
 0xa0a   :  { %3265 = vadd.xlane.f32.xlu0 %v3264_v42 }
 0xa0c   :  { %v3225_v12 = vpop.f32.mrf.mxu0 }
 0xa0d   :  { %v3238_v23 = vmul.f32 %v3225_v12, %v3120_v9 }
 0xa0f   :  { %v6001_v14 = vadd.f32 %v3238_v23, %v5741_v56  ;;  %v3124_v56 = vsub.f32 1.0, %v3123_v26 }
 0xa11   :  { %v3267_v49 = vsel %vm61_vm0, %v6001_v14, 0.0  ;;  %v3125_v36 = vmul.f32 %v4155_v30, %v3124_v56 }
 0xa12   :  { %3268 = vadd.xlane.f32.xlu1 %v3267_v49 }
 0xa13   :  { %v3126_v31 = vadd.f32 %v4155_v30, %v3125_v36 }
 0xa15   :  { %v3130_v16 = vsel %vm3129_vm4, %v4155_v30, %v3126_v31 }
 0xa16   :  { %v3135_v18 = vsel %vm3132_vm5, %v3134_v10, %v3130_v16 }
 0xa54   :  { %v3254_v44 = vpop.xlane.xlu2 %3253 }
 0xa55   :  { %v3276_v25 = vmul.f32 %v3254_v44, %v4287_v22 }
 0xa56   :  { %v3228_v54 = vpop.f32.mrf.mxu0 }
 0xa57   :  { %v3239_v53 = vmul.f32 %v3228_v54, %v3135_v18  ;;  %v6009_v38 = vsub.f32 %v5969_v27, %v3276_v25 }
 0xa59   :  { %v3247_v3 = vadd.f32 %v3239_v53, %v5750_v7  ;;  %v3292_v7 = vmul.f32 %v6009_v38, %v6009_v38 }
 0xa5b   :  { %v3270_v2 = vsel %vm61_vm0, %v3247_v3, 0.0  ;;  %v3300_v62 = vsel %vm61_vm0, %v3292_v7, 0.0 }
 0xa5c   :  { %3271 = vadd.xlane.f32.xlu2 %v3270_v2  ;;  %3301 = vadd.xlane.f32.xlu1 %v3300_v62  ;;  %v3257_v58 = vpop.xlane.xlu0 %3256 }
 0xa5d   :  { %v3277_v29 = vmul.f32 %v3257_v58, %v4287_v22 }
 0xa5e   :  { %v3230_v35 = vpop.f32.mrf.mxu0 }
 0xa5f   :  { %v3240_v59 = vmul.f32 %v3230_v35, %v3150_v51  ;;  %v6018_v27 = vsub.f32 %v5974_v6, %v3277_v29 }
 0xa61   :  { %v3248_v63 = vadd.f32 %v3240_v59, %v5762_v33  ;;  %v3293_v32 = vmul.f32 %v6018_v27, %v6018_v27 }
 0xa63   :  { %v3273_v13 = vsel %vm61_vm0, %v3248_v63, 0.0  ;;  %v3303_v17 = vsel %vm61_vm0, %v3293_v32, 0.0 }
 0xa64   :  { %3274 = vadd.xlane.f32.xlu0 %v3273_v13  ;;  %3304 = vadd.xlane.f32.xlu2 %v3303_v17 }
 0xa6d   :  { %v3260_v55 = vpop.xlane.xlu1 %3259 }
 0xa6e   :  { %v3278_v33 = vmul.f32 %v3260_v55, %v4287_v22 }
 0xa70   :  { %v6025_v15 = vsub.f32 %v5982_v8, %v3278_v33 }
 0xa72   :  { %v3294_v37 = vmul.f32 %v6025_v15, %v6025_v15 }
 0xa74   :  { %v3306_v1 = vsel %vm61_vm0, %v3294_v37, 0.0 }
 0xa75   :  { %v3263_v42 = vpop.xlane.xlu2 %3262  ;;  %3307 = vadd.xlane.f32.xlu0 %v3306_v1 }
 0xa76   :  { %v3279_v6 = vmul.f32 %v3263_v42, %v4287_v22 }
 0xa78   :  { %v6032_v28 = vsub.f32 %v5988_v57, %v3279_v6 }
 0xa7a   :  { %v3295_v60 = vmul.f32 %v6032_v28, %v6032_v28 }
 0xa7c   :  { %v3309_v9 = vsel %vm61_vm0, %v3295_v60, 0.0 }
 0xa7d   :  { %3310 = vadd.xlane.f32.xlu1 %v3309_v9  ;;  %v3266_v8 = vpop.xlane.xlu0 %3265 }
 0xa7e   :  { %v3280_v12 = vmul.f32 %v3266_v8, %v4287_v22 }
 0xa80   :  { %v6039_v23 = vsub.f32 %v5994_v41, %v3280_v12 }
 0xa82   :  { %v3296_v49 = vmul.f32 %v6039_v23, %v6039_v23 }
 0xa84   :  { %v3312_v21 = vsel %vm61_vm0, %v3296_v49, 0.0 }
 0xa85   :  { %v3269_v46 = vpop.xlane.xlu1 %3268  ;;  %3313 = vadd.xlane.f32.xlu2 %v3312_v21 }
 0xa86   :  { %v3281_v57 = vmul.f32 %v3269_v46, %v4287_v22 }
 0xa88   :  { %v6046_v50 = vsub.f32 %v6001_v14, %v3281_v57 }
 0xa8a   :  { %v3297_v45 = vmul.f32 %v6046_v50, %v6046_v50 }
 0xa8c   :  { %v3315_v40 = vsel %vm61_vm0, %v3297_v45, 0.0 }
 0xa8d   :  { %3316 = vadd.xlane.f32.xlu0 %v3315_v40 }
 0xacf   :  { %v3272_v41 = vpop.xlane.xlu2 %3271  ;;  %v3302_v43 = vpop.xlane.xlu1 %3301 }
 0xad0   :  { %v3282_v47 = vmul.f32 %v3272_v41, %v4287_v22  ;;  %v3324_v30 = vmul.f32 %v3302_v43, %v4287_v22 }
 0xad2   :  { %v6052_v20 = vsub.f32 %v3247_v3, %v3282_v47  ;;  %v3332_v56 = vadd.f32 1e-05, %v3324_v30 }
 0xad4   :  { %v3298_v26 = vmul.f32 %v6052_v20, %v6052_v20  ;;  %4158 = vrsqrt.f32 %v3332_v56  ;;  %vm3346_vm11 = vweird.f32 %v3332_v56 }
 0xad6   :  { %v3318_v14 = vsel %vm61_vm0, %v3298_v26, 0.0 }
 0xad7   :  { %3319 = vadd.xlane.f32.xlu1 %v3318_v14  ;;  %v3275_v24 = vpop.xlane.xlu0 %3274  ;;  %v3305_v4 = vpop.xlane.xlu2 %3304 }
 0xad8   :  { %v3283_v36 = vmul.f32 %v3275_v24, %v4287_v22  ;;  %v3325_v34 = vmul.f32 %v3305_v4, %v4287_v22 }
 0xada   :  { %v6059_v31 = vsub.f32 %v3248_v63, %v3283_v36  ;;  %v4159_v61 = vpop.eup %4158  ;;  %v3333_v16 = vadd.f32 1e-05, %v3325_v34 }
 0xadb   :  { %v3341_v5 = vmul.f32 %v4159_v61, %v3332_v56  ;;  %vm3347_vm10 = vweird.f32 %v4159_v61 }
 0xadc   :  { %v3299_v19 = vmul.f32 %v6059_v31, %v6059_v31  ;;  %4160 = vrsqrt.f32 %v3333_v16  ;;  %vm3348_vm12 = vmor %vm3346_vm11, %vm3347_vm10  ;;  %vm3356_vm14 = vweird.f32 %v3333_v16 }
 0xadd   :  { %v3342_v18 = vmul.f32 %v4159_v61, %v3341_v5 }
 0xade   :  { %v3321_v10 = vsel %vm61_vm0, %v3299_v19, 0.0 }
 0xadf   :  { %3322 = vadd.xlane.f32.xlu2 %v3321_v10  ;;  %v3343_v54 = vmul.f32 0.5, %v3342_v18 }
 0xae1   :  { %v3344_v53 = vsub.f32 1.5, %v3343_v54 }
 0xae2   :  { %v4161_v0 = vpop.eup %4160 }
 0xae3   :  { %v3345_v52 = vmul.f32 %v4159_v61, %v3344_v53  ;;  %v3351_v3 = vmul.f32 %v4161_v0, %v3333_v16  ;;  %vm3357_vm13 = vweird.f32 %v4161_v0 }
 0xae4   :  { %vm3358_vm15 = vmor %vm3356_vm14, %vm3357_vm13 }
 0xae5   :  { %v3349_v44 = vsel %vm3348_vm12, %v4159_v61, %v3345_v52  ;;  %v3352_v2 = vmul.f32 %v4161_v0, %v3351_v3 }
 0xae6   :  { %v3420_v25 = vmul.f32 %v3349_v44, %v6009_v38 }
 0xae7   :  { %v3353_v48 = vmul.f32 0.5, %v3352_v2 }
 0xae8   :  { %v3431_v51 = vmul.f32 %v6068_v11, %v3420_v25  ;;  %v3308_v63 = vpop.xlane.xlu0 %3307 }
 0xae9   :  { %v3354_v35 = vsub.f32 1.5, %v3353_v48  ;;  %v3326_v62 = vmul.f32 %v3308_v63, %v4287_v22 }
 0xaea   :  { %v3442_v59 = vadd.f32 %v6073_v39, %v3431_v51 }
 0xaeb   :  { %v3355_v7 = vmul.f32 %v4161_v0, %v3354_v35  ;;  %v3334_v13 = vadd.f32 1e-05, %v3326_v62 }
 0xaec   :  { %3450 = vst.msk [vmem:[%s6152_s14] sm:$0xff] %vm61_vm0, %v3442_v59 }
 0xaed   :  { %v3359_v58 = vsel %vm3358_vm15, %v4161_v0, %v3355_v7  ;;  %4162 = vrsqrt.f32 %v3334_v13  ;;  %vm3366_vm2 = vweird.f32 %v3334_v13 }
 0xaee   :  { %v3421_v38 = vmul.f32 %v3359_v58, %v6018_v27 }
 0xaf0   :  { %v3432_v29 = vmul.f32 %v6068_v11, %v3421_v38  ;;  %v3311_v17 = vpop.xlane.xlu1 %3310 }
 0xaf1   :  { %v3327_v55 = vmul.f32 %v3311_v17, %v4287_v22 }
 0xaf2   :  { %v3443_v32 = vadd.f32 %v6073_v39, %v3432_v29 }
 0xaf3   :  { %v4163_v33 = vpop.eup %4162  ;;  %v3335_v37 = vadd.f32 1e-05, %v3327_v55 }
 0xaf4   :  { %3451 = vst.msk [vmem:[%s6152_s14 + $0x8] sm:$0xff] %vm61_vm0, %v3443_v32  ;;  %v3361_v1 = vmul.f32 %v4163_v33, %v3334_v13  ;;  %vm3367_vm1 = vweird.f32 %v4163_v33 }
 0xaf5   :  { %4164 = vrsqrt.f32 %v3335_v37  ;;  %vm3368_vm3 = vmor %vm3366_vm2, %vm3367_vm1  ;;  %vm3376_vm5 = vweird.f32 %v3335_v37 }
 0xaf6   :  { %v3362_v42 = vmul.f32 %v4163_v33, %v3361_v1 }
 0xaf8   :  { %v3363_v27 = vmul.f32 0.5, %v3362_v42  ;;  %v3314_v6 = vpop.xlane.xlu2 %3313 }
 0xaf9   :  { %v3328_v60 = vmul.f32 %v3314_v6, %v4287_v22 }
 0xafa   :  { %v3364_v9 = vsub.f32 1.5, %v3363_v27 }
 0xafb   :  { %v4165_v8 = vpop.eup %4164  ;;  %v3336_v12 = vadd.f32 1e-05, %v3328_v60 }
 0xafc   :  { %v3365_v49 = vmul.f32 %v4163_v33, %v3364_v9  ;;  %v3371_v21 = vmul.f32 %v4165_v8, %v3335_v37  ;;  %vm3377_vm4 = vweird.f32 %v4165_v8 }
 0xafd   :  { %4166 = vrsqrt.f32 %v3336_v12  ;;  %vm3378_vm6 = vmor %vm3376_vm5, %vm3377_vm4  ;;  %vm3386_vm8 = vweird.f32 %v3336_v12 }
 0xafe   :  { %v3369_v46 = vsel %vm3368_vm3, %v4163_v33, %v3365_v49  ;;  %v3372_v57 = vmul.f32 %v4165_v8, %v3371_v21 }
 0xaff   :  { %v3422_v45 = vmul.f32 %v3369_v46, %v6025_v15 }
 0xb00   :  { %v3373_v40 = vmul.f32 0.5, %v3372_v57  ;;  %v3317_v41 = vpop.xlane.xlu0 %3316 }
 0xb01   :  { %v3433_v47 = vmul.f32 %v6068_v11, %v3422_v45  ;;  %v3329_v43 = vmul.f32 %v3317_v41, %v4287_v22 }
 0xb02   :  { %v3374_v30 = vsub.f32 1.5, %v3373_v40 }
 0xb03   :  { %v4167_v26 = vpop.eup %4166  ;;  %v3444_v56 = vadd.f32 %v6073_v39, %v3433_v47  ;;  %v3337_v14 = vadd.f32 1e-05, %v3329_v43 }
 0xb04   :  { %v3375_v24 = vmul.f32 %v4165_v8, %v3374_v30  ;;  %v3381_v36 = vmul.f32 %v4167_v26, %v3336_v12  ;;  %vm3387_vm7 = vweird.f32 %v4167_v26 }
 0xb05   :  { %3452 = vst.msk [vmem:[%s6152_s14 + $0x10] sm:$0xff] %vm61_vm0, %v3444_v56  ;;  %4168 = vrsqrt.f32 %v3337_v14  ;;  %vm3388_vm9 = vmor %vm3386_vm8, %vm3387_vm7  ;;  %vm3396_vm11 = vweird.f32 %v3337_v14 }
 0xb06   :  { %v3379_v15 = vsel %vm3378_vm6, %v4165_v8, %v3375_v24  ;;  %v3382_v4 = vmul.f32 %v4167_v26, %v3381_v36 }
 0xb07   :  { %v3423_v34 = vmul.f32 %v3379_v15, %v6032_v28 }
 0xb08   :  { %v3383_v19 = vmul.f32 0.5, %v3382_v4 }
 0xb09   :  { %v3434_v61 = vmul.f32 %v6068_v11, %v3423_v34 }
 0xb0a   :  { %v3384_v16 = vsub.f32 1.5, %v3383_v19 }
 0xb0b   :  { %v4169_v5 = vpop.eup %4168  ;;  %v3445_v10 = vadd.f32 %v6073_v39, %v3434_v61 }
 0xb0c   :  { %v3385_v18 = vmul.f32 %v4167_v26, %v3384_v16  ;;  %v3391_v54 = vmul.f32 %v4169_v5, %v3337_v14  ;;  %vm3397_vm10 = vweird.f32 %v4169_v5 }
 0xb0d   :  { %3453 = vst.msk [vmem:[%s6152_s14 + $0x18] sm:$0xff] %vm61_vm0, %v3445_v10  ;;  %vm3398_vm12 = vmor %vm3396_vm11, %vm3397_vm10 }
 0xb0e   :  { %v3389_v53 = vsel %vm3388_vm9, %v4167_v26, %v3385_v18  ;;  %v3392_v0 = vmul.f32 %v4169_v5, %v3391_v54 }
 0xb0f   :  { %v3424_v28 = vmul.f32 %v3389_v53, %v6039_v23 }
 0xb10   :  { %v3393_v52 = vmul.f32 0.5, %v3392_v0 }
 0xb11   :  { %v3435_v3 = vmul.f32 %v6068_v11, %v3424_v28 }
 0xb12   :  { %v3394_v44 = vsub.f32 1.5, %v3393_v52 }
 0xb13   :  { %v3446_v2 = vadd.f32 %v6073_v39, %v3435_v3 }
 0xb14   :  { %v3395_v25 = vmul.f32 %v4169_v5, %v3394_v44 }
 0xb15   :  { %3454 = vst.msk [vmem:[%s6152_s14 + $0x20] sm:$0xff] %vm61_vm0, %v3446_v2 }
 0xb16   :  { %v3399_v48 = vsel %vm3398_vm12, %v4169_v5, %v3395_v25 }
 0xb17   :  { %v3425_v51 = vmul.f32 %v3399_v48, %v6046_v50 }
 0xb19   :  { %v3436_v23 = vmul.f32 %v6068_v11, %v3425_v51 }
 0xb1b   :  { %v3447_v35 = vadd.f32 %v6073_v39, %v3436_v23 }
 0xb1d   :  { %3455 = vst.msk [vmem:[%s6152_s14 + $0x28] sm:$0xff] %vm61_vm0, %v3447_v35 }
 0xb4a   :  { %v3320_v59 = vpop.xlane.xlu1 %3319 }
 0xb4b   :  { %v3330_v7 = vmul.f32 %v3320_v59, %v4287_v22 }
 0xb4d   :  { %v3338_v63 = vadd.f32 1e-05, %v3330_v7 }
 0xb4f   :  { %4170 = vrsqrt.f32 %v3338_v63  ;;  %vm3406_vm14 = vweird.f32 %v3338_v63 }
 0xb52   :  { %v3323_v62 = vpop.xlane.xlu2 %3322 }
 0xb53   :  { %v3331_v58 = vmul.f32 %v3323_v62, %v4287_v22 }
 0xb55   :  { %v4171_v38 = vpop.eup %4170  ;;  %v3339_v13 = vadd.f32 1e-05, %v3331_v58 }
 0xb56   :  { %v3401_v50 = vmul.f32 %v4171_v38, %v3338_v63  ;;  %vm3407_vm13 = vweird.f32 %v4171_v38 }
 0xb57   :  { %4172 = vrsqrt.f32 %v3339_v13  ;;  %vm3408_vm15 = vmor %vm3406_vm14, %vm3407_vm13  ;;  %vm3416_vm2 = vweird.f32 %v3339_v13 }
 0xb58   :  { %v3402_v29 = vmul.f32 %v4171_v38, %v3401_v50 }
 0xb5a   :  { %v3403_v32 = vmul.f32 0.5, %v3402_v29 }
 0xb5c   :  { %v3404_v17 = vsub.f32 1.5, %v3403_v32 }
 0xb5d   :  { %v4173_v55 = vpop.eup %4172 }
 0xb5e   :  { %v3405_v33 = vmul.f32 %v4171_v38, %v3404_v17  ;;  %v3411_v37 = vmul.f32 %v4173_v55, %v3339_v13  ;;  %vm3417_vm1 = vweird.f32 %v4173_v55 }
 0xb5f   :  { %vm3418_vm3 = vmor %vm3416_vm2, %vm3417_vm1 }
 0xb60   :  { %v3409_v1 = vsel %vm3408_vm15, %v4171_v38, %v3405_v33  ;;  %v3412_v42 = vmul.f32 %v4173_v55, %v3411_v37 }
 0xb61   :  { %v3426_v27 = vmul.f32 %v3409_v1, %v6052_v20 }
 0xb62   :  { %v3413_v6 = vmul.f32 0.5, %v3412_v42 }
 0xb63   :  { %v3437_v22 = vmul.f32 %v6068_v11, %v3426_v27 }
 0xb64   :  { %v3414_v60 = vsub.f32 1.5, %v3413_v6 }
 0xb65   :  { %v3448_v9 = vadd.f32 %v6073_v39, %v3437_v22 }
 0xb66   :  { %v3415_v8 = vmul.f32 %v4173_v55, %v3414_v60 }
 0xb67   :  { %3456 = vst.msk [vmem:[%s6152_s14 + $0x30] sm:$0xff] %vm61_vm0, %v3448_v9 }
 0xb68   :  { %v3419_v12 = vsel %vm3418_vm3, %v4173_v55, %v3415_v8 }
 0xb69   :  { %v3427_v49 = vmul.f32 %v3419_v12, %v6059_v31 }
 0xb6b   :  { %v3438_v20 = vmul.f32 %v6068_v11, %v3427_v49 }
 0xb6d   :  { %v3449_v21 = vadd.f32 %v6073_v39, %v3438_v20 }
 0xb6f   :  { %3457 = vst.msk [vmem:[%s6152_s14 + $0x38] sm:$0xff] %vm61_vm0, %v3449_v21 }

</bundles_post_ra>
